<compile_context>
chip_gen: v6e
topology: v6e:2x2x1
jax: 0.10.0
libtpu: 0.0.40
codegen_flags: <defaults>
</compile_context>

<pallas_src>
import functools

import numpy as np

import jax
import jax.numpy as jnp
from jax.experimental import pallas as pl
from jax.experimental.pallas import tpu as pltpu


_LANE = 128      # TPU lane width; FC feature dims are padded up to multiples of this
_SUB_OFF = 8     # sublane-aligned in-block offset of the data rows in the conv1 scratch


def _round_up(n, m):
    return ((n + m - 1) // m) * m


def _tropical_conv(win_list, wmin, wmax):
    """Tropical (min-plus + max-plus) 1-D conv body on stacked-batch tiles.

    win_list[k] : (H, cin) window of the stacked input for tap k (layout [t, c])
    wmin, wmax  : (K, cin, cout) weight values                   (layout [k, c, o])
    Returns 0.5 * min_plus + 0.5 * max_plus, shape (H, cout), layout [t, o].

    Cin-looped with running (H, cout) min/max state initialized from the k=0
    tap (no inf fills, no 3-D/4-D accumulator blow-up).
    NOTE: packing wmin/wmax along lanes (single add, min on [:cout] / max on
    [cout:]) would shave ~25% of the conv VPU adds but needs lane-offset value
    slices; kept as separate adds for robust lowering."""
    kk, cin, _ = wmin.shape
    y_sum = None
    for c in range(cin):
        mn = mx = None
        for k in range(kk):
            win_c = win_list[k][:, c:c + 1]              # (H, 1)
            cand_min = win_c + wmin[k, c:c + 1, :]       # (H, cout)
            cand_max = win_c + wmax[k, c:c + 1, :]
            mn = cand_min if k == 0 else jnp.minimum(mn, cand_min)
            mx = cand_max if k == 0 else jnp.maximum(mx, cand_max)
        contrib = mn + mx                                # min-resolved + max-resolved, channel c
        y_sum = contrib if c == 0 else y_sum + contrib
    # 0.5 * (Σ_c min + Σ_c max) == 0.5 * min_plus + 0.5 * max_plus
    # TODO(synk): mixing constant assumed 0.5/0.5 (see header comment).
    return 0.5 * y_sum


def _lenet_fused_kernel(x_ref, wmin1_ref, wmax1_ref, wmin2_ref, wmax2_ref,
                        p1_ref, p2_ref, w1_ref, b1_ref, w2_ref, b2_ref,
                        w3_ref, b3_ref, o_ref, xpad_ref, *, s1, off1):
    # One batch BLOCK of TB samples per grid program, stacked along sublanes.
    TB, L, cin = x_ref.shape
    k1 = wmin1_ref.shape[0]
    k2 = wmin2_ref.shape[0]
    H1 = TB * s1                          # conv1 rows computed (incl. boundary garbage)
    H2 = p2_ref.shape[1]                  # conv2 rows computed (incl. boundary garbage)
    lpool2 = p2_ref.shape[0] // TB
    extra = xpad_ref.shape[0] - TB * s1   # trailing zero rows (right pad of last block)
    tail = s1 - off1 - L                  # in-block rows after the data (0 if L % 8 == 0)

    # ---- zero only the padding rows of the conv1 scratch (the data rows are
    # fully overwritten below).  Done every step so each TensorCore's private
    # scratch is initialized even when the batch blocks are split across cores.
    for b in range(TB):
        xpad_ref[b * s1: b * s1 + off1, :] = jnp.zeros((off1, cin), jnp.float32)
        if tail > 0:
            xpad_ref[b * s1 + off1 + L: (b + 1) * s1, :] = (
                jnp.zeros((tail, cin), jnp.float32))
    xpad_ref[TB * s1: TB * s1 + extra, :] = jnp.zeros((extra, cin), jnp.float32)

    # ---- sublane-aligned stores of each sample into its block of the stacked layout
    for b in range(TB):
        xpad_ref[b * s1 + off1: b * s1 + off1 + L, :] = x_ref[b]

    # ---- tropical conv1 on the whole stacked batch:  [t, c] -> [t, o]
    wins1 = [xpad_ref[k: k + H1, :] for k in range(k1)]
    y1 = _tropical_conv(wins1, wmin1_ref[...], wmax1_ref[...])          # (H1, cout1)

    # ---- avg_pool1d(2,2) + drop boundary-garbage rows: one MXU matmul with the
    # hoisted constant pooling/selection matrix (b-major rows -> conv2 input blocks)
    y1p = jnp.dot(p1_ref[...], y1, preferred_element_type=jnp.float32)  # (TB*lp1, cout1)

    # ---- tropical conv2 (no padding), stacked batch
    wins2 = [y1p[k: k + H2, :] for k in range(k2)]
    y2 = _tropical_conv(wins2, wmin2_ref[...], wmax2_ref[...])          # (H2, cout2)

    # pool2 + row selection, p-major rows so fc1 chunks are contiguous row blocks
    g = jnp.dot(p2_ref[...], y2, preferred_element_type=jnp.float32)    # (lp2*TB, cout2)

    # ---- fused, batched MLP head. The flatten (feature = o*lpool2 + p) is folded
    # into the pre-packed fc1 weight w1[p, o, :]; each chunk dot covers the whole
    # batch block.  Bias adds stay adjacent to the dots (v7x MRB accumulate path).
    acc = None
    for p in range(lpool2):
        part = jnp.dot(g[p * TB:(p + 1) * TB, :], w1_ref[p],
                       preferred_element_type=jnp.float32)              # (TB, 128)
        acc = part if p == 0 else acc + part
    h1 = jnp.maximum(acc + b1_ref[...], 0.0)
    h2 = jnp.maximum(
        jnp.dot(h1, w2_ref[...], preferred_element_type=jnp.float32) + b2_ref[...],
        0.0)
    out = jnp.dot(h2, w3_ref[...], preferred_element_type=jnp.float32) + b3_ref[...]
    o_ref[0] = out                                                      # (TB, 128) lane-dense


# ---------------------------------------------------------------------------
# Wrapper
# ---------------------------------------------------------------------------
def constant_parallel_tropical_lenet1(x, kp, *, num_classes, padding1=2,
                                      num_programs=None):
    """Forward pass. x: (B, Cin, L) float32 (PyTorch NCL layout).
    kp: kernel-layout parameters from prepare_params()."""
    B, c_in, L = x.shape
    assert padding1 <= _SUB_OFF
    k1 = kp["wmin1"].shape[0]
    k2 = kp["wmin2"].shape[0]
    f_out = kp["b3"].shape[-1]                  # padded, lane-dense output width

    lout1 = L + 2 * padding1 - k1 + 1
    lpool1 = lout1 // 2
    lout2 = lpool1 - k2 + 1
    lpool2 = lout2 // 2
    assert lout1 > 0 and lout2 > 0 and lpool1 > 0 and lpool2 > 0
    assert kp["w1"].shape[0] == lpool2, (kp["w1"].shape, lpool2)

    # Grid sizing: one fat program for small batches / single-TC chips (v5e/v6e),
    # two programs (one per TensorCore) on v7x once the batch is big enough to split.
    if num_programs is None:
        num_programs = 2 if B >= 16 else 1
    G = max(1, min(num_programs, B))
    TB = -(-B // G)                             # ceil(B / G)
    B_pad = G * TB

    # Stacked-batch geometry: each sample occupies S1 sublane rows of the padded
    # conv1 input (data at in-block offset _SUB_OFF -> aligned stores, the rows on
    # either side are the zero padding).
    S1 = _round_up(_SUB_OFF + L, 8)
    extra = _round_up(max(k1 - 1, padding1, 1), 8)
    H1 = TB * S1                                # conv1 rows (boundary rows dropped later)
    S2 = lpool1
    H2 = TB * S2 - k2 + 1

    # Constant pooling/selection matrices (built host-side once per shape; baked
    # in at trace time).  They avg-pool (k=2, s=2) AND drop the boundary rows.
    P1 = np.zeros((TB * lpool1, H1), np.float32)        # rows b-major: (b, p)
    for b in range(TB):
        for p in range(lpool1):
            r = b * S1 + _SUB_OFF - padding1 + 2 * p
            P1[b * lpool1 + p, r] = 0.5
            P1[b * lpool1 + p, r + 1] = 0.5
    P2 = np.zeros((lpool2 * TB, H2), np.float32)        # rows p-major: (p, b)
    for b in range(TB):
        for p in range(lpool2):
            r = b * S2 + 2 * p
            P2[p * TB + b, r] = 0.5
            P2[p * TB + b, r + 1] = 0.5
    P1 = jnp.asarray(P1)
    P2 = jnp.asarray(P2)

    # Layout plumbing only (tiny, one fused XLA op; the per-step DMA concern is
    # gone now that the grid has only 1-2 steps).
    x_nlc = jnp.transpose(x, (0, 2, 1))                 # (B, L, Cin)
    if B_pad != B:
        x_nlc = jnp.pad(x_nlc, ((0, B_pad - B), (0, 0), (0, 0)))

    kernel = functools.partial(_lenet_fused_kernel, s1=S1, off1=_SUB_OFF)
    out3 = pl.pallas_call(
        kernel,
        out_shape=jax.ShapeDtypeStruct((G, TB, f_out), jnp.float32),
        grid_spec=pltpu.PrefetchScalarGridSpec(
            num_scalar_prefetch=0,
            grid=(G,),                          # one batch BLOCK per program
            in_specs=[
                pl.BlockSpec((TB, L, c_in), lambda g: (g, 0, 0)),
                pl.BlockSpec(kp["wmin1"].shape, lambda g: (0, 0, 0)),
                pl.BlockSpec(kp["wmax1"].shape, lambda g: (0, 0, 0)),
                pl.BlockSpec(kp["wmin2"].shape, lambda g: (0, 0, 0)),
                pl.BlockSpec(kp["wmax2"].shape, lambda g: (0, 0, 0)),
                pl.BlockSpec(P1.shape, lambda g: (0, 0)),
                pl.BlockSpec(P2.shape, lambda g: (0, 0)),
                pl.BlockSpec(kp["w1"].shape, lambda g: (0, 0, 0)),
                pl.BlockSpec(kp["b1"].shape, lambda g: (0, 0)),
                pl.BlockSpec(kp["w2"].shape, lambda g: (0, 0)),
                pl.BlockSpec(kp["b2"].shape, lambda g: (0, 0)),
                pl.BlockSpec(kp["w3"].shape, lambda g: (0, 0)),
                pl.BlockSpec(kp["b3"].shape, lambda g: (0, 0)),
            ],
            out_specs=pl.BlockSpec((1, TB, f_out), lambda g: (g, 0, 0)),
            scratch_shapes=[
                pltpu.VMEM((TB * S1 + extra, c_in), jnp.float32),   # stacked padded input
            ],
        ),
        compiler_params=pltpu.CompilerParams(
            dimension_semantics=("parallel",),   # megacore: blocks shard across TCs on v7x
        ),
    )(x_nlc, kp["wmin1"], kp["wmax1"], kp["wmin2"], kp["wmax2"],
      P1, P2, kp["w1"], kp["b1"], kp["w2"], kp["b2"], kp["w3"], kp["b3"])
    return out3.reshape(B_pad, f_out)[:B, :num_classes]


# ---------------------------------------------------------------------------
# Parameters: PyTorch-layout init + one-time repack into kernel layouts.
# ---------------------------------------------------------------------------
def init_params(key, input_channels, num_classes, first_k, second_k, linear_size):
    """PyTorch-layout parameters (Conv: (Cout, Cin, K); Linear: (in, out))."""
    ks = jax.random.split(key, 10)
    s = 0.1
    return {
        "conv1_wmin": s * jax.random.normal(ks[0], (6, input_channels, first_k), jnp.float32),
        "conv1_wmax": s * jax.random.normal(ks[1], (6, input_channels, first_k), jnp.float32),
        "conv2_wmin": s * jax.random.normal(ks[2], (16, 6, second_k), jnp.float32),
        "conv2_wmax": s * jax.random.normal(ks[3], (16, 6, second_k), jnp.float32),
        "fc1_w": s * jax.random.normal(ks[4], (linear_size, 120), jnp.float32),
        "fc1_b": s * jax.random.normal(ks[5], (1, 120), jnp.float32),
        "fc2_w": s * jax.random.normal(ks[6], (120, 84), jnp.float32),
        "fc2_b": s * jax.random.normal(ks[7], (1, 84), jnp.float32),
        "fc3_w": s * jax.random.normal(ks[8], (84, num_classes), jnp.float32),
        "fc3_b": s * jax.random.normal(ks[9], (1, num_classes), jnp.float32),
    }


def prepare_params(p):
    """One-time repack (done once at setup, NOT per forward):
      * conv weights (Cout, Cin, K) -> (K, Cin, Cout)
      * fc1 weight (Cout2*Lp2, 120) -> (Lp2, Cout2, 128)  (flatten folded in)
      * fc2/fc3 weights and all biases zero-padded to 128-wide feature dims."""
    cout2 = p["conv2_wmin"].shape[0]
    lin_in, f1 = p["fc1_w"].shape
    f2 = p["fc2_w"].shape[1]
    fo = p["fc3_w"].shape[1]
    lp2 = lin_in // cout2
    assert lp2 * cout2 == lin_in, "linear_size must equal cout2 * pooled_length"
    f1p, f2p, fop = (_round_up(n, _LANE) for n in (f1, f2, fo))

    w1 = p["fc1_w"].reshape(cout2, lp2, f1)          # [o, t, j] (flatten index = o*lp2 + t)
    w1 = jnp.transpose(w1, (1, 0, 2))                # [t, o, j]
    w1 = jnp.pad(w1, ((0, 0), (0, 0), (0, f1p - f1)))

    return {
        "wmin1": jnp.transpose(p["conv1_wmin"], (2, 1, 0)),           # (K1, Cin, 6)
        "wmax1": jnp.transpose(p["conv1_wmax"], (2, 1, 0)),
        "wmin2": jnp.transpose(p["conv2_wmin"], (2, 1, 0)),           # (K2, 6, 16)
        "wmax2": jnp.transpose(p["conv2_wmax"], (2, 1, 0)),
        "w1": w1,                                                     # (lp2, 16, 128)
        "b1": jnp.pad(p["fc1_b"], ((0, 0), (0, f1p - f1))),           # (1, 128)
        "w2": jnp.pad(p["fc2_w"], ((0, f1p - f1), (0, f2p - f2))),    # (128, 128)
        "b2": jnp.pad(p["fc2_b"], ((0, 0), (0, f2p - f2))),           # (1, 128)
        "w3": jnp.pad(p["fc3_w"], ((0, f2p - f2), (0, fop - fo))),    # (128, 128)
        "b3": jnp.pad(p["fc3_b"], ((0, 0), (0, fop - fo))),           # (1, 128)
    }


# ---------------------------------------------------------------------------
# Host-side float64 reference (exact ground truth) for the correctness check.
# ---------------------------------------------------------------------------
def _reference_forward_np(x, p):
    def f64(a):
        return np.asarray(a, np.float64)

    def tconv(xin, wmin, wmax, pad):
        wmin, wmax = f64(wmin), f64(wmax)
        B, cin, L = xin.shape
        cout, _, K = wmin.shape
        xp = np.pad(xin, ((0, 0), (0, 0), (pad, pad)))
        lout = L + 2 * pad - K + 1
        mn = np.full((B, cout, cin, lout), np.inf)
        mx = np.full((B, cout, cin, lout), -np.inf)
        for k in range(K):
            win = xp[:, :, k:k + lout]                           # (B, cin, lout)
            mn = np.minimum(mn, win[:, None] + wmin[None, :, :, k, None])
            mx = np.maximum(mx, win[:, None] + wmax[None, :, :, k, None])
        return 0.5 * mn.sum(axis=2) + 0.5 * mx.sum(axis=2)

    def pool(y):
        B, C, L = y.shape
        return y[:, :, :(L // 2) * 2].reshape(B, C, L // 2, 2).mean(-1)

    y = pool(tconv(f64(x), p["conv1_wmin"], p["conv1_wmax"], 2))
    y = pool(tconv(y, p["conv2_wmin"], p["conv2_wmax"], 0))
    flat = y.reshape(y.shape[0], -1)
    h1 = np.maximum(flat @ f64(p["fc1_w"]) + f64(p["fc1_b"]), 0.0)
    h2 = np.maximum(h1 @ f64(p["fc2_w"]) + f64(p["fc2_b"]), 0.0)
    return h2 @ f64(p["fc3_w"]) + f64(p["fc3_b"])


if __name__ == "__main__":
    # Small shapes consistent with the module:
    #   input_channels=3, num_classes=10, L=16,
    #   first_layer_kernel_size=5, second_layer_kernel_size=3
    #   conv1: 16+4-5+1=16 -> pool 8 ; conv2: 8-3+1=6 -> pool 3 ; flatten = 16*3 = 48
    B, C_IN, L = 4, 3, 16
    K1, K2 = 5, 3
    NUM_CLASSES = 10
    LINEAR_SIZE = 16 * 3

    key = jax.random.PRNGKey(0)
    k_x, k_p = jax.random.split(key)
    x = jax.random.normal(k_x, (B, C_IN, L), jnp.float32)
    params = init_params(k_p, C_IN, NUM_CLASSES, K1, K2, LINEAR_SIZE)
    kparams = prepare_params(params)          # one-time kernel-layout repack

    @jax.jit
    def fwd(xin, kp):
        return constant_parallel_tropical_lenet1(xin, kp,
                                                 num_classes=NUM_CLASSES,
                                                 padding1=2)

    out = jax.block_until_ready(fwd(x, kparams))
    assert out.shape == (B, NUM_CLASSES), out.shape
    assert bool(jnp.all(jnp.isfinite(out)))

    # Check against an exact float64 host reference: any layout/indexing bug in
    # the stacked-batch folding gives O(1) error; the slack below only covers
    # MXU float32 default-precision rounding.
    ref = _reference_forward_np(np.asarray(x), params)
    max_err = float(np.max(np.abs(np.asarray(out, np.float64) - ref)))
    assert max_err < 2e-2, max_err

    print("KERNEL_OK")
</pallas_src>

<mosaic_0001>
module attributes {stable_mosaic.version = 11 : i64} {
  func.func @_lenet_fused_kernel(%arg0: i32, %arg1: memref<4x16x3xf32, #tpu.memory_space<vmem>>, %arg2: memref<5x3x6xf32, #tpu.memory_space<vmem>>, %arg3: memref<5x3x6xf32, #tpu.memory_space<vmem>>, %arg4: memref<3x6x16xf32, #tpu.memory_space<vmem>>, %arg5: memref<3x6x16xf32, #tpu.memory_space<vmem>>, %arg6: memref<32x96xf32, #tpu.memory_space<vmem>>, %arg7: memref<12x30xf32, #tpu.memory_space<vmem>>, %arg8: memref<3x16x128xf32, #tpu.memory_space<vmem>>, %arg9: memref<1x128xf32, #tpu.memory_space<vmem>>, %arg10: memref<128x128xf32, #tpu.memory_space<vmem>>, %arg11: memref<1x128xf32, #tpu.memory_space<vmem>>, %arg12: memref<128x128xf32, #tpu.memory_space<vmem>>, %arg13: memref<1x128xf32, #tpu.memory_space<vmem>>, %arg14: memref<1x4x128xf32, #tpu.memory_space<vmem>>, %arg15: memref<104x3xf32, #tpu.memory_space<vmem>>) attributes {dimension_semantics = [#tpu.dimension_semantics<parallel>], iteration_bounds = array<i64: 1>, scalar_prefetch = 0 : i64, scratch_operands = 1 : i64, tpu.core_type = #tpu.core_type<tc>, window_params = [{transform_indices = @transform_0, window_bounds = array<i64: 4, 16, 3>}, {pipeline_mode = #tpu.pipeline_mode<synchronous>, transform_indices = @transform_1, window_bounds = array<i64: 5, 3, 6>}, {pipeline_mode = #tpu.pipeline_mode<synchronous>, transform_indices = @transform_2, window_bounds = array<i64: 5, 3, 6>}, {pipeline_mode = #tpu.pipeline_mode<synchronous>, transform_indices = @transform_3, window_bounds = array<i64: 3, 6, 16>}, {pipeline_mode = #tpu.pipeline_mode<synchronous>, transform_indices = @transform_4, window_bounds = array<i64: 3, 6, 16>}, {pipeline_mode = #tpu.pipeline_mode<synchronous>, transform_indices = @transform_5, window_bounds = array<i64: 32, 96>}, {pipeline_mode = #tpu.pipeline_mode<synchronous>, transform_indices = @transform_6, window_bounds = array<i64: 12, 30>}, {pipeline_mode = #tpu.pipeline_mode<synchronous>, transform_indices = @transform_7, window_bounds = array<i64: 3, 16, 128>}, {pipeline_mode = #tpu.pipeline_mode<synchronous>, transform_indices = @transform_8, window_bounds = array<i64: 1, 128>}, {pipeline_mode = #tpu.pipeline_mode<synchronous>, transform_indices = @transform_9, window_bounds = array<i64: 128, 128>}, {pipeline_mode = #tpu.pipeline_mode<synchronous>, transform_indices = @transform_10, window_bounds = array<i64: 1, 128>}, {pipeline_mode = #tpu.pipeline_mode<synchronous>, transform_indices = @transform_11, window_bounds = array<i64: 128, 128>}, {pipeline_mode = #tpu.pipeline_mode<synchronous>, transform_indices = @transform_12, window_bounds = array<i64: 1, 128>}, {transform_indices = @transform_13, window_bounds = array<i64: 1, 4, 128>}]} {
    %cst = arith.constant 0.000000e+00 : f32
    %0 = vector.broadcast %cst : f32 to vector<8x3xf32>
    %c0 = arith.constant 0 : index
    %c0_0 = arith.constant 0 : index
    %1 = vector.load %arg15[%c0, %c0_0] : memref<104x3xf32, #tpu.memory_space<vmem>>, vector<8x3xf32>
    tpu.vector_store %arg15[%c0, %c0_0], %0 {strides = array<i32>} : memref<104x3xf32, #tpu.memory_space<vmem>>, vector<8x3xf32>,
    %cst_1 = arith.constant 0.000000e+00 : f32
    %2 = vector.broadcast %cst_1 : f32 to vector<8x3xf32>
    %c24 = arith.constant 24 : index
    %c0_2 = arith.constant 0 : index
    %3 = vector.load %arg15[%c24, %c0_2] : memref<104x3xf32, #tpu.memory_space<vmem>>, vector<8x3xf32>
    tpu.vector_store %arg15[%c24, %c0_2], %2 {strides = array<i32>} : memref<104x3xf32, #tpu.memory_space<vmem>>, vector<8x3xf32>,
    %cst_3 = arith.constant 0.000000e+00 : f32
    %4 = vector.broadcast %cst_3 : f32 to vector<8x3xf32>
    %c48 = arith.constant 48 : index
    %c0_4 = arith.constant 0 : index
    %5 = vector.load %arg15[%c48, %c0_4] : memref<104x3xf32, #tpu.memory_space<vmem>>, vector<8x3xf32>
    tpu.vector_store %arg15[%c48, %c0_4], %4 {strides = array<i32>} : memref<104x3xf32, #tpu.memory_space<vmem>>, vector<8x3xf32>,
    %cst_5 = arith.constant 0.000000e+00 : f32
    %6 = vector.broadcast %cst_5 : f32 to vector<8x3xf32>
    %c72 = arith.constant 72 : index
    %c0_6 = arith.constant 0 : index
    %7 = vector.load %arg15[%c72, %c0_6] : memref<104x3xf32, #tpu.memory_space<vmem>>, vector<8x3xf32>
    tpu.vector_store %arg15[%c72, %c0_6], %6 {strides = array<i32>} : memref<104x3xf32, #tpu.memory_space<vmem>>, vector<8x3xf32>,
    %cst_7 = arith.constant 0.000000e+00 : f32
    %8 = vector.broadcast %cst_7 : f32 to vector<8x3xf32>
    %c96 = arith.constant 96 : index
    %c0_8 = arith.constant 0 : index
    %9 = vector.load %arg15[%c96, %c0_8] : memref<104x3xf32, #tpu.memory_space<vmem>>, vector<8x3xf32>
    tpu.vector_store %arg15[%c96, %c0_8], %8 {strides = array<i32>} : memref<104x3xf32, #tpu.memory_space<vmem>>, vector<8x3xf32>,
    %c0_9 = arith.constant 0 : index
    %c0_10 = arith.constant 0 : index
    %c0_11 = arith.constant 0 : index
    %10 = vector.load %arg1[%c0_9, %c0_10, %c0_11] : memref<4x16x3xf32, #tpu.memory_space<vmem>>, vector<1x16x3xf32>
    %11 = vector.shape_cast %10 : vector<1x16x3xf32> to vector<16x3xf32>
    %c8 = arith.constant 8 : index
    %c0_12 = arith.constant 0 : index
    %12 = vector.load %arg15[%c8, %c0_12] : memref<104x3xf32, #tpu.memory_space<vmem>>, vector<16x3xf32>
    tpu.vector_store %arg15[%c8, %c0_12], %11 {strides = array<i32>} : memref<104x3xf32, #tpu.memory_space<vmem>>, vector<16x3xf32>,
    %c1 = arith.constant 1 : index
    %c0_13 = arith.constant 0 : index
    %c0_14 = arith.constant 0 : index
    %13 = vector.load %arg1[%c1, %c0_13, %c0_14] : memref<4x16x3xf32, #tpu.memory_space<vmem>>, vector<1x16x3xf32>
    %14 = vector.shape_cast %13 : vector<1x16x3xf32> to vector<16x3xf32>
    %c32 = arith.constant 32 : index
    %c0_15 = arith.constant 0 : index
    %15 = vector.load %arg15[%c32, %c0_15] : memref<104x3xf32, #tpu.memory_space<vmem>>, vector<16x3xf32>
    tpu.vector_store %arg15[%c32, %c0_15], %14 {strides = array<i32>} : memref<104x3xf32, #tpu.memory_space<vmem>>, vector<16x3xf32>,
    %c2 = arith.constant 2 : index
    %c0_16 = arith.constant 0 : index
    %c0_17 = arith.constant 0 : index
    %16 = vector.load %arg1[%c2, %c0_16, %c0_17] : memref<4x16x3xf32, #tpu.memory_space<vmem>>, vector<1x16x3xf32>
    %17 = vector.shape_cast %16 : vector<1x16x3xf32> to vector<16x3xf32>
    %c56 = arith.constant 56 : index
    %c0_18 = arith.constant 0 : index
    %18 = vector.load %arg15[%c56, %c0_18] : memref<104x3xf32, #tpu.memory_space<vmem>>, vector<16x3xf32>
    tpu.vector_store %arg15[%c56, %c0_18], %17 {strides = array<i32>} : memref<104x3xf32, #tpu.memory_space<vmem>>, vector<16x3xf32>,
    %c3 = arith.constant 3 : index
    %c0_19 = arith.constant 0 : index
    %c0_20 = arith.constant 0 : index
    %19 = vector.load %arg1[%c3, %c0_19, %c0_20] : memref<4x16x3xf32, #tpu.memory_space<vmem>>, vector<1x16x3xf32>
    %20 = vector.shape_cast %19 : vector<1x16x3xf32> to vector<16x3xf32>
    %c80 = arith.constant 80 : index
    %c0_21 = arith.constant 0 : index
    %21 = vector.load %arg15[%c80, %c0_21] : memref<104x3xf32, #tpu.memory_space<vmem>>, vector<16x3xf32>
    tpu.vector_store %arg15[%c80, %c0_21], %20 {strides = array<i32>} : memref<104x3xf32, #tpu.memory_space<vmem>>, vector<16x3xf32>,
    %c0_22 = arith.constant 0 : index
    %c0_23 = arith.constant 0 : index
    %22 = vector.load %arg15[%c0_22, %c0_23] : memref<104x3xf32, #tpu.memory_space<vmem>>, vector<96x3xf32>
    %c1_24 = arith.constant 1 : index
    %c0_25 = arith.constant 0 : index
    %23 = vector.load %arg15[%c1_24, %c0_25] : memref<104x3xf32, #tpu.memory_space<vmem>>, vector<96x3xf32>
    %c2_26 = arith.constant 2 : index
    %c0_27 = arith.constant 0 : index
    %24 = vector.load %arg15[%c2_26, %c0_27] : memref<104x3xf32, #tpu.memory_space<vmem>>, vector<96x3xf32>
    %c3_28 = arith.constant 3 : index
    %c0_29 = arith.constant 0 : index
    %25 = vector.load %arg15[%c3_28, %c0_29] : memref<104x3xf32, #tpu.memory_space<vmem>>, vector<96x3xf32>
    %c4 = arith.constant 4 : index
    %c0_30 = arith.constant 0 : index
    %26 = vector.load %arg15[%c4, %c0_30] : memref<104x3xf32, #tpu.memory_space<vmem>>, vector<96x3xf32>
    %c0_31 = arith.constant 0 : index
    %c0_32 = arith.constant 0 : index
    %c0_33 = arith.constant 0 : index
    %27 = vector.load %arg2[%c0_31, %c0_32, %c0_33] : memref<5x3x6xf32, #tpu.memory_space<vmem>>, vector<5x3x6xf32>
    %c0_34 = arith.constant 0 : index
    %c0_35 = arith.constant 0 : index
    %c0_36 = arith.constant 0 : index
    %28 = vector.load %arg3[%c0_34, %c0_35, %c0_36] : memref<5x3x6xf32, #tpu.memory_space<vmem>>, vector<5x3x6xf32>
    %29 = vector.extract_strided_slice %22 {offsets = [0, 0], sizes = [96, 1], strides = [1, 1]} : vector<96x3xf32> to vector<96x1xf32>
    %30 = vector.extract_strided_slice %27 {offsets = [0, 0, 0], sizes = [1, 1, 6], strides = [1, 1, 1]} : vector<5x3x6xf32> to vector<1x1x6xf32>
    %31 = vector.shape_cast %30 : vector<1x1x6xf32> to vector<1x6xf32>
    %32 = vector.broadcast %29 : vector<96x1xf32> to vector<96x6xf32>
    %33 = vector.broadcast %31 : vector<1x6xf32> to vector<96x6xf32>
    %34 = arith.addf %32, %33 : vector<96x6xf32>
    %35 = vector.extract_strided_slice %28 {offsets = [0, 0, 0], sizes = [1, 1, 6], strides = [1, 1, 1]} : vector<5x3x6xf32> to vector<1x1x6xf32>
    %36 = vector.shape_cast %35 : vector<1x1x6xf32> to vector<1x6xf32>
    %37 = vector.broadcast %29 : vector<96x1xf32> to vector<96x6xf32>
    %38 = vector.broadcast %36 : vector<1x6xf32> to vector<96x6xf32>
    %39 = arith.addf %37, %38 : vector<96x6xf32>
    %40 = vector.extract_strided_slice %23 {offsets = [0, 0], sizes = [96, 1], strides = [1, 1]} : vector<96x3xf32> to vector<96x1xf32>
    %41 = vector.extract_strided_slice %27 {offsets = [1, 0, 0], sizes = [1, 1, 6], strides = [1, 1, 1]} : vector<5x3x6xf32> to vector<1x1x6xf32>
    %42 = vector.shape_cast %41 : vector<1x1x6xf32> to vector<1x6xf32>
    %43 = vector.broadcast %40 : vector<96x1xf32> to vector<96x6xf32>
    %44 = vector.broadcast %42 : vector<1x6xf32> to vector<96x6xf32>
    %45 = arith.addf %43, %44 : vector<96x6xf32>
    %46 = vector.extract_strided_slice %28 {offsets = [1, 0, 0], sizes = [1, 1, 6], strides = [1, 1, 1]} : vector<5x3x6xf32> to vector<1x1x6xf32>
    %47 = vector.shape_cast %46 : vector<1x1x6xf32> to vector<1x6xf32>
    %48 = vector.broadcast %40 : vector<96x1xf32> to vector<96x6xf32>
    %49 = vector.broadcast %47 : vector<1x6xf32> to vector<96x6xf32>
    %50 = arith.addf %48, %49 : vector<96x6xf32>
    %51 = arith.minimumf %34, %45 : vector<96x6xf32>
    %52 = arith.maximumf %39, %50 : vector<96x6xf32>
    %53 = vector.extract_strided_slice %24 {offsets = [0, 0], sizes = [96, 1], strides = [1, 1]} : vector<96x3xf32> to vector<96x1xf32>
    %54 = vector.extract_strided_slice %27 {offsets = [2, 0, 0], sizes = [1, 1, 6], strides = [1, 1, 1]} : vector<5x3x6xf32> to vector<1x1x6xf32>
    %55 = vector.shape_cast %54 : vector<1x1x6xf32> to vector<1x6xf32>
    %56 = vector.broadcast %53 : vector<96x1xf32> to vector<96x6xf32>
    %57 = vector.broadcast %55 : vector<1x6xf32> to vector<96x6xf32>
    %58 = arith.addf %56, %57 : vector<96x6xf32>
    %59 = vector.extract_strided_slice %28 {offsets = [2, 0, 0], sizes = [1, 1, 6], strides = [1, 1, 1]} : vector<5x3x6xf32> to vector<1x1x6xf32>
    %60 = vector.shape_cast %59 : vector<1x1x6xf32> to vector<1x6xf32>
    %61 = vector.broadcast %53 : vector<96x1xf32> to vector<96x6xf32>
    %62 = vector.broadcast %60 : vector<1x6xf32> to vector<96x6xf32>
    %63 = arith.addf %61, %62 : vector<96x6xf32>
    %64 = arith.minimumf %51, %58 : vector<96x6xf32>
    %65 = arith.maximumf %52, %63 : vector<96x6xf32>
    %66 = vector.extract_strided_slice %25 {offsets = [0, 0], sizes = [96, 1], strides = [1, 1]} : vector<96x3xf32> to vector<96x1xf32>
    %67 = vector.extract_strided_slice %27 {offsets = [3, 0, 0], sizes = [1, 1, 6], strides = [1, 1, 1]} : vector<5x3x6xf32> to vector<1x1x6xf32>
    %68 = vector.shape_cast %67 : vector<1x1x6xf32> to vector<1x6xf32>
    %69 = vector.broadcast %66 : vector<96x1xf32> to vector<96x6xf32>
    %70 = vector.broadcast %68 : vector<1x6xf32> to vector<96x6xf32>
    %71 = arith.addf %69, %70 : vector<96x6xf32>
    %72 = vector.extract_strided_slice %28 {offsets = [3, 0, 0], sizes = [1, 1, 6], strides = [1, 1, 1]} : vector<5x3x6xf32> to vector<1x1x6xf32>
    %73 = vector.shape_cast %72 : vector<1x1x6xf32> to vector<1x6xf32>
    %74 = vector.broadcast %66 : vector<96x1xf32> to vector<96x6xf32>
    %75 = vector.broadcast %73 : vector<1x6xf32> to vector<96x6xf32>
    %76 = arith.addf %74, %75 : vector<96x6xf32>
    %77 = arith.minimumf %64, %71 : vector<96x6xf32>
    %78 = arith.maximumf %65, %76 : vector<96x6xf32>
    %79 = vector.extract_strided_slice %26 {offsets = [0, 0], sizes = [96, 1], strides = [1, 1]} : vector<96x3xf32> to vector<96x1xf32>
    %80 = vector.extract_strided_slice %27 {offsets = [4, 0, 0], sizes = [1, 1, 6], strides = [1, 1, 1]} : vector<5x3x6xf32> to vector<1x1x6xf32>
    %81 = vector.shape_cast %80 : vector<1x1x6xf32> to vector<1x6xf32>
    %82 = vector.broadcast %79 : vector<96x1xf32> to vector<96x6xf32>
    %83 = vector.broadcast %81 : vector<1x6xf32> to vector<96x6xf32>
    %84 = arith.addf %82, %83 : vector<96x6xf32>
    %85 = vector.extract_strided_slice %28 {offsets = [4, 0, 0], sizes = [1, 1, 6], strides = [1, 1, 1]} : vector<5x3x6xf32> to vector<1x1x6xf32>
    %86 = vector.shape_cast %85 : vector<1x1x6xf32> to vector<1x6xf32>
    %87 = vector.broadcast %79 : vector<96x1xf32> to vector<96x6xf32>
    %88 = vector.broadcast %86 : vector<1x6xf32> to vector<96x6xf32>
    %89 = arith.addf %87, %88 : vector<96x6xf32>
    %90 = arith.minimumf %77, %84 : vector<96x6xf32>
    %91 = arith.maximumf %78, %89 : vector<96x6xf32>
    %92 = arith.addf %90, %91 : vector<96x6xf32>
    %93 = vector.extract_strided_slice %22 {offsets = [0, 1], sizes = [96, 1], strides = [1, 1]} : vector<96x3xf32> to vector<96x1xf32>
    %94 = vector.extract_strided_slice %27 {offsets = [0, 1, 0], sizes = [1, 1, 6], strides = [1, 1, 1]} : vector<5x3x6xf32> to vector<1x1x6xf32>
    %95 = vector.shape_cast %94 : vector<1x1x6xf32> to vector<1x6xf32>
    %96 = vector.broadcast %93 : vector<96x1xf32> to vector<96x6xf32>
    %97 = vector.broadcast %95 : vector<1x6xf32> to vector<96x6xf32>
    %98 = arith.addf %96, %97 : vector<96x6xf32>
    %99 = vector.extract_strided_slice %28 {offsets = [0, 1, 0], sizes = [1, 1, 6], strides = [1, 1, 1]} : vector<5x3x6xf32> to vector<1x1x6xf32>
    %100 = vector.shape_cast %99 : vector<1x1x6xf32> to vector<1x6xf32>
    %101 = vector.broadcast %93 : vector<96x1xf32> to vector<96x6xf32>
    %102 = vector.broadcast %100 : vector<1x6xf32> to vector<96x6xf32>
    %103 = arith.addf %101, %102 : vector<96x6xf32>
    %104 = vector.extract_strided_slice %23 {offsets = [0, 1], sizes = [96, 1], strides = [1, 1]} : vector<96x3xf32> to vector<96x1xf32>
    %105 = vector.extract_strided_slice %27 {offsets = [1, 1, 0], sizes = [1, 1, 6], strides = [1, 1, 1]} : vector<5x3x6xf32> to vector<1x1x6xf32>
    %106 = vector.shape_cast %105 : vector<1x1x6xf32> to vector<1x6xf32>
    %107 = vector.broadcast %104 : vector<96x1xf32> to vector<96x6xf32>
    %108 = vector.broadcast %106 : vector<1x6xf32> to vector<96x6xf32>
    %109 = arith.addf %107, %108 : vector<96x6xf32>
    %110 = vector.extract_strided_slice %28 {offsets = [1, 1, 0], sizes = [1, 1, 6], strides = [1, 1, 1]} : vector<5x3x6xf32> to vector<1x1x6xf32>
    %111 = vector.shape_cast %110 : vector<1x1x6xf32> to vector<1x6xf32>
    %112 = vector.broadcast %104 : vector<96x1xf32> to vector<96x6xf32>
    %113 = vector.broadcast %111 : vector<1x6xf32> to vector<96x6xf32>
    %114 = arith.addf %112, %113 : vector<96x6xf32>
    %115 = arith.minimumf %98, %109 : vector<96x6xf32>
    %116 = arith.maximumf %103, %114 : vector<96x6xf32>
    %117 = vector.extract_strided_slice %24 {offsets = [0, 1], sizes = [96, 1], strides = [1, 1]} : vector<96x3xf32> to vector<96x1xf32>
    %118 = vector.extract_strided_slice %27 {offsets = [2, 1, 0], sizes = [1, 1, 6], strides = [1, 1, 1]} : vector<5x3x6xf32> to vector<1x1x6xf32>
    %119 = vector.shape_cast %118 : vector<1x1x6xf32> to vector<1x6xf32>
    %120 = vector.broadcast %117 : vector<96x1xf32> to vector<96x6xf32>
    %121 = vector.broadcast %119 : vector<1x6xf32> to vector<96x6xf32>
    %122 = arith.addf %120, %121 : vector<96x6xf32>
    %123 = vector.extract_strided_slice %28 {offsets = [2, 1, 0], sizes = [1, 1, 6], strides = [1, 1, 1]} : vector<5x3x6xf32> to vector<1x1x6xf32>
    %124 = vector.shape_cast %123 : vector<1x1x6xf32> to vector<1x6xf32>
    %125 = vector.broadcast %117 : vector<96x1xf32> to vector<96x6xf32>
    %126 = vector.broadcast %124 : vector<1x6xf32> to vector<96x6xf32>
    %127 = arith.addf %125, %126 : vector<96x6xf32>
    %128 = arith.minimumf %115, %122 : vector<96x6xf32>
    %129 = arith.maximumf %116, %127 : vector<96x6xf32>
    %130 = vector.extract_strided_slice %25 {offsets = [0, 1], sizes = [96, 1], strides = [1, 1]} : vector<96x3xf32> to vector<96x1xf32>
    %131 = vector.extract_strided_slice %27 {offsets = [3, 1, 0], sizes = [1, 1, 6], strides = [1, 1, 1]} : vector<5x3x6xf32> to vector<1x1x6xf32>
    %132 = vector.shape_cast %131 : vector<1x1x6xf32> to vector<1x6xf32>
    %133 = vector.broadcast %130 : vector<96x1xf32> to vector<96x6xf32>
    %134 = vector.broadcast %132 : vector<1x6xf32> to vector<96x6xf32>
    %135 = arith.addf %133, %134 : vector<96x6xf32>
    %136 = vector.extract_strided_slice %28 {offsets = [3, 1, 0], sizes = [1, 1, 6], strides = [1, 1, 1]} : vector<5x3x6xf32> to vector<1x1x6xf32>
    %137 = vector.shape_cast %136 : vector<1x1x6xf32> to vector<1x6xf32>
    %138 = vector.broadcast %130 : vector<96x1xf32> to vector<96x6xf32>
    %139 = vector.broadcast %137 : vector<1x6xf32> to vector<96x6xf32>
    %140 = arith.addf %138, %139 : vector<96x6xf32>
    %141 = arith.minimumf %128, %135 : vector<96x6xf32>
    %142 = arith.maximumf %129, %140 : vector<96x6xf32>
    %143 = vector.extract_strided_slice %26 {offsets = [0, 1], sizes = [96, 1], strides = [1, 1]} : vector<96x3xf32> to vector<96x1xf32>
    %144 = vector.extract_strided_slice %27 {offsets = [4, 1, 0], sizes = [1, 1, 6], strides = [1, 1, 1]} : vector<5x3x6xf32> to vector<1x1x6xf32>
    %145 = vector.shape_cast %144 : vector<1x1x6xf32> to vector<1x6xf32>
    %146 = vector.broadcast %143 : vector<96x1xf32> to vector<96x6xf32>
    %147 = vector.broadcast %145 : vector<1x6xf32> to vector<96x6xf32>
    %148 = arith.addf %146, %147 : vector<96x6xf32>
    %149 = vector.extract_strided_slice %28 {offsets = [4, 1, 0], sizes = [1, 1, 6], strides = [1, 1, 1]} : vector<5x3x6xf32> to vector<1x1x6xf32>
    %150 = vector.shape_cast %149 : vector<1x1x6xf32> to vector<1x6xf32>
    %151 = vector.broadcast %143 : vector<96x1xf32> to vector<96x6xf32>
    %152 = vector.broadcast %150 : vector<1x6xf32> to vector<96x6xf32>
    %153 = arith.addf %151, %152 : vector<96x6xf32>
    %154 = arith.minimumf %141, %148 : vector<96x6xf32>
    %155 = arith.maximumf %142, %153 : vector<96x6xf32>
    %156 = arith.addf %154, %155 : vector<96x6xf32>
    %157 = arith.addf %92, %156 : vector<96x6xf32>
    %158 = vector.extract_strided_slice %22 {offsets = [0, 2], sizes = [96, 1], strides = [1, 1]} : vector<96x3xf32> to vector<96x1xf32>
    %159 = vector.extract_strided_slice %27 {offsets = [0, 2, 0], sizes = [1, 1, 6], strides = [1, 1, 1]} : vector<5x3x6xf32> to vector<1x1x6xf32>
    %160 = vector.shape_cast %159 : vector<1x1x6xf32> to vector<1x6xf32>
    %161 = vector.broadcast %158 : vector<96x1xf32> to vector<96x6xf32>
    %162 = vector.broadcast %160 : vector<1x6xf32> to vector<96x6xf32>
    %163 = arith.addf %161, %162 : vector<96x6xf32>
    %164 = vector.extract_strided_slice %28 {offsets = [0, 2, 0], sizes = [1, 1, 6], strides = [1, 1, 1]} : vector<5x3x6xf32> to vector<1x1x6xf32>
    %165 = vector.shape_cast %164 : vector<1x1x6xf32> to vector<1x6xf32>
    %166 = vector.broadcast %158 : vector<96x1xf32> to vector<96x6xf32>
    %167 = vector.broadcast %165 : vector<1x6xf32> to vector<96x6xf32>
    %168 = arith.addf %166, %167 : vector<96x6xf32>
    %169 = vector.extract_strided_slice %23 {offsets = [0, 2], sizes = [96, 1], strides = [1, 1]} : vector<96x3xf32> to vector<96x1xf32>
    %170 = vector.extract_strided_slice %27 {offsets = [1, 2, 0], sizes = [1, 1, 6], strides = [1, 1, 1]} : vector<5x3x6xf32> to vector<1x1x6xf32>
    %171 = vector.shape_cast %170 : vector<1x1x6xf32> to vector<1x6xf32>
    %172 = vector.broadcast %169 : vector<96x1xf32> to vector<96x6xf32>
    %173 = vector.broadcast %171 : vector<1x6xf32> to vector<96x6xf32>
    %174 = arith.addf %172, %173 : vector<96x6xf32>
    %175 = vector.extract_strided_slice %28 {offsets = [1, 2, 0], sizes = [1, 1, 6], strides = [1, 1, 1]} : vector<5x3x6xf32> to vector<1x1x6xf32>
    %176 = vector.shape_cast %175 : vector<1x1x6xf32> to vector<1x6xf32>
    %177 = vector.broadcast %169 : vector<96x1xf32> to vector<96x6xf32>
    %178 = vector.broadcast %176 : vector<1x6xf32> to vector<96x6xf32>
    %179 = arith.addf %177, %178 : vector<96x6xf32>
    %180 = arith.minimumf %163, %174 : vector<96x6xf32>
    %181 = arith.maximumf %168, %179 : vector<96x6xf32>
    %182 = vector.extract_strided_slice %24 {offsets = [0, 2], sizes = [96, 1], strides = [1, 1]} : vector<96x3xf32> to vector<96x1xf32>
    %183 = vector.extract_strided_slice %27 {offsets = [2, 2, 0], sizes = [1, 1, 6], strides = [1, 1, 1]} : vector<5x3x6xf32> to vector<1x1x6xf32>
    %184 = vector.shape_cast %183 : vector<1x1x6xf32> to vector<1x6xf32>
    %185 = vector.broadcast %182 : vector<96x1xf32> to vector<96x6xf32>
    %186 = vector.broadcast %184 : vector<1x6xf32> to vector<96x6xf32>
    %187 = arith.addf %185, %186 : vector<96x6xf32>
    %188 = vector.extract_strided_slice %28 {offsets = [2, 2, 0], sizes = [1, 1, 6], strides = [1, 1, 1]} : vector<5x3x6xf32> to vector<1x1x6xf32>
    %189 = vector.shape_cast %188 : vector<1x1x6xf32> to vector<1x6xf32>
    %190 = vector.broadcast %182 : vector<96x1xf32> to vector<96x6xf32>
    %191 = vector.broadcast %189 : vector<1x6xf32> to vector<96x6xf32>
    %192 = arith.addf %190, %191 : vector<96x6xf32>
    %193 = arith.minimumf %180, %187 : vector<96x6xf32>
    %194 = arith.maximumf %181, %192 : vector<96x6xf32>
    %195 = vector.extract_strided_slice %25 {offsets = [0, 2], sizes = [96, 1], strides = [1, 1]} : vector<96x3xf32> to vector<96x1xf32>
    %196 = vector.extract_strided_slice %27 {offsets = [3, 2, 0], sizes = [1, 1, 6], strides = [1, 1, 1]} : vector<5x3x6xf32> to vector<1x1x6xf32>
    %197 = vector.shape_cast %196 : vector<1x1x6xf32> to vector<1x6xf32>
    %198 = vector.broadcast %195 : vector<96x1xf32> to vector<96x6xf32>
    %199 = vector.broadcast %197 : vector<1x6xf32> to vector<96x6xf32>
    %200 = arith.addf %198, %199 : vector<96x6xf32>
    %201 = vector.extract_strided_slice %28 {offsets = [3, 2, 0], sizes = [1, 1, 6], strides = [1, 1, 1]} : vector<5x3x6xf32> to vector<1x1x6xf32>
    %202 = vector.shape_cast %201 : vector<1x1x6xf32> to vector<1x6xf32>
    %203 = vector.broadcast %195 : vector<96x1xf32> to vector<96x6xf32>
    %204 = vector.broadcast %202 : vector<1x6xf32> to vector<96x6xf32>
    %205 = arith.addf %203, %204 : vector<96x6xf32>
    %206 = arith.minimumf %193, %200 : vector<96x6xf32>
    %207 = arith.maximumf %194, %205 : vector<96x6xf32>
    %208 = vector.extract_strided_slice %26 {offsets = [0, 2], sizes = [96, 1], strides = [1, 1]} : vector<96x3xf32> to vector<96x1xf32>
    %209 = vector.extract_strided_slice %27 {offsets = [4, 2, 0], sizes = [1, 1, 6], strides = [1, 1, 1]} : vector<5x3x6xf32> to vector<1x1x6xf32>
    %210 = vector.shape_cast %209 : vector<1x1x6xf32> to vector<1x6xf32>
    %211 = vector.broadcast %208 : vector<96x1xf32> to vector<96x6xf32>
    %212 = vector.broadcast %210 : vector<1x6xf32> to vector<96x6xf32>
    %213 = arith.addf %211, %212 : vector<96x6xf32>
    %214 = vector.extract_strided_slice %28 {offsets = [4, 2, 0], sizes = [1, 1, 6], strides = [1, 1, 1]} : vector<5x3x6xf32> to vector<1x1x6xf32>
    %215 = vector.shape_cast %214 : vector<1x1x6xf32> to vector<1x6xf32>
    %216 = vector.broadcast %208 : vector<96x1xf32> to vector<96x6xf32>
    %217 = vector.broadcast %215 : vector<1x6xf32> to vector<96x6xf32>
    %218 = arith.addf %216, %217 : vector<96x6xf32>
    %219 = arith.minimumf %206, %213 : vector<96x6xf32>
    %220 = arith.maximumf %207, %218 : vector<96x6xf32>
    %221 = arith.addf %219, %220 : vector<96x6xf32>
    %222 = arith.addf %157, %221 : vector<96x6xf32>
    %cst_37 = arith.constant 5.000000e-01 : f32
    %223 = vector.broadcast %cst_37 : f32 to vector<96x6xf32>
    %224 = arith.mulf %223, %222 : vector<96x6xf32>
    %c0_38 = arith.constant 0 : index
    %c0_39 = arith.constant 0 : index
    %225 = vector.load %arg6[%c0_38, %c0_39] : memref<32x96xf32, #tpu.memory_space<vmem>>, vector<32x96xf32>
    %cst_40 = arith.constant dense<0.000000e+00> : vector<32x6xf32>
    %226 = tpu.matmul %225, %224, %cst_40 {dimension_numbers = #tpu.dot_dimension_numbers<[1], [0], [0], [1], [0, 0, 1, 1], [], []>} : vector<32x96xf32>, vector<96x6xf32>, vector<32x6xf32> -> vector<32x6xf32>
    %227 = vector.extract_strided_slice %226 {offsets = [0, 0], sizes = [30, 6], strides = [1, 1]} : vector<32x6xf32> to vector<30x6xf32>
    %228 = vector.extract_strided_slice %226 {offsets = [1, 0], sizes = [30, 6], strides = [1, 1]} : vector<32x6xf32> to vector<30x6xf32>
    %229 = vector.extract_strided_slice %226 {offsets = [2, 0], sizes = [30, 6], strides = [1, 1]} : vector<32x6xf32> to vector<30x6xf32>
    %c0_41 = arith.constant 0 : index
    %c0_42 = arith.constant 0 : index
    %c0_43 = arith.constant 0 : index
    %230 = vector.load %arg4[%c0_41, %c0_42, %c0_43] : memref<3x6x16xf32, #tpu.memory_space<vmem>>, vector<3x6x16xf32>
    %c0_44 = arith.constant 0 : index
    %c0_45 = arith.constant 0 : index
    %c0_46 = arith.constant 0 : index
    %231 = vector.load %arg5[%c0_44, %c0_45, %c0_46] : memref<3x6x16xf32, #tpu.memory_space<vmem>>, vector<3x6x16xf32>
    %232 = vector.extract_strided_slice %227 {offsets = [0, 0], sizes = [30, 1], strides = [1, 1]} : vector<30x6xf32> to vector<30x1xf32>
    %233 = vector.extract_strided_slice %230 {offsets = [0, 0, 0], sizes = [1, 1, 16], strides = [1, 1, 1]} : vector<3x6x16xf32> to vector<1x1x16xf32>
    %234 = vector.shape_cast %233 : vector<1x1x16xf32> to vector<1x16xf32>
    %235 = vector.broadcast %232 : vector<30x1xf32> to vector<30x16xf32>
    %236 = vector.broadcast %234 : vector<1x16xf32> to vector<30x16xf32>
    %237 = arith.addf %235, %236 : vector<30x16xf32>
    %238 = vector.extract_strided_slice %231 {offsets = [0, 0, 0], sizes = [1, 1, 16], strides = [1, 1, 1]} : vector<3x6x16xf32> to vector<1x1x16xf32>
    %239 = vector.shape_cast %238 : vector<1x1x16xf32> to vector<1x16xf32>
    %240 = vector.broadcast %232 : vector<30x1xf32> to vector<30x16xf32>
    %241 = vector.broadcast %239 : vector<1x16xf32> to vector<30x16xf32>
    %242 = arith.addf %240, %241 : vector<30x16xf32>
    %243 = vector.extract_strided_slice %228 {offsets = [0, 0], sizes = [30, 1], strides = [1, 1]} : vector<30x6xf32> to vector<30x1xf32>
    %244 = vector.extract_strided_slice %230 {offsets = [1, 0, 0], sizes = [1, 1, 16], strides = [1, 1, 1]} : vector<3x6x16xf32> to vector<1x1x16xf32>
    %245 = vector.shape_cast %244 : vector<1x1x16xf32> to vector<1x16xf32>
    %246 = vector.broadcast %243 : vector<30x1xf32> to vector<30x16xf32>
    %247 = vector.broadcast %245 : vector<1x16xf32> to vector<30x16xf32>
    %248 = arith.addf %246, %247 : vector<30x16xf32>
    %249 = vector.extract_strided_slice %231 {offsets = [1, 0, 0], sizes = [1, 1, 16], strides = [1, 1, 1]} : vector<3x6x16xf32> to vector<1x1x16xf32>
    %250 = vector.shape_cast %249 : vector<1x1x16xf32> to vector<1x16xf32>
    %251 = vector.broadcast %243 : vector<30x1xf32> to vector<30x16xf32>
    %252 = vector.broadcast %250 : vector<1x16xf32> to vector<30x16xf32>
    %253 = arith.addf %251, %252 : vector<30x16xf32>
    %254 = arith.minimumf %237, %248 : vector<30x16xf32>
    %255 = arith.maximumf %242, %253 : vector<30x16xf32>
    %256 = vector.extract_strided_slice %229 {offsets = [0, 0], sizes = [30, 1], strides = [1, 1]} : vector<30x6xf32> to vector<30x1xf32>
    %257 = vector.extract_strided_slice %230 {offsets = [2, 0, 0], sizes = [1, 1, 16], strides = [1, 1, 1]} : vector<3x6x16xf32> to vector<1x1x16xf32>
    %258 = vector.shape_cast %257 : vector<1x1x16xf32> to vector<1x16xf32>
    %259 = vector.broadcast %256 : vector<30x1xf32> to vector<30x16xf32>
    %260 = vector.broadcast %258 : vector<1x16xf32> to vector<30x16xf32>
    %261 = arith.addf %259, %260 : vector<30x16xf32>
    %262 = vector.extract_strided_slice %231 {offsets = [2, 0, 0], sizes = [1, 1, 16], strides = [1, 1, 1]} : vector<3x6x16xf32> to vector<1x1x16xf32>
    %263 = vector.shape_cast %262 : vector<1x1x16xf32> to vector<1x16xf32>
    %264 = vector.broadcast %256 : vector<30x1xf32> to vector<30x16xf32>
    %265 = vector.broadcast %263 : vector<1x16xf32> to vector<30x16xf32>
    %266 = arith.addf %264, %265 : vector<30x16xf32>
    %267 = arith.minimumf %254, %261 : vector<30x16xf32>
    %268 = arith.maximumf %255, %266 : vector<30x16xf32>
    %269 = arith.addf %267, %268 : vector<30x16xf32>
    %270 = vector.extract_strided_slice %227 {offsets = [0, 1], sizes = [30, 1], strides = [1, 1]} : vector<30x6xf32> to vector<30x1xf32>
    %271 = vector.extract_strided_slice %230 {offsets = [0, 1, 0], sizes = [1, 1, 16], strides = [1, 1, 1]} : vector<3x6x16xf32> to vector<1x1x16xf32>
    %272 = vector.shape_cast %271 : vector<1x1x16xf32> to vector<1x16xf32>
    %273 = vector.broadcast %270 : vector<30x1xf32> to vector<30x16xf32>
    %274 = vector.broadcast %272 : vector<1x16xf32> to vector<30x16xf32>
    %275 = arith.addf %273, %274 : vector<30x16xf32>
    %276 = vector.extract_strided_slice %231 {offsets = [0, 1, 0], sizes = [1, 1, 16], strides = [1, 1, 1]} : vector<3x6x16xf32> to vector<1x1x16xf32>
    %277 = vector.shape_cast %276 : vector<1x1x16xf32> to vector<1x16xf32>
    %278 = vector.broadcast %270 : vector<30x1xf32> to vector<30x16xf32>
    %279 = vector.broadcast %277 : vector<1x16xf32> to vector<30x16xf32>
    %280 = arith.addf %278, %279 : vector<30x16xf32>
    %281 = vector.extract_strided_slice %228 {offsets = [0, 1], sizes = [30, 1], strides = [1, 1]} : vector<30x6xf32> to vector<30x1xf32>
    %282 = vector.extract_strided_slice %230 {offsets = [1, 1, 0], sizes = [1, 1, 16], strides = [1, 1, 1]} : vector<3x6x16xf32> to vector<1x1x16xf32>
    %283 = vector.shape_cast %282 : vector<1x1x16xf32> to vector<1x16xf32>
    %284 = vector.broadcast %281 : vector<30x1xf32> to vector<30x16xf32>
    %285 = vector.broadcast %283 : vector<1x16xf32> to vector<30x16xf32>
    %286 = arith.addf %284, %285 : vector<30x16xf32>
    %287 = vector.extract_strided_slice %231 {offsets = [1, 1, 0], sizes = [1, 1, 16], strides = [1, 1, 1]} : vector<3x6x16xf32> to vector<1x1x16xf32>
    %288 = vector.shape_cast %287 : vector<1x1x16xf32> to vector<1x16xf32>
    %289 = vector.broadcast %281 : vector<30x1xf32> to vector<30x16xf32>
    %290 = vector.broadcast %288 : vector<1x16xf32> to vector<30x16xf32>
    %291 = arith.addf %289, %290 : vector<30x16xf32>
    %292 = arith.minimumf %275, %286 : vector<30x16xf32>
    %293 = arith.maximumf %280, %291 : vector<30x16xf32>
    %294 = vector.extract_strided_slice %229 {offsets = [0, 1], sizes = [30, 1], strides = [1, 1]} : vector<30x6xf32> to vector<30x1xf32>
    %295 = vector.extract_strided_slice %230 {offsets = [2, 1, 0], sizes = [1, 1, 16], strides = [1, 1, 1]} : vector<3x6x16xf32> to vector<1x1x16xf32>
    %296 = vector.shape_cast %295 : vector<1x1x16xf32> to vector<1x16xf32>
    %297 = vector.broadcast %294 : vector<30x1xf32> to vector<30x16xf32>
    %298 = vector.broadcast %296 : vector<1x16xf32> to vector<30x16xf32>
    %299 = arith.addf %297, %298 : vector<30x16xf32>
    %300 = vector.extract_strided_slice %231 {offsets = [2, 1, 0], sizes = [1, 1, 16], strides = [1, 1, 1]} : vector<3x6x16xf32> to vector<1x1x16xf32>
    %301 = vector.shape_cast %300 : vector<1x1x16xf32> to vector<1x16xf32>
    %302 = vector.broadcast %294 : vector<30x1xf32> to vector<30x16xf32>
    %303 = vector.broadcast %301 : vector<1x16xf32> to vector<30x16xf32>
    %304 = arith.addf %302, %303 : vector<30x16xf32>
    %305 = arith.minimumf %292, %299 : vector<30x16xf32>
    %306 = arith.maximumf %293, %304 : vector<30x16xf32>
    %307 = arith.addf %305, %306 : vector<30x16xf32>
    %308 = arith.addf %269, %307 : vector<30x16xf32>
    %309 = vector.extract_strided_slice %227 {offsets = [0, 2], sizes = [30, 1], strides = [1, 1]} : vector<30x6xf32> to vector<30x1xf32>
    %310 = vector.extract_strided_slice %230 {offsets = [0, 2, 0], sizes = [1, 1, 16], strides = [1, 1, 1]} : vector<3x6x16xf32> to vector<1x1x16xf32>
    %311 = vector.shape_cast %310 : vector<1x1x16xf32> to vector<1x16xf32>
    %312 = vector.broadcast %309 : vector<30x1xf32> to vector<30x16xf32>
    %313 = vector.broadcast %311 : vector<1x16xf32> to vector<30x16xf32>
    %314 = arith.addf %312, %313 : vector<30x16xf32>
    %315 = vector.extract_strided_slice %231 {offsets = [0, 2, 0], sizes = [1, 1, 16], strides = [1, 1, 1]} : vector<3x6x16xf32> to vector<1x1x16xf32>
    %316 = vector.shape_cast %315 : vector<1x1x16xf32> to vector<1x16xf32>
    %317 = vector.broadcast %309 : vector<30x1xf32> to vector<30x16xf32>
    %318 = vector.broadcast %316 : vector<1x16xf32> to vector<30x16xf32>
    %319 = arith.addf %317, %318 : vector<30x16xf32>
    %320 = vector.extract_strided_slice %228 {offsets = [0, 2], sizes = [30, 1], strides = [1, 1]} : vector<30x6xf32> to vector<30x1xf32>
    %321 = vector.extract_strided_slice %230 {offsets = [1, 2, 0], sizes = [1, 1, 16], strides = [1, 1, 1]} : vector<3x6x16xf32> to vector<1x1x16xf32>
    %322 = vector.shape_cast %321 : vector<1x1x16xf32> to vector<1x16xf32>
    %323 = vector.broadcast %320 : vector<30x1xf32> to vector<30x16xf32>
    %324 = vector.broadcast %322 : vector<1x16xf32> to vector<30x16xf32>
    %325 = arith.addf %323, %324 : vector<30x16xf32>
    %326 = vector.extract_strided_slice %231 {offsets = [1, 2, 0], sizes = [1, 1, 16], strides = [1, 1, 1]} : vector<3x6x16xf32> to vector<1x1x16xf32>
    %327 = vector.shape_cast %326 : vector<1x1x16xf32> to vector<1x16xf32>
    %328 = vector.broadcast %320 : vector<30x1xf32> to vector<30x16xf32>
    %329 = vector.broadcast %327 : vector<1x16xf32> to vector<30x16xf32>
    %330 = arith.addf %328, %329 : vector<30x16xf32>
    %331 = arith.minimumf %314, %325 : vector<30x16xf32>
    %332 = arith.maximumf %319, %330 : vector<30x16xf32>
    %333 = vector.extract_strided_slice %229 {offsets = [0, 2], sizes = [30, 1], strides = [1, 1]} : vector<30x6xf32> to vector<30x1xf32>
    %334 = vector.extract_strided_slice %230 {offsets = [2, 2, 0], sizes = [1, 1, 16], strides = [1, 1, 1]} : vector<3x6x16xf32> to vector<1x1x16xf32>
    %335 = vector.shape_cast %334 : vector<1x1x16xf32> to vector<1x16xf32>
    %336 = vector.broadcast %333 : vector<30x1xf32> to vector<30x16xf32>
    %337 = vector.broadcast %335 : vector<1x16xf32> to vector<30x16xf32>
    %338 = arith.addf %336, %337 : vector<30x16xf32>
    %339 = vector.extract_strided_slice %231 {offsets = [2, 2, 0], sizes = [1, 1, 16], strides = [1, 1, 1]} : vector<3x6x16xf32> to vector<1x1x16xf32>
    %340 = vector.shape_cast %339 : vector<1x1x16xf32> to vector<1x16xf32>
    %341 = vector.broadcast %333 : vector<30x1xf32> to vector<30x16xf32>
    %342 = vector.broadcast %340 : vector<1x16xf32> to vector<30x16xf32>
    %343 = arith.addf %341, %342 : vector<30x16xf32>
    %344 = arith.minimumf %331, %338 : vector<30x16xf32>
    %345 = arith.maximumf %332, %343 : vector<30x16xf32>
    %346 = arith.addf %344, %345 : vector<30x16xf32>
    %347 = arith.addf %308, %346 : vector<30x16xf32>
    %348 = vector.extract_strided_slice %227 {offsets = [0, 3], sizes = [30, 1], strides = [1, 1]} : vector<30x6xf32> to vector<30x1xf32>
    %349 = vector.extract_strided_slice %230 {offsets = [0, 3, 0], sizes = [1, 1, 16], strides = [1, 1, 1]} : vector<3x6x16xf32> to vector<1x1x16xf32>
    %350 = vector.shape_cast %349 : vector<1x1x16xf32> to vector<1x16xf32>
    %351 = vector.broadcast %348 : vector<30x1xf32> to vector<30x16xf32>
    %352 = vector.broadcast %350 : vector<1x16xf32> to vector<30x16xf32>
    %353 = arith.addf %351, %352 : vector<30x16xf32>
    %354 = vector.extract_strided_slice %231 {offsets = [0, 3, 0], sizes = [1, 1, 16], strides = [1, 1, 1]} : vector<3x6x16xf32> to vector<1x1x16xf32>
    %355 = vector.shape_cast %354 : vector<1x1x16xf32> to vector<1x16xf32>
    %356 = vector.broadcast %348 : vector<30x1xf32> to vector<30x16xf32>
    %357 = vector.broadcast %355 : vector<1x16xf32> to vector<30x16xf32>
    %358 = arith.addf %356, %357 : vector<30x16xf32>
    %359 = vector.extract_strided_slice %228 {offsets = [0, 3], sizes = [30, 1], strides = [1, 1]} : vector<30x6xf32> to vector<30x1xf32>
    %360 = vector.extract_strided_slice %230 {offsets = [1, 3, 0], sizes = [1, 1, 16], strides = [1, 1, 1]} : vector<3x6x16xf32> to vector<1x1x16xf32>
    %361 = vector.shape_cast %360 : vector<1x1x16xf32> to vector<1x16xf32>
    %362 = vector.broadcast %359 : vector<30x1xf32> to vector<30x16xf32>
    %363 = vector.broadcast %361 : vector<1x16xf32> to vector<30x16xf32>
    %364 = arith.addf %362, %363 : vector<30x16xf32>
    %365 = vector.extract_strided_slice %231 {offsets = [1, 3, 0], sizes = [1, 1, 16], strides = [1, 1, 1]} : vector<3x6x16xf32> to vector<1x1x16xf32>
    %366 = vector.shape_cast %365 : vector<1x1x16xf32> to vector<1x16xf32>
    %367 = vector.broadcast %359 : vector<30x1xf32> to vector<30x16xf32>
    %368 = vector.broadcast %366 : vector<1x16xf32> to vector<30x16xf32>
    %369 = arith.addf %367, %368 : vector<30x16xf32>
    %370 = arith.minimumf %353, %364 : vector<30x16xf32>
    %371 = arith.maximumf %358, %369 : vector<30x16xf32>
    %372 = vector.extract_strided_slice %229 {offsets = [0, 3], sizes = [30, 1], strides = [1, 1]} : vector<30x6xf32> to vector<30x1xf32>
    %373 = vector.extract_strided_slice %230 {offsets = [2, 3, 0], sizes = [1, 1, 16], strides = [1, 1, 1]} : vector<3x6x16xf32> to vector<1x1x16xf32>
    %374 = vector.shape_cast %373 : vector<1x1x16xf32> to vector<1x16xf32>
    %375 = vector.broadcast %372 : vector<30x1xf32> to vector<30x16xf32>
    %376 = vector.broadcast %374 : vector<1x16xf32> to vector<30x16xf32>
    %377 = arith.addf %375, %376 : vector<30x16xf32>
    %378 = vector.extract_strided_slice %231 {offsets = [2, 3, 0], sizes = [1, 1, 16], strides = [1, 1, 1]} : vector<3x6x16xf32> to vector<1x1x16xf32>
    %379 = vector.shape_cast %378 : vector<1x1x16xf32> to vector<1x16xf32>
    %380 = vector.broadcast %372 : vector<30x1xf32> to vector<30x16xf32>
    %381 = vector.broadcast %379 : vector<1x16xf32> to vector<30x16xf32>
    %382 = arith.addf %380, %381 : vector<30x16xf32>
    %383 = arith.minimumf %370, %377 : vector<30x16xf32>
    %384 = arith.maximumf %371, %382 : vector<30x16xf32>
    %385 = arith.addf %383, %384 : vector<30x16xf32>
    %386 = arith.addf %347, %385 : vector<30x16xf32>
    %387 = vector.extract_strided_slice %227 {offsets = [0, 4], sizes = [30, 1], strides = [1, 1]} : vector<30x6xf32> to vector<30x1xf32>
    %388 = vector.extract_strided_slice %230 {offsets = [0, 4, 0], sizes = [1, 1, 16], strides = [1, 1, 1]} : vector<3x6x16xf32> to vector<1x1x16xf32>
    %389 = vector.shape_cast %388 : vector<1x1x16xf32> to vector<1x16xf32>
    %390 = vector.broadcast %387 : vector<30x1xf32> to vector<30x16xf32>
    %391 = vector.broadcast %389 : vector<1x16xf32> to vector<30x16xf32>
    %392 = arith.addf %390, %391 : vector<30x16xf32>
    %393 = vector.extract_strided_slice %231 {offsets = [0, 4, 0], sizes = [1, 1, 16], strides = [1, 1, 1]} : vector<3x6x16xf32> to vector<1x1x16xf32>
    %394 = vector.shape_cast %393 : vector<1x1x16xf32> to vector<1x16xf32>
    %395 = vector.broadcast %387 : vector<30x1xf32> to vector<30x16xf32>
    %396 = vector.broadcast %394 : vector<1x16xf32> to vector<30x16xf32>
    %397 = arith.addf %395, %396 : vector<30x16xf32>
    %398 = vector.extract_strided_slice %228 {offsets = [0, 4], sizes = [30, 1], strides = [1, 1]} : vector<30x6xf32> to vector<30x1xf32>
    %399 = vector.extract_strided_slice %230 {offsets = [1, 4, 0], sizes = [1, 1, 16], strides = [1, 1, 1]} : vector<3x6x16xf32> to vector<1x1x16xf32>
    %400 = vector.shape_cast %399 : vector<1x1x16xf32> to vector<1x16xf32>
    %401 = vector.broadcast %398 : vector<30x1xf32> to vector<30x16xf32>
    %402 = vector.broadcast %400 : vector<1x16xf32> to vector<30x16xf32>
    %403 = arith.addf %401, %402 : vector<30x16xf32>
    %404 = vector.extract_strided_slice %231 {offsets = [1, 4, 0], sizes = [1, 1, 16], strides = [1, 1, 1]} : vector<3x6x16xf32> to vector<1x1x16xf32>
    %405 = vector.shape_cast %404 : vector<1x1x16xf32> to vector<1x16xf32>
    %406 = vector.broadcast %398 : vector<30x1xf32> to vector<30x16xf32>
    %407 = vector.broadcast %405 : vector<1x16xf32> to vector<30x16xf32>
    %408 = arith.addf %406, %407 : vector<30x16xf32>
    %409 = arith.minimumf %392, %403 : vector<30x16xf32>
    %410 = arith.maximumf %397, %408 : vector<30x16xf32>
    %411 = vector.extract_strided_slice %229 {offsets = [0, 4], sizes = [30, 1], strides = [1, 1]} : vector<30x6xf32> to vector<30x1xf32>
    %412 = vector.extract_strided_slice %230 {offsets = [2, 4, 0], sizes = [1, 1, 16], strides = [1, 1, 1]} : vector<3x6x16xf32> to vector<1x1x16xf32>
    %413 = vector.shape_cast %412 : vector<1x1x16xf32> to vector<1x16xf32>
    %414 = vector.broadcast %411 : vector<30x1xf32> to vector<30x16xf32>
    %415 = vector.broadcast %413 : vector<1x16xf32> to vector<30x16xf32>
    %416 = arith.addf %414, %415 : vector<30x16xf32>
    %417 = vector.extract_strided_slice %231 {offsets = [2, 4, 0], sizes = [1, 1, 16], strides = [1, 1, 1]} : vector<3x6x16xf32> to vector<1x1x16xf32>
    %418 = vector.shape_cast %417 : vector<1x1x16xf32> to vector<1x16xf32>
    %419 = vector.broadcast %411 : vector<30x1xf32> to vector<30x16xf32>
    %420 = vector.broadcast %418 : vector<1x16xf32> to vector<30x16xf32>
    %421 = arith.addf %419, %420 : vector<30x16xf32>
    %422 = arith.minimumf %409, %416 : vector<30x16xf32>
    %423 = arith.maximumf %410, %421 : vector<30x16xf32>
    %424 = arith.addf %422, %423 : vector<30x16xf32>
    %425 = arith.addf %386, %424 : vector<30x16xf32>
    %426 = vector.extract_strided_slice %227 {offsets = [0, 5], sizes = [30, 1], strides = [1, 1]} : vector<30x6xf32> to vector<30x1xf32>
    %427 = vector.extract_strided_slice %230 {offsets = [0, 5, 0], sizes = [1, 1, 16], strides = [1, 1, 1]} : vector<3x6x16xf32> to vector<1x1x16xf32>
    %428 = vector.shape_cast %427 : vector<1x1x16xf32> to vector<1x16xf32>
    %429 = vector.broadcast %426 : vector<30x1xf32> to vector<30x16xf32>
    %430 = vector.broadcast %428 : vector<1x16xf32> to vector<30x16xf32>
    %431 = arith.addf %429, %430 : vector<30x16xf32>
    %432 = vector.extract_strided_slice %231 {offsets = [0, 5, 0], sizes = [1, 1, 16], strides = [1, 1, 1]} : vector<3x6x16xf32> to vector<1x1x16xf32>
    %433 = vector.shape_cast %432 : vector<1x1x16xf32> to vector<1x16xf32>
    %434 = vector.broadcast %426 : vector<30x1xf32> to vector<30x16xf32>
    %435 = vector.broadcast %433 : vector<1x16xf32> to vector<30x16xf32>
    %436 = arith.addf %434, %435 : vector<30x16xf32>
    %437 = vector.extract_strided_slice %228 {offsets = [0, 5], sizes = [30, 1], strides = [1, 1]} : vector<30x6xf32> to vector<30x1xf32>
    %438 = vector.extract_strided_slice %230 {offsets = [1, 5, 0], sizes = [1, 1, 16], strides = [1, 1, 1]} : vector<3x6x16xf32> to vector<1x1x16xf32>
    %439 = vector.shape_cast %438 : vector<1x1x16xf32> to vector<1x16xf32>
    %440 = vector.broadcast %437 : vector<30x1xf32> to vector<30x16xf32>
    %441 = vector.broadcast %439 : vector<1x16xf32> to vector<30x16xf32>
    %442 = arith.addf %440, %441 : vector<30x16xf32>
    %443 = vector.extract_strided_slice %231 {offsets = [1, 5, 0], sizes = [1, 1, 16], strides = [1, 1, 1]} : vector<3x6x16xf32> to vector<1x1x16xf32>
    %444 = vector.shape_cast %443 : vector<1x1x16xf32> to vector<1x16xf32>
    %445 = vector.broadcast %437 : vector<30x1xf32> to vector<30x16xf32>
    %446 = vector.broadcast %444 : vector<1x16xf32> to vector<30x16xf32>
    %447 = arith.addf %445, %446 : vector<30x16xf32>
    %448 = arith.minimumf %431, %442 : vector<30x16xf32>
    %449 = arith.maximumf %436, %447 : vector<30x16xf32>
    %450 = vector.extract_strided_slice %229 {offsets = [0, 5], sizes = [30, 1], strides = [1, 1]} : vector<30x6xf32> to vector<30x1xf32>
    %451 = vector.extract_strided_slice %230 {offsets = [2, 5, 0], sizes = [1, 1, 16], strides = [1, 1, 1]} : vector<3x6x16xf32> to vector<1x1x16xf32>
    %452 = vector.shape_cast %451 : vector<1x1x16xf32> to vector<1x16xf32>
    %453 = vector.broadcast %450 : vector<30x1xf32> to vector<30x16xf32>
    %454 = vector.broadcast %452 : vector<1x16xf32> to vector<30x16xf32>
    %455 = arith.addf %453, %454 : vector<30x16xf32>
    %456 = vector.extract_strided_slice %231 {offsets = [2, 5, 0], sizes = [1, 1, 16], strides = [1, 1, 1]} : vector<3x6x16xf32> to vector<1x1x16xf32>
    %457 = vector.shape_cast %456 : vector<1x1x16xf32> to vector<1x16xf32>
    %458 = vector.broadcast %450 : vector<30x1xf32> to vector<30x16xf32>
    %459 = vector.broadcast %457 : vector<1x16xf32> to vector<30x16xf32>
    %460 = arith.addf %458, %459 : vector<30x16xf32>
    %461 = arith.minimumf %448, %455 : vector<30x16xf32>
    %462 = arith.maximumf %449, %460 : vector<30x16xf32>
    %463 = arith.addf %461, %462 : vector<30x16xf32>
    %464 = arith.addf %425, %463 : vector<30x16xf32>
    %cst_47 = arith.constant 5.000000e-01 : f32
    %465 = vector.broadcast %cst_47 : f32 to vector<30x16xf32>
    %466 = arith.mulf %465, %464 : vector<30x16xf32>
    %c0_48 = arith.constant 0 : index
    %c0_49 = arith.constant 0 : index
    %467 = vector.load %arg7[%c0_48, %c0_49] : memref<12x30xf32, #tpu.memory_space<vmem>>, vector<12x30xf32>
    %cst_50 = arith.constant dense<0.000000e+00> : vector<12x16xf32>
    %468 = tpu.matmul %467, %466, %cst_50 {dimension_numbers = #tpu.dot_dimension_numbers<[1], [0], [0], [1], [0, 0, 1, 1], [], []>} : vector<12x30xf32>, vector<30x16xf32>, vector<12x16xf32> -> vector<12x16xf32>
    %469 = vector.extract_strided_slice %468 {offsets = [0, 0], sizes = [4, 16], strides = [1, 1]} : vector<12x16xf32> to vector<4x16xf32>
    %c0_51 = arith.constant 0 : index
    %c0_52 = arith.constant 0 : index
    %c0_53 = arith.constant 0 : index
    %470 = vector.load %arg8[%c0_51, %c0_52, %c0_53] : memref<3x16x128xf32, #tpu.memory_space<vmem>>, vector<1x16x128xf32>
    %471 = vector.shape_cast %470 : vector<1x16x128xf32> to vector<16x128xf32>
    %cst_54 = arith.constant dense<0.000000e+00> : vector<4x128xf32>
    %472 = tpu.matmul %469, %471, %cst_54 {dimension_numbers = #tpu.dot_dimension_numbers<[1], [0], [0], [1], [0, 0, 1, 1], [], []>} : vector<4x16xf32>, vector<16x128xf32>, vector<4x128xf32> -> vector<4x128xf32>
    %473 = vector.extract_strided_slice %468 {offsets = [4, 0], sizes = [4, 16], strides = [1, 1]} : vector<12x16xf32> to vector<4x16xf32>
    %c1_55 = arith.constant 1 : index
    %c0_56 = arith.constant 0 : index
    %c0_57 = arith.constant 0 : index
    %474 = vector.load %arg8[%c1_55, %c0_56, %c0_57] : memref<3x16x128xf32, #tpu.memory_space<vmem>>, vector<1x16x128xf32>
    %475 = vector.shape_cast %474 : vector<1x16x128xf32> to vector<16x128xf32>
    %cst_58 = arith.constant dense<0.000000e+00> : vector<4x128xf32>
    %476 = tpu.matmul %473, %475, %cst_58 {dimension_numbers = #tpu.dot_dimension_numbers<[1], [0], [0], [1], [0, 0, 1, 1], [], []>} : vector<4x16xf32>, vector<16x128xf32>, vector<4x128xf32> -> vector<4x128xf32>
    %477 = arith.addf %472, %476 : vector<4x128xf32>
    %478 = vector.extract_strided_slice %468 {offsets = [8, 0], sizes = [4, 16], strides = [1, 1]} : vector<12x16xf32> to vector<4x16xf32>
    %c2_59 = arith.constant 2 : index
    %c0_60 = arith.constant 0 : index
    %c0_61 = arith.constant 0 : index
    %479 = vector.load %arg8[%c2_59, %c0_60, %c0_61] : memref<3x16x128xf32, #tpu.memory_space<vmem>>, vector<1x16x128xf32>
    %480 = vector.shape_cast %479 : vector<1x16x128xf32> to vector<16x128xf32>
    %cst_62 = arith.constant dense<0.000000e+00> : vector<4x128xf32>
    %481 = tpu.matmul %478, %480, %cst_62 {dimension_numbers = #tpu.dot_dimension_numbers<[1], [0], [0], [1], [0, 0, 1, 1], [], []>} : vector<4x16xf32>, vector<16x128xf32>, vector<4x128xf32> -> vector<4x128xf32>
    %482 = arith.addf %477, %481 : vector<4x128xf32>
    %c0_63 = arith.constant 0 : index
    %c0_64 = arith.constant 0 : index
    %483 = vector.load %arg9[%c0_63, %c0_64] : memref<1x128xf32, #tpu.memory_space<vmem>>, vector<1x128xf32>
    %484 = vector.broadcast %483 : vector<1x128xf32> to vector<4x128xf32>
    %485 = arith.addf %482, %484 : vector<4x128xf32>
    %cst_65 = arith.constant 0.000000e+00 : f32
    %486 = vector.broadcast %cst_65 : f32 to vector<4x128xf32>
    %487 = arith.maximumf %485, %486 : vector<4x128xf32>
    %c0_66 = arith.constant 0 : index
    %c0_67 = arith.constant 0 : index
    %488 = vector.load %arg10[%c0_66, %c0_67] : memref<128x128xf32, #tpu.memory_space<vmem>>, vector<128x128xf32>
    %cst_68 = arith.constant dense<0.000000e+00> : vector<4x128xf32>
    %489 = tpu.matmul %487, %488, %cst_68 {dimension_numbers = #tpu.dot_dimension_numbers<[1], [0], [0], [1], [0, 0, 1, 1], [], []>} : vector<4x128xf32>, vector<128x128xf32>, vector<4x128xf32> -> vector<4x128xf32>
    %c0_69 = arith.constant 0 : index
    %c0_70 = arith.constant 0 : index
    %490 = vector.load %arg11[%c0_69, %c0_70] : memref<1x128xf32, #tpu.memory_space<vmem>>, vector<1x128xf32>
    %491 = vector.broadcast %490 : vector<1x128xf32> to vector<4x128xf32>
    %492 = arith.addf %489, %491 : vector<4x128xf32>
    %cst_71 = arith.constant 0.000000e+00 : f32
    %493 = vector.broadcast %cst_71 : f32 to vector<4x128xf32>
    %494 = arith.maximumf %492, %493 : vector<4x128xf32>
    %c0_72 = arith.constant 0 : index
    %c0_73 = arith.constant 0 : index
    %495 = vector.load %arg12[%c0_72, %c0_73] : memref<128x128xf32, #tpu.memory_space<vmem>>, vector<128x128xf32>
    %cst_74 = arith.constant dense<0.000000e+00> : vector<4x128xf32>
    %496 = tpu.matmul %494, %495, %cst_74 {dimension_numbers = #tpu.dot_dimension_numbers<[1], [0], [0], [1], [0, 0, 1, 1], [], []>} : vector<4x128xf32>, vector<128x128xf32>, vector<4x128xf32> -> vector<4x128xf32>
    %c0_75 = arith.constant 0 : index
    %c0_76 = arith.constant 0 : index
    %497 = vector.load %arg13[%c0_75, %c0_76] : memref<1x128xf32, #tpu.memory_space<vmem>>, vector<1x128xf32>
    %498 = vector.broadcast %497 : vector<1x128xf32> to vector<4x128xf32>
    %499 = arith.addf %496, %498 : vector<4x128xf32>
    %c0_77 = arith.constant 0 : index
    %c0_78 = arith.constant 0 : index
    %c0_79 = arith.constant 0 : index
    %500 = vector.load %arg14[%c0_77, %c0_78, %c0_79] : memref<1x4x128xf32, #tpu.memory_space<vmem>>, vector<1x4x128xf32>
    %501 = vector.shape_cast %500 : vector<1x4x128xf32> to vector<4x128xf32>
    %502 = vector.shape_cast %499 : vector<4x128xf32> to vector<1x4x128xf32>
    tpu.vector_store %arg14[%c0_77, %c0_78, %c0_79], %502 {strides = array<i32>} : memref<1x4x128xf32, #tpu.memory_space<vmem>>, vector<1x4x128xf32>,
    return
  }
  func.func @transform_0(%arg0: i32) -> (i32, i32, i32) {
    %c0_i32 = arith.constant 0 : i32
    %c0_i32_0 = arith.constant 0 : i32
    %c0_i32_1 = arith.constant 0 : i32
    return %arg0, %c0_i32, %c0_i32_0 : i32, i32, i32
  }
  func.func @transform_1(%arg0: i32) -> (i32, i32, i32) {
    %c0_i32 = arith.constant 0 : i32
    %c0_i32_0 = arith.constant 0 : i32
    %c0_i32_1 = arith.constant 0 : i32
    %c0_i32_2 = arith.constant 0 : i32
    return %c0_i32, %c0_i32_0, %c0_i32_1 : i32, i32, i32
  }
  func.func @transform_2(%arg0: i32) -> (i32, i32, i32) {
    %c0_i32 = arith.constant 0 : i32
    %c0_i32_0 = arith.constant 0 : i32
    %c0_i32_1 = arith.constant 0 : i32
    %c0_i32_2 = arith.constant 0 : i32
    return %c0_i32, %c0_i32_0, %c0_i32_1 : i32, i32, i32
  }
  func.func @transform_3(%arg0: i32) -> (i32, i32, i32) {
    %c0_i32 = arith.constant 0 : i32
    %c0_i32_0 = arith.constant 0 : i32
    %c0_i32_1 = arith.constant 0 : i32
    %c0_i32_2 = arith.constant 0 : i32
    return %c0_i32, %c0_i32_0, %c0_i32_1 : i32, i32, i32
  }
  func.func @transform_4(%arg0: i32) -> (i32, i32, i32) {
    %c0_i32 = arith.constant 0 : i32
    %c0_i32_0 = arith.constant 0 : i32
    %c0_i32_1 = arith.constant 0 : i32
    %c0_i32_2 = arith.constant 0 : i32
    return %c0_i32, %c0_i32_0, %c0_i32_1 : i32, i32, i32
  }
  func.func @transform_5(%arg0: i32) -> (i32, i32) {
    %c0_i32 = arith.constant 0 : i32
    %c0_i32_0 = arith.constant 0 : i32
    %c0_i32_1 = arith.constant 0 : i32
    return %c0_i32, %c0_i32_0 : i32, i32
  }
  func.func @transform_6(%arg0: i32) -> (i32, i32) {
    %c0_i32 = arith.constant 0 : i32
    %c0_i32_0 = arith.constant 0 : i32
    %c0_i32_1 = arith.constant 0 : i32
    return %c0_i32, %c0_i32_0 : i32, i32
  }
  func.func @transform_7(%arg0: i32) -> (i32, i32, i32) {
    %c0_i32 = arith.constant 0 : i32
    %c0_i32_0 = arith.constant 0 : i32
    %c0_i32_1 = arith.constant 0 : i32
    %c0_i32_2 = arith.constant 0 : i32
    return %c0_i32, %c0_i32_0, %c0_i32_1 : i32, i32, i32
  }
  func.func @transform_8(%arg0: i32) -> (i32, i32) {
    %c0_i32 = arith.constant 0 : i32
    %c0_i32_0 = arith.constant 0 : i32
    %c0_i32_1 = arith.constant 0 : i32
    return %c0_i32, %c0_i32_0 : i32, i32
  }
  func.func @transform_9(%arg0: i32) -> (i32, i32) {
    %c0_i32 = arith.constant 0 : i32
    %c0_i32_0 = arith.constant 0 : i32
    %c0_i32_1 = arith.constant 0 : i32
    return %c0_i32, %c0_i32_0 : i32, i32
  }
  func.func @transform_10(%arg0: i32) -> (i32, i32) {
    %c0_i32 = arith.constant 0 : i32
    %c0_i32_0 = arith.constant 0 : i32
    %c0_i32_1 = arith.constant 0 : i32
    return %c0_i32, %c0_i32_0 : i32, i32
  }
  func.func @transform_11(%arg0: i32) -> (i32, i32) {
    %c0_i32 = arith.constant 0 : i32
    %c0_i32_0 = arith.constant 0 : i32
    %c0_i32_1 = arith.constant 0 : i32
    return %c0_i32, %c0_i32_0 : i32, i32
  }
  func.func @transform_12(%arg0: i32) -> (i32, i32) {
    %c0_i32 = arith.constant 0 : i32
    %c0_i32_0 = arith.constant 0 : i32
    %c0_i32_1 = arith.constant 0 : i32
    return %c0_i32, %c0_i32_0 : i32, i32
  }
  func.func @transform_13(%arg0: i32) -> (i32, i32, i32) {
    %c0_i32 = arith.constant 0 : i32
    %c0_i32_0 = arith.constant 0 : i32
    %c0_i32_1 = arith.constant 0 : i32
    return %arg0, %c0_i32, %c0_i32_0 : i32, i32, i32
  }
}

</mosaic_0001>

<bundles_post_ra>
// kernel: fwd.1
= control target key start
LH: loop header
LB: loop body
LE: loop exit
PB: predicated region body
PF: predicated region fallthrough
CT: control target
= control target key end

     0   :  { %18 = vsyncpa [#allocation4], 0  ;;  %s6794_s0 = inlined_call_operand.vmem [shape: f32[4,16,3], index: 0, kind: input, shape index: {}]   ;;  %s6795_s1 = inlined_call_operand.hbm [shape: f32[5,3,6], index: 1, kind: input, shape index: {}]   ;;  %s6796_s2 = inlined_call_operand.hbm [shape: f32[5,3,6], index: 2, kind: input, shape index: {}]   ;;  %s6797_s3 = inlined_call_operand.hbm [shape: f32[3,6,16], index: 3, kind: input, shape index: {}]   ;;  %s6798_s4 = inlined_call_operand.hbm [shape: f32[3,6,16], index: 4, kind: input, shape index: {}]   ;;  %s6799_s5 = inlined_call_operand.vmem [shape: f32[32,96], index: 5, kind: input, shape index: {}]   ;;  %s6800_s6 = inlined_call_operand.vmem [shape: f32[12,30], index: 6, kind: input, shape index: {}]   ;;  %s6801_s7 = inlined_call_operand.vmem [shape: f32[3,16,128], index: 7, kind: input, shape index: {}]   ;;  %s6802_s8 = inlined_call_operand.hbm [shape: f32[1,128], index: 8, kind: input, shape index: {}]   ;;  %s6803_s9 = inlined_call_operand.hbm [shape: f32[128,128], index: 9, kind: input, shape index: {}]   ;;  %s6804_s10 = inlined_call_operand.hbm [shape: f32[1,128], index: 10, kind: input, shape index: {}]   ;;  %s6805_s11 = inlined_call_operand.hbm [shape: f32[128,128], index: 11, kind: input, shape index: {}]   ;;  %s6806_s12 = inlined_call_operand.hbm [shape: f32[1,128], index: 12, kind: input, shape index: {}]   ;;  %s6807_s13 = inlined_call_operand.hbm [shape: f32[1,4,128], index: 13, kind: output, shape index: {}]  }
   0x1   :  { %19 = vsyncpa [#allocation7], 0 }
   0x2   :  { %20 = vsyncpa [#allocation10], 0 }
   0x3   :  { %21 = vsyncpa [#allocation13], 0 }
   0x4   :  { %22 = vsyncpa [#allocation16], 0 }
   0x5   :  { %23 = vsyncpa [#allocation5], 0  ;;  %s3931_s25 = smov [#allocation6]  }
   0x6   :  { %s43_s26 = sshll.u32 %s3931_s25, 4  ;;  %s44_s26 = int_to_ptr.vmem [resolvable:$true] %s43_s26 }
   0x7   :  { %s3727_s27 = scalar_lea.vmem %s44_s26, 320  ;;  %p3732_p1 = scmp.lt.s32.totalorder %s44_s26, %s44_s26 }
   0x8   :  { %p3728_p0 = scmp.ne.s32.totalorder %s44_s26, %s3727_s27  ;;  %p3733_p2 = scmp.lt.s32.totalorder %s3727_s27, %s3727_s27 }
   0xa   :  { %p3734_p3 = por %p3733_p2, %p3732_p1 }
   0xc   :  { %p3735_p4 = pnand %p3734_p3, %p3728_p0 }
   0xe   :  { %3738 = shalt.err (!%p3735_p4)
}
   0xf   :  { %s3932_s28 = smov 64   ;;  %s3933_s29 = smov 4  }
  0x10   :  { %49 = dma.hbm_to_vmem [thread:$0]  %s6796_s2, 320, %s44_s26, [#allocation7], %s3932_s28, %s3932_s28, %s3933_s29  }
  0x11   :  { %s3934_s15 = smov [#allocation9]   ;;  %s3935_s17 = smov [#allocation12]  }
  0x12   :  { %s67_s16 = sshll.u32 %s3934_s15, 4  ;;  %s95_s18 = sshll.u32 %s3935_s17, 4  ;;  %s68_s16 = int_to_ptr.vmem [resolvable:$true] %s67_s16  ;;  %s96_s18 = int_to_ptr.vmem [resolvable:$true] %s95_s18 }
  0x13   :  { %s3747_s19 = scalar_lea.vmem %s68_s16, 384  ;;  %p3752_p6 = scmp.lt.s32.totalorder %s68_s16, %s68_s16 }
  0x14   :  { %p3748_p5 = scmp.ne.s32.totalorder %s68_s16, %s3747_s19  ;;  %p3753_p7 = scmp.lt.s32.totalorder %s3747_s19, %s3747_s19 }
  0x16   :  { %p3754_p8 = por %p3753_p7, %p3752_p6 }
  0x18   :  { %p3755_p9 = pnand %p3754_p8, %p3748_p5 }
  0x1a   :  { %3758 = shalt.err (!%p3755_p9)
}
  0x1b   :  { %s3936_s20 = smov 128   ;;  %s3937_s21 = smov 8  }
  0x1c   :  { %73 = dma.hbm_to_vmem [thread:$0]  %s6798_s4, 384, %s68_s16, [#allocation10], %s3936_s20, %s3936_s20, %s3937_s21  }
  0x1d   :  { %s3767_s2 = scalar_lea.vmem %s96_s18, 2048  ;;  %p3772_p11 = scmp.lt.s32.totalorder %s96_s18, %s96_s18 }
  0x1e   :  { %p3768_p10 = scmp.ne.s32.totalorder %s96_s18, %s3767_s2  ;;  %p3773_p12 = scmp.lt.s32.totalorder %s3767_s2, %s3767_s2 }
  0x20   :  { %p3774_p13 = por %p3773_p12, %p3772_p11 }
  0x22   :  { %p3775_p0 = pnand %p3774_p13, %p3768_p10 }
  0x24   :  { %3778 = shalt.err (!%p3775_p0)
}
  0x25   :  { %101 = dma.hbm_to_vmem [thread:$0]  %s6803_s9, 2048, %s96_s18, [#allocation13], %s3936_s20, %s3936_s20, %s3937_s21  }
  0x26   :  { %s3938_s26 = smov [#allocation15]   ;;  %s3939_s30 = smov [#allocation3]  }
  0x27   :  { %s117_s27 = sshll.u32 %s3938_s26, 4  ;;  %s31_s4 = sshll.u32 %s3939_s30, 4  ;;  %s118_s27 = int_to_ptr.vmem [resolvable:$true] %s117_s27  ;;  %s32_s4 = int_to_ptr.vmem [resolvable:$true] %s31_s4 }
  0x28   :  { %s3787_s14 = scalar_lea.vmem %s118_s27, 2048  ;;  %p3792_p2 = scmp.lt.s32.totalorder %s118_s27, %s118_s27 }
  0x29   :  { %p3788_p1 = scmp.ne.s32.totalorder %s118_s27, %s3787_s14  ;;  %p3793_p3 = scmp.lt.s32.totalorder %s3787_s14, %s3787_s14 }
  0x2b   :  { %p3794_p4 = por %p3793_p3, %p3792_p2 }
  0x2d   :  { %p3795_p5 = pnand %p3794_p4, %p3788_p1 }
  0x2f   :  { %3798 = shalt.err (!%p3795_p5)
}
  0x30   :  { %123 = dma.hbm_to_vmem [thread:$0]  %s6805_s11, 2048, %s118_s27, [#allocation16], %s3936_s20, %s3936_s20, %s3937_s21  }
  0x31   :  { %s3807_s9 = scalar_lea.vmem %s32_s4, 320  ;;  %p3812_p7 = scmp.lt.s32.totalorder %s32_s4, %s32_s4 }
  0x32   :  { %p3808_p6 = scmp.ne.s32.totalorder %s32_s4, %s3807_s9  ;;  %p3813_p8 = scmp.lt.s32.totalorder %s3807_s9, %s3807_s9 }
  0x34   :  { %p3814_p9 = por %p3813_p8, %p3812_p7 }
  0x36   :  { %p3815_p10 = pnand %p3814_p9, %p3808_p6 }
  0x38   :  { %3818 = shalt.err (!%p3815_p10)
}
  0x39   :  { %37 = dma.hbm_to_vmem [thread:$0]  %s6795_s1, 320, %s32_s4, [#allocation4], %s3932_s28, %s3932_s28, %s3933_s29  }
  0x3a   :  { %s3940_s19 = smov [#allocation8]   ;;  %s3941_s23 = smov [#allocation11]  }
  0x3b   :  { %s55_s22 = sshll.u32 %s3940_s19, 4  ;;  %s86_s11 = sshll.u32 %s3941_s23, 4  ;;  %s56_s22 = int_to_ptr.vmem [resolvable:$true] %s55_s22  ;;  %s87_s11 = int_to_ptr.vmem [resolvable:$true] %s86_s11 }
  0x3c   :  { %s3827_s2 = scalar_lea.vmem %s56_s22, 384  ;;  %p3832_p12 = scmp.lt.s32.totalorder %s56_s22, %s56_s22 }
  0x3d   :  { %p3828_p11 = scmp.ne.s32.totalorder %s56_s22, %s3827_s2  ;;  %p3833_p13 = scmp.lt.s32.totalorder %s3827_s2, %s3827_s2 }
  0x3f   :  { %p3834_p0 = por %p3833_p13, %p3832_p12 }
  0x41   :  { %p3835_p1 = pnand %p3834_p0, %p3828_p11 }
  0x43   :  { %3838 = shalt.err (!%p3835_p1)
}
  0x44   :  { %61 = dma.hbm_to_vmem [thread:$0]  %s6797_s3, 384, %s56_s22, [#allocation7], %s3936_s20, %s3936_s20, %s3937_s21  }
  0x45   :  { %s3847_s1 = scalar_lea.vmem %s87_s11, 16  ;;  %s3851_s28 = scalar_lea.vmem %s87_s11, 32 }
  0x46   :  { %p3848_p2 = scmp.ne.s32.totalorder %s87_s11, %s3847_s1  ;;  %p3852_p3 = scmp.lt.s32.totalorder %s87_s11, %s87_s11 }
  0x47   :  { %p3853_p4 = scmp.lt.s32.totalorder %s3851_s28, %s3847_s1 }
  0x49   :  { %p3854_p5 = por %p3853_p4, %p3852_p3 }
  0x4b   :  { %p3855_p6 = pnand %p3854_p5, %p3848_p2 }
  0x4d   :  { %3858 = shalt.err (!%p3855_p6)
}
  0x4e   :  { %89 = dma.hbm_to_vmem [thread:$0]  %s6802_s8, 16, %s87_s11, [#allocation10]  }
  0x4f   :  { %s3942_s27 = smov [#allocation14]   ;;  %s3943_s4 = smov [#allocation17]  }
  0x50   :  { %s108_s30 = sshll.u32 %s3942_s27, 4  ;;  %s130_s14 = sshll.u32 %s3943_s4, 4  ;;  %s109_s30 = int_to_ptr.vmem [resolvable:$true] %s108_s30  ;;  %s131_s14 = int_to_ptr.vmem [resolvable:$true] %s130_s14 }
  0x51   :  { %s3867_s15 = scalar_lea.vmem %s109_s30, 16  ;;  %s3871_s3 = scalar_lea.vmem %s109_s30, 32 }
  0x52   :  { %p3868_p7 = scmp.ne.s32.totalorder %s109_s30, %s3867_s15  ;;  %p3872_p8 = scmp.lt.s32.totalorder %s109_s30, %s109_s30 }
  0x53   :  { %p3873_p9 = scmp.lt.s32.totalorder %s3871_s3, %s3867_s15 }
  0x55   :  { %p3874_p10 = por %p3873_p9, %p3872_p8 }
  0x57   :  { %p3875_p11 = pnand %p3874_p10, %p3868_p7 }
  0x59   :  { %3878 = shalt.err (!%p3875_p11)
}
  0x5a   :  { %111 = dma.hbm_to_vmem [thread:$0]  %s6804_s10, 16, %s109_s30, [#allocation13]  }
  0x5b   :  { %s3887_s16 = scalar_lea.vmem %s131_s14, 16  ;;  %s3891_s8 = scalar_lea.vmem %s131_s14, 32 }
  0x5c   :  { %p3888_p12 = scmp.ne.s32.totalorder %s131_s14, %s3887_s16  ;;  %p3892_p13 = scmp.lt.s32.totalorder %s131_s14, %s131_s14 }
  0x5d   :  { %p3893_p0 = scmp.lt.s32.totalorder %s3891_s8, %s3887_s16 }
  0x5f   :  { %p3894_p1 = por %p3893_p0, %p3892_p13 }
  0x61   :  { %p3895_p2 = pnand %p3894_p1, %p3888_p12 }
  0x63   :  { %3898 = shalt.err (!%p3895_p2)
}
  0x64   :  { %133 = dma.hbm_to_vmem [thread:$0]  %s6806_s12, 16, %s131_s14, [#allocation16]  }
  0x65   :  { %3919 = dma.done.wait [#allocation4], 320  }
  0x66   :  { %3920 = vsyncadd [#allocation4], 4294966976 }
  0x67   :  { %3921 = dma.done.wait [#allocation7], 704  }
  0x68   :  { %3922 = vsyncadd [#allocation7], 4294966592 }
  0x69   :  { %3923 = dma.done.wait [#allocation10], 400  }
  0x6a   :  { %3924 = vsyncadd [#allocation10], 4294966896 }
  0x6b   :  { %3925 = dma.done.wait [#allocation13], 2064  }
  0x6c   :  { %3926 = vsyncadd [#allocation13], 4294965232 }
  0x6d   :  { %3927 = dma.done.wait [#allocation16], 2064  }
  0x6e   :  { %3928 = vsyncadd [#allocation16], 4294965232  ;;  %vm161_vm0 = vcmask 23552   ;;  %v6815_v0 = vmov 1   ;;  %v6808_v1 = vmov 0.0   ;;  %v3415_v2 = vld [vmem:[%s6794_s0 + $0x38] sm:$0xff] }
  0x6f   :  { %3655 = vset.pattern.permute.xlu0 %v6815_v0  ;;  %3652 = vset.pattern.permute.xlu1 %v6815_v0  ;;  %166 = vst.msk [vmem:[#allocation2 + $0x60] sm:$0xff] %vm161_vm0, %v6808_v1  ;;  %162 = vst.msk [vmem:[#allocation2] sm:$0xff] %vm161_vm0, %v6808_v1  ;;  %v3414_v3 = vld [vmem:[%s6794_s0 + $0x30] sm:$0xff]  ;;  %v3413_v4 = vld [vmem:[%s6794_s0 + $0x28] sm:$0xff]  ;;  %v6810_v15 = vmov 0   ;;  %v6817_v22 = vmov 2  }
  0x70   :  { %163 = vst.msk [vmem:[#allocation2 + $0x18] sm:$0xff] %vm161_vm0, %v6808_v1  ;;  %164 = vst.msk [vmem:[#allocation2 + $0x30] sm:$0xff] %vm161_vm0, %v6808_v1  ;;  %v3412_v5 = vld [vmem:[%s6794_s0 + $0x20] sm:$0xff]  ;;  %v3411_v6 = vld [vmem:[%s6794_s0 + $0x18] sm:$0xff]  ;;  %vm1880_vm1 = vcmask 785408   ;;  %vm2880_vm2 = vcmask 244736  }
  0x71   :  { %165 = vst.msk [vmem:[#allocation2 + $0x48] sm:$0xff] %vm161_vm0, %v6808_v1  ;;  %185 = vst.msk [vmem:[#allocation2 + $0x58] sm:$0xff] %vm161_vm0, %v3415_v2  ;;  %v3410_v7 = vld [vmem:[%s6794_s0 + $0x10] sm:$0xff]  ;;  %v168_v8 = vld [vmem:[%s6794_s0 + $0x8] sm:$0xff]  ;;  %vm2040_vm3 = vcmask 1046528   ;;  %vm2095_vm4 = vcmask 1045504  }
  0x72   :  { %184 = vst.msk [vmem:[#allocation2 + $0x50] sm:$0xff] %vm161_vm0, %v3414_v3  ;;  %180 = vst.msk [vmem:[#allocation2 + $0x40] sm:$0xff] %vm161_vm0, %v3413_v4  ;;  %v167_v9 = vld [vmem:[%s6794_s0] sm:$0xff]  ;;  %vm3951_vm5 = vmmov 0   ;;  %vm2972_vm6 = vcmask 130048  }
  0x73   :  { %179 = vst.msk [vmem:[#allocation2 + $0x38] sm:$0xff] %vm161_vm0, %v3412_v5  ;;  %175 = vst.msk [vmem:[#allocation2 + $0x28] sm:$0xff] %vm161_vm0, %v3411_v6 }
  0x74   :  { %174 = vst.msk [vmem:[#allocation2 + $0x20] sm:$0xff] %vm161_vm0, %v3410_v7  ;;  %170 = vst.msk [vmem:[#allocation2 + $0x10] sm:$0xff] %vm161_vm0, %v168_v8 }
  0x75   :  { %169 = vst.msk [vmem:[#allocation2 + $0x8] sm:$0xff] %vm161_vm0, %v167_v9 }
  0x77   :  { %v4247_v52 = vld [vmem:[#allocation2 + $0x30] sm:$0xff] }
  0x78   :  { %v4112_v10 = vld [vmem:[#allocation2 + $0x58] sm:$0xff]  ;;  %v4146_v23 = vld [vmem:[#allocation2 + $0x48] sm:$0xff] }
  0x79   :  { %v208_v11 = vld [vmem:[#allocation2 + $0x51] sm:$0xff]  ;;  %869 = vperm.xlu1 %3652, %v4112_v10   ;;  %v4115_v12 = vld [vmem:[#allocation2 + $0x59] sm:$0xff]  ;;  %v4117_v13 = vld [vmem:[#allocation2 + $0x49] sm:$0xff] }
  0x7a   :  { %945 = vperm.xlu0 %3655, %v208_v11   ;;  %v4121_v14 = vld [vmem:[#allocation2 + $0x40] sm:$0xff]  ;;  %v4125_v16 = vld [vmem:[#allocation2 + $0x53] sm:$0xff]  ;;  %v4153_v25 = vld [vmem:[#allocation2 + $0x29] sm:$0xff] }
  0x7b   :  { %v4127_v17 = vld [vmem:[#allocation2 + $0x50] sm:$0xff]  ;;  %v4131_v18 = vld [vmem:[#allocation2 + $0x39] sm:$0xff]  ;;  %v4159_v27 = vld [vmem:[#allocation2 + $0x44] sm:$0xff] }
  0x7c   :  { %v4134_v19 = vld [vmem:[#allocation2 + $0x5a] sm:$0xff]  ;;  %v4141_v21 = vld [vmem:[#allocation2 + $0x31] sm:$0xff]  ;;  %v4188_v36 = vld [vmem:[#allocation2 + $0x9] sm:$0xff] }
  0x7d   :  { %949 = vperm.xlu1 %3652, %v4115_v12   ;;  %v4137_v20 = vld [vmem:[#allocation2 + $0x54] sm:$0xff]  ;;  %v4148_v24 = vld [vmem:[#allocation2 + $0x4c] sm:$0xff]  ;;  %v4163_v28 = vld [vmem:[#allocation2 + $0x21] sm:$0xff] }
  0x7e   :  { %941 = vperm.xlu0 %3655, %v4117_v13   ;;  %v4157_v26 = vld [vmem:[#allocation2 + $0x5b] sm:$0xff]  ;;  %v220_v30 = vld [vmem:[#allocation2 + $0x52] sm:$0xff]  ;;  %v219_v37 = vld [vmem:[#allocation2 + $0x4a] sm:$0xff] }
  0x7f   :  { %v4168_v29 = vld [vmem:[#allocation2 + $0x3c] sm:$0xff]  ;;  %v4175_v32 = vld [vmem:[#allocation2 + $0x34] sm:$0xff]  ;;  %v4182_v34 = vld [vmem:[#allocation2 + $0x2c] sm:$0xff] }
  0x80   :  { %v4171_v31 = vld [vmem:[#allocation2 + $0x19] sm:$0xff]  ;;  %v4179_v33 = vld [vmem:[#allocation2 + $0x11] sm:$0xff]  ;;  %v4186_v35 = vld [vmem:[#allocation2 + $0x41] sm:$0xff] }
  0x81   :  { %3653 = vset.pattern.permute.xlu1 %v6810_v15  ;;  %v4193_v38 = vld [vmem:[#allocation2 + $0x24] sm:$0xff]  ;;  %v4196_v39 = vld [vmem:[#allocation2 + $0x5c] sm:$0xff] }
  0x82   :  { %857 = vperm.xlu0 %3655, %v4121_v14   ;;  %400 = vperm.xlu1 %3653, %v208_v11   ;;  %v4198_v40 = vld [vmem:[#allocation2 + $0x1] sm:$0xff]  ;;  %v4207_v42 = vld [vmem:[#allocation2 + $0xb] sm:$0xff]  ;;  %v193_v43 = vld [vmem:[#allocation2 + $0x38] sm:$0xff] }
  0x83   :  { %v4202_v41 = vld [vmem:[#allocation2 + $0x1c] sm:$0xff]  ;;  %v4219_v45 = vld [vmem:[#allocation2 + $0x4b] sm:$0xff] }
  0x84   :  { %v218_v44 = vld [vmem:[#allocation2 + $0x42] sm:$0xff]  ;;  %v4256_v55 = vld [vmem:[#allocation2 + $0x3a] sm:$0xff] }
  0x85   :  { %v4264_v58 = vld [vmem:[#allocation2 + $0x43] sm:$0xff] }
  0x86   :  { %1153 = vperm.xlu0 %3655, %v4125_v16   ;;  %3654 = vset.pattern.permute.xlu1 %v6815_v0 }
  0x87   :  { %865 = vperm.xlu1 %3654, %v4127_v17  }
  0x8a   :  { %933 = vperm.xlu0 %3655, %v4131_v18  }
  0x8b   :  { %1053 = vperm.xlu1 %3654, %v4134_v19  }
  0x8e   :  { %1257 = vperm.xlu0 %3655, %v4137_v20  }
  0x8f   :  { %3656 = vset.pattern.permute.xlu1 %v6817_v22 }
  0x90   :  { %1389 = vperm.xlu1 %3656, %v4112_v10  }
  0x92   :  { %929 = vperm.xlu0 %3655, %v4141_v21  }
  0x94   :  { %3657 = vset.pattern.permute.xlu1 %v6810_v15 }
  0x95   :  { %303 = vperm.xlu1 %3657, %v4146_v23  }
  0x96   :  { %1253 = vperm.xlu0 %3655, %v4148_v24  }
  0x99   :  { %395 = vperm.xlu1 %3657, %v4117_v13  }
  0x9a   :  { %925 = vperm.xlu0 %3655, %v4153_v25  }
  0x9d   :  { %637 = vperm.xlu1 %3657, %v4157_v26  }
  0x9e   :  { %1249 = vperm.xlu0 %3655, %v4159_v27  }
  0xa1   :  { %3658 = vset.pattern.permute.xlu1 %v6815_v0 }
  0xa2   :  { %921 = vperm.xlu0 %3655, %v4163_v28   ;;  %861 = vperm.xlu1 %3658, %v4146_v23  }
  0xa6   :  { %1245 = vperm.xlu0 %3655, %v4168_v29   ;;  %1049 = vperm.xlu1 %3658, %v220_v30  }
  0xaa   :  { %917 = vperm.xlu0 %3655, %v4171_v31   ;;  %1157 = vperm.xlu1 %3658, %v4157_v26  }
  0xae   :  { %1241 = vperm.xlu0 %3655, %v4175_v32   ;;  %3659 = vset.pattern.permute.xlu1 %v6817_v22 }
  0xaf   :  { %1465 = vperm.xlu1 %3659, %v208_v11  }
  0xb2   :  { %913 = vperm.xlu0 %3655, %v4179_v33  }
  0xb3   :  { %1573 = vperm.xlu1 %3659, %v4134_v19  }
  0xb6   :  { %1237 = vperm.xlu0 %3655, %v4182_v34  }
  0xb7   :  { %3660 = vset.pattern.permute.xlu1 %v6810_v15 }
  0xb8   :  { %390 = vperm.xlu1 %3660, %v4186_v35  }
  0xba   :  { %909 = vperm.xlu0 %3655, %v4188_v36  }
  0xbc   :  { %511 = vperm.xlu1 %3660, %v219_v37  }
  0xbe   :  { %1233 = vperm.xlu0 %3655, %v4193_v38  }
  0xc0   :  { %753 = vperm.xlu1 %3660, %v4196_v39  }
  0xc2   :  { %905 = vperm.xlu0 %3655, %v4198_v40  }
  0xc4   :  { %3661 = vset.pattern.permute.xlu1 %v6815_v0 }
  0xc5   :  { %937 = vperm.xlu1 %3661, %v4186_v35  }
  0xc6   :  { %1229 = vperm.xlu0 %3655, %v4202_v41  }
  0xc9   :  { %1045 = vperm.xlu1 %3661, %v219_v37  }
  0xca   :  { %1117 = vperm.xlu0 %3655, %v4207_v42  }
  0xcd   :  { %1261 = vperm.xlu1 %3661, %v4196_v39  }
  0xce   :  { %3689 = vset.pattern.permute.xlu0 %v6810_v15 }
  0xcf   :  { %313 = vperm.xlu0 %3689, %v4112_v10  }
  0xd1   :  { %3662 = vset.pattern.permute.xlu1 %v6817_v22 }
  0xd2   :  { %1461 = vperm.xlu1 %3662, %v4117_v13   ;;  %v4311_v13 = vld [vmem:[#allocation2 + $0x28] sm:$0xff] }
  0xd3   :  { %405 = vperm.xlu0 %3689, %v4115_v12  }
  0xd6   :  { %1569 = vperm.xlu1 %3662, %v220_v30  }
  0xd7   :  { %308 = vperm.xlu0 %3689, %v4127_v17  }
  0xda   :  { %3663 = vset.pattern.permute.xlu1 %v6810_v15 }
  0xdb   :  { %521 = vperm.xlu0 %3689, %v4134_v19   ;;  %293 = vperm.xlu1 %3663, %v193_v43   ;;  %v4320_v19 = vld [vmem:[#allocation2 + $0x32] sm:$0xff] }
  0xdf   :  { %516 = vperm.xlu0 %3689, %v220_v30   ;;  %506 = vperm.xlu1 %3663, %v218_v44   ;;  %v4322_v30 = vld [vmem:[#allocation2 + $0xc] sm:$0xff] }
  0xe3   :  { %298 = vperm.xlu0 %3689, %v4121_v14   ;;  %627 = vperm.xlu1 %3663, %v4219_v45  }
  0xe7   :  { %632 = vperm.xlu0 %3689, %v4125_v16   ;;  %3664 = vset.pattern.permute.xlu1 %v6815_v0 }
  0xe8   :  { %853 = vperm.xlu1 %3664, %v193_v43  }
  0xeb   :  { %385 = vperm.xlu0 %3689, %v4131_v18  }
  0xec   :  { %1041 = vperm.xlu1 %3664, %v218_v44  }
  0xef   :  { %748 = vperm.xlu0 %3689, %v4137_v20  }
  0xf0   :  { %1149 = vperm.xlu1 %3664, %v4219_v45  }
  0xf3   :  { %380 = vperm.xlu0 %3689, %v4141_v21  }
  0xf4   :  { %v4229_v46 = vpop.permute.xlu1 %869  ;;  %3665 = vset.pattern.permute.xlu1 %v6817_v22 }
  0xf5   :  { %v4232_v47 = vpop.permute.xlu0 %945  ;;  %1377 = vperm.xlu1 %3665, %v4121_v14  }
  0xf7   :  { %743 = vperm.xlu0 %3689, %v4148_v24  }
  0xf8   :  { %v4236_v48 = vpop.permute.xlu1 %949 }
  0xf9   :  { %v4238_v49 = vpop.permute.xlu0 %941  ;;  %1565 = vperm.xlu1 %3665, %v219_v37  }
  0xfb   :  { %375 = vperm.xlu0 %3689, %v4153_v25  }
  0xfd   :  { %v4241_v50 = vpop.permute.xlu0 %857  ;;  %v4243_v51 = vpop.permute.xlu1 %400  ;;  %1673 = vperm.xlu1 %3665, %v4125_v16  }
  0xff   :  { %738 = vperm.xlu0 %3689, %v4159_v27  }
 0x101   :  { %v4249_v53 = vpop.permute.xlu0 %1153  ;;  %3666 = vset.pattern.permute.xlu1 %v6810_v15 }
 0x102   :  { %v4252_v54 = vpop.permute.xlu1 %865  ;;  %288 = vperm.xlu1 %3666, %v4247_v52  }
 0x103   :  { %370 = vperm.xlu0 %3689, %v4163_v28  }
 0x105   :  { %v4258_v56 = vpop.permute.xlu0 %933 }
 0x106   :  { %7064 = vst [vmem:[#allocation25_spill] sm:$0xff] %v4258_v56  ;;  %v4260_v57 = vpop.permute.xlu1 %1053  ;;  %501 = vperm.xlu1 %3666, %v4256_v55  }
 0x107   :  { %733 = vperm.xlu0 %3689, %v4168_v29  }
 0x109   :  { %v4266_v59 = vpop.permute.xlu0 %1257 }
 0x10a   :  { %622 = vperm.xlu1 %3666, %v4264_v58  }
 0x10b   :  { %365 = vperm.xlu0 %3689, %v4171_v31   ;;  %v4270_v60 = vpop.permute.xlu1 %1389 }
 0x10d   :  { %v4272_v61 = vpop.permute.xlu0 %929 }
 0x10e   :  { %7065 = vst [vmem:[#allocation26_spill] sm:$0xff] %v4272_v61  ;;  %3667 = vset.pattern.permute.xlu1 %v6815_v0 }
 0x10f   :  { %728 = vperm.xlu0 %3689, %v4175_v32   ;;  %849 = vperm.xlu1 %3667, %v4247_v52  }
 0x110   :  { %v4277_v62 = vpop.permute.xlu1 %303 }
 0x111   :  { %v4279_v63 = vpop.permute.xlu0 %1253 }
 0x113   :  { %360 = vperm.xlu0 %3689, %v4179_v33   ;;  %1037 = vperm.xlu1 %3667, %v4256_v55  }
 0x114   :  { %v4283_v2 = vpop.permute.xlu1 %395 }
 0x115   :  { %v4285_v3 = vpop.permute.xlu0 %925 }
 0x116   :  { %7066 = vst [vmem:[#allocation27_spill] sm:$0xff] %v4285_v3 }
 0x117   :  { %723 = vperm.xlu0 %3689, %v4182_v34   ;;  %1145 = vperm.xlu1 %3667, %v4264_v58  }
 0x118   :  { %v4289_v4 = vpop.permute.xlu1 %637 }
 0x119   :  { %v4291_v5 = vpop.permute.xlu0 %1249 }
 0x11b   :  { %355 = vperm.xlu0 %3689, %v4188_v36   ;;  %3668 = vset.pattern.permute.xlu1 %v6817_v22 }
 0x11c   :  { %1373 = vperm.xlu1 %3668, %v193_v43  }
 0x11d   :  { %v4295_v6 = vpop.permute.xlu0 %921  ;;  %v4297_v7 = vpop.permute.xlu1 %861 }
 0x11e   :  { %7067 = vst [vmem:[#allocation28_spill] sm:$0xff] %v4295_v6 }
 0x11f   :  { %718 = vperm.xlu0 %3689, %v4193_v38  }
 0x120   :  { %1561 = vperm.xlu1 %3668, %v218_v44   ;;  %v4330_v44 = vld [vmem:[#allocation2 + $0x3b] sm:$0xff] }
 0x121   :  { %v4300_v8 = vpop.permute.xlu0 %1245  ;;  %v4302_v9 = vpop.permute.xlu1 %1049 }
 0x122   :  { %7068 = vst [vmem:[#allocation29_spill] sm:$0xff] %v4300_v8 }
 0x123   :  { %350 = vperm.xlu0 %3689, %v4198_v40  }
 0x124   :  { %1669 = vperm.xlu1 %3668, %v4219_v45   ;;  %v234_v45 = vld [vmem:[#allocation2 + $0x4] sm:$0xff] }
 0x125   :  { %v4306_v10 = vpop.permute.xlu0 %917  ;;  %v4308_v11 = vpop.permute.xlu1 %1157 }
 0x126   :  { %7069 = vst [vmem:[#allocation30_spill] sm:$0xff] %v4306_v10 }
 0x127   :  { %713 = vperm.xlu0 %3689, %v4202_v41  }
 0x128   :  { %3669 = vset.pattern.permute.xlu1 %v6810_v15 }
 0x129   :  { %v4314_v14 = vpop.permute.xlu0 %1241  ;;  %283 = vperm.xlu1 %3669, %v4311_v13  }
 0x12a   :  { %7070 = vst [vmem:[#allocation31_spill] sm:$0xff] %v4314_v14  ;;  %v4317_v16 = vpop.permute.xlu1 %1465  ;;  %v7092_v14 = vmov 1  }
 0x12b   :  { %587 = vperm.xlu0 %3689, %v4207_v42  }
 0x12d   :  { %v4324_v37 = vpop.permute.xlu0 %913  ;;  %496 = vperm.xlu1 %3669, %v4320_v19  }
 0x12e   :  { %7071 = vst [vmem:[#allocation32_spill] sm:$0xff] %v4324_v37  ;;  %v4327_v43 = vpop.permute.xlu1 %1573 }
 0x12f   :  { %7072 = vst [vmem:[#allocation33_spill] sm:$0xff] %v4327_v43  ;;  %703 = vperm.xlu0 %3689, %v4322_v30   ;;  %v4628_v43 = vld [vmem:[#allocation2 + $0x23] sm:$0xff] }
 0x130   :  { %7159 = vst [vmem:[#allocation117_spill] sm:$0xff] %v4628_v43 }
 0x131   :  { %v4332_v1 = vpop.permute.xlu0 %1237  ;;  %617 = vperm.xlu1 %3669, %v4330_v44  }
 0x132   :  { %7073 = vst [vmem:[#allocation34_spill] sm:$0xff] %v4332_v1 }
 0x133   :  { %698 = vperm.xlu0 %3689, %v234_v45   ;;  %v4335_v42 = vpop.permute.xlu1 %390 }
 0x134   :  { %7074 = vst [vmem:[#allocation35_spill] sm:$0xff] %v4335_v42 }
 0x135   :  { %v4337_v15 = vpop.permute.xlu0 %909  ;;  %3670 = vset.pattern.permute.xlu1 %v6815_v0 }
 0x136   :  { %7075 = vst [vmem:[#allocation36_spill] sm:$0xff] %v4337_v15  ;;  %845 = vperm.xlu1 %3670, %v4311_v13   ;;  %v7082_v15 = vmov 2  }
 0x137   :  { %3694 = vset.pattern.permute.xlu0 %v6817_v22  ;;  %v4342_v37 = vpop.permute.xlu1 %511 }
 0x138   :  { %7076 = vst [vmem:[#allocation37_spill] sm:$0xff] %v4342_v37  ;;  %1469 = vperm.xlu0 %3694, %v4115_v12  }
 0x139   :  { %v4345_v10 = vpop.permute.xlu0 %1233 }
 0x13a   :  { %7077 = vst [vmem:[#allocation38_spill] sm:$0xff] %v4345_v10  ;;  %1033 = vperm.xlu1 %3670, %v4320_v19  }
 0x13b   :  { %v4348_v6 = vpop.permute.xlu1 %753 }
 0x13c   :  { %7078 = vst [vmem:[#allocation39_spill] sm:$0xff] %v4348_v6  ;;  %1385 = vperm.xlu0 %3694, %v4127_v17  }
 0x13d   :  { %v4351_v45 = vpop.permute.xlu0 %905 }
 0x13e   :  { %7079 = vst [vmem:[#allocation40_spill] sm:$0xff] %v4351_v45  ;;  %1141 = vperm.xlu1 %3670, %v4330_v44  }
 0x140   :  { %1381 = vperm.xlu0 %3694, %v4146_v23   ;;  %v4355_v0 = vpop.permute.xlu1 %937 }
 0x141   :  { %7080 = vst [vmem:[#allocation41_spill] sm:$0xff] %v4355_v0  ;;  %v4357_v22 = vpop.permute.xlu0 %1229 }
 0x142   :  { %7081 = vst [vmem:[#allocation42_spill] sm:$0xff] %v4357_v22  ;;  %3671 = vset.pattern.permute.xlu1 %v7082_v15  ;;  %v7086_v22 = vmov 0  }
 0x143   :  { %1369 = vperm.xlu1 %3671, %v4247_v52  }
 0x144   :  { %1677 = vperm.xlu0 %3694, %v4157_v26   ;;  %v4362_v12 = vpop.permute.xlu1 %1045  ;;  %v4378_v26 = vld [vmem:[#allocation2 + $0x20] sm:$0xff] }
 0x145   :  { %7083 = vst [vmem:[#allocation43_spill] sm:$0xff] %v4362_v12  ;;  %v4364_v10 = vpop.permute.xlu0 %1117 }
 0x146   :  { %7084 = vst [vmem:[#allocation44_spill] sm:$0xff] %v4364_v10  ;;  %v4387_v10 = vld [vmem:[#allocation2 + $0x2a] sm:$0xff] }
 0x147   :  { %1557 = vperm.xlu1 %3671, %v4256_v55  }
 0x148   :  { %1457 = vperm.xlu0 %3694, %v4186_v35   ;;  %v4368_v17 = vpop.permute.xlu1 %1261 }
 0x14a   :  { %v4370_v23 = vpop.permute.xlu0 %313 }
 0x14b   :  { %1665 = vperm.xlu1 %3671, %v4264_v58   ;;  %v4393_v58 = vld [vmem:[#allocation2 + $0x33] sm:$0xff] }
 0x14c   :  { %1781 = vperm.xlu0 %3694, %v4196_v39  }
 0x14d   :  { %v4374_v45 = vpop.permute.xlu1 %1461 }
 0x14e   :  { %7085 = vst [vmem:[#allocation45_spill] sm:$0xff] %v4374_v45  ;;  %v4376_v52 = vpop.permute.xlu0 %405 }
 0x14f   :  { %3672 = vset.pattern.permute.xlu1 %v7086_v22 }
 0x150   :  { %1453 = vperm.xlu0 %3694, %v4131_v18   ;;  %278 = vperm.xlu1 %3672, %v4378_v26  }
 0x151   :  { %v4383_v35 = vpop.permute.xlu1 %1569 }
 0x152   :  { %7087 = vst [vmem:[#allocation46_spill] sm:$0xff] %v4383_v35  ;;  %v4385_v55 = vpop.permute.xlu0 %308 }
 0x153   :  { %7088 = vst [vmem:[#allocation47_spill] sm:$0xff] %v4385_v55 }
 0x154   :  { %1777 = vperm.xlu0 %3694, %v4137_v20   ;;  %491 = vperm.xlu1 %3672, %v4387_v10  }
 0x156   :  { %v4391_v39 = vpop.permute.xlu0 %521  ;;  %v4395_v1 = vpop.permute.xlu1 %293 }
 0x157   :  { %7089 = vst [vmem:[#allocation48_spill] sm:$0xff] %v4395_v1 }
 0x158   :  { %1449 = vperm.xlu0 %3694, %v4141_v21   ;;  %612 = vperm.xlu1 %3672, %v4393_v58  }
 0x15a   :  { %v4399_v18 = vpop.permute.xlu0 %516  ;;  %v4401_v3 = vpop.permute.xlu1 %506 }
 0x15b   :  { %7090 = vst [vmem:[#allocation49_spill] sm:$0xff] %v4399_v18  ;;  %7091 = vst [vmem:[#allocation50_spill] sm:$0xff] %v4401_v3 }
 0x15c   :  { %1773 = vperm.xlu0 %3694, %v4148_v24   ;;  %3673 = vset.pattern.permute.xlu1 %v7092_v14 }
 0x15d   :  { %841 = vperm.xlu1 %3673, %v4378_v26  }
 0x15e   :  { %v4406_v20 = vpop.permute.xlu0 %298  ;;  %v4408_v61 = vpop.permute.xlu1 %627 }
 0x15f   :  { %7093 = vst [vmem:[#allocation51_spill] sm:$0xff] %v4406_v20  ;;  %7094 = vst [vmem:[#allocation52_spill] sm:$0xff] %v4408_v61 }
 0x160   :  { %1445 = vperm.xlu0 %3694, %v4153_v25  }
 0x161   :  { %1029 = vperm.xlu1 %3673, %v4387_v10  }
 0x162   :  { %v4412_v21 = vpop.permute.xlu0 %632 }
 0x163   :  { %7095 = vst [vmem:[#allocation53_spill] sm:$0xff] %v4412_v21  ;;  %v4414_v8 = vpop.permute.xlu1 %853 }
 0x164   :  { %7096 = vst [vmem:[#allocation54_spill] sm:$0xff] %v4414_v8  ;;  %1769 = vperm.xlu0 %3694, %v4159_v27  }
 0x165   :  { %1137 = vperm.xlu1 %3673, %v4393_v58  }
 0x166   :  { %v4418_v24 = vpop.permute.xlu0 %385 }
 0x167   :  { %7097 = vst [vmem:[#allocation55_spill] sm:$0xff] %v4418_v24  ;;  %v4420_v1 = vpop.permute.xlu1 %1041 }
 0x168   :  { %7098 = vst [vmem:[#allocation56_spill] sm:$0xff] %v4420_v1  ;;  %1441 = vperm.xlu0 %3694, %v4163_v28  }
 0x169   :  { %3674 = vset.pattern.permute.xlu1 %v7082_v15 }
 0x16a   :  { %v4424_v56 = vpop.permute.xlu0 %748  ;;  %1365 = vperm.xlu1 %3674, %v4311_v13   ;;  %v4442_v13 = vld [vmem:[#allocation2 + $0x18] sm:$0xff] }
 0x16b   :  { %7099 = vst [vmem:[#allocation57_spill] sm:$0xff] %v4424_v56  ;;  %v4427_v25 = vpop.permute.xlu1 %1149  ;;  %7105 = vst [vmem:[#allocation63_spill] sm:$0xff] %v4442_v13  ;;  %v254_v56 = vld [vmem:[#allocation6 + $0xc] sm:$0x7] }
 0x16c   :  { %7100 = vst [vmem:[#allocation58_spill] sm:$0xff] %v4427_v25  ;;  %1765 = vperm.xlu0 %3694, %v4168_v29   ;;  %v249_v25 = vld [vmem:[#allocation3 + $0xc] sm:$0x7] }
 0x16e   :  { %v4430_v8 = vpop.permute.xlu0 %380  ;;  %1553 = vperm.xlu1 %3674, %v4320_v19  }
 0x16f   :  { %7101 = vst [vmem:[#allocation59_spill] sm:$0xff] %v4430_v8 }
 0x170   :  { %1437 = vperm.xlu0 %3694, %v4171_v31   ;;  %v4434_v27 = vpop.permute.xlu1 %1377  ;;  %v4451_v31 = vld [vmem:[#allocation2 + $0x22] sm:$0xff] }
 0x171   :  { %7102 = vst [vmem:[#allocation60_spill] sm:$0xff] %v4434_v27  ;;  %7108 = vst [vmem:[#allocation66_spill] sm:$0xff] %v4451_v31 }
 0x172   :  { %v4436_v24 = vpop.permute.xlu0 %743  ;;  %1661 = vperm.xlu1 %3674, %v4330_v44  }
 0x173   :  { %7103 = vst [vmem:[#allocation61_spill] sm:$0xff] %v4436_v24 }
 0x174   :  { %1761 = vperm.xlu0 %3694, %v4175_v32   ;;  %v4440_v28 = vpop.permute.xlu1 %1565  ;;  %v4457_v32 = vld [vmem:[#allocation2 + $0x2b] sm:$0xff] }
 0x175   :  { %7104 = vst [vmem:[#allocation62_spill] sm:$0xff] %v4440_v28  ;;  %7110 = vst [vmem:[#allocation68_spill] sm:$0xff] %v4457_v32  ;;  %v4521_v28 = vld [vmem:[#allocation2 + $0x10] sm:$0xff] }
 0x176   :  { %v4444_v1 = vpop.permute.xlu0 %375  ;;  %3675 = vset.pattern.permute.xlu1 %v7086_v22  ;;  %7133 = vst [vmem:[#allocation91_spill] sm:$0xff] %v4521_v28 }
 0x177   :  { %7106 = vst [vmem:[#allocation64_spill] sm:$0xff] %v4444_v1  ;;  %273 = vperm.xlu1 %3675, %v4442_v13  }
 0x178   :  { %1433 = vperm.xlu0 %3694, %v4179_v33   ;;  %v4449_v29 = vpop.permute.xlu1 %1673 }
 0x179   :  { %7107 = vst [vmem:[#allocation65_spill] sm:$0xff] %v4449_v29 }
 0x17a   :  { %v4453_v19 = vpop.permute.xlu0 %738 }
 0x17b   :  { %7109 = vst [vmem:[#allocation67_spill] sm:$0xff] %v4453_v19  ;;  %486 = vperm.xlu1 %3675, %v4451_v31  }
 0x17c   :  { %1757 = vperm.xlu0 %3694, %v4182_v34  }
 0x17d   :  { %v4459_v44 = vpop.permute.xlu1 %288 }
 0x17e   :  { %7111 = vst [vmem:[#allocation69_spill] sm:$0xff] %v4459_v44  ;;  %v4461_v8 = vpop.permute.xlu0 %370  ;;  %v210_v44 = vld [vmem:[#allocation2 + $0x2] sm:$0xff] }
 0x17f   :  { %7112 = vst [vmem:[#allocation70_spill] sm:$0xff] %v4461_v8  ;;  %607 = vperm.xlu1 %3675, %v4457_v32  }
 0x180   :  { %1429 = vperm.xlu0 %3694, %v4188_v36  }
 0x181   :  { %v4465_v33 = vpop.permute.xlu1 %501 }
 0x182   :  { %7113 = vst [vmem:[#allocation71_spill] sm:$0xff] %v4465_v33  ;;  %v4467_v1 = vpop.permute.xlu0 %733  ;;  %v316_v33 = vlaneseq }
 0x183   :  { %7114 = vst [vmem:[#allocation72_spill] sm:$0xff] %v4467_v1  ;;  %3676 = vset.pattern.permute.xlu1 %v7092_v14 }
 0x184   :  { %1753 = vperm.xlu0 %3694, %v4193_v38   ;;  %837 = vperm.xlu1 %3676, %v4442_v13   ;;  %v4579_v13 = vld [vmem:[#allocation2 + $0x1a] sm:$0xff] }
 0x185   :  { %v4472_v34 = vpop.permute.xlu1 %622  ;;  %7149 = vst [vmem:[#allocation107_spill] sm:$0xff] %v4579_v13 }
 0x186   :  { %7115 = vst [vmem:[#allocation73_spill] sm:$0xff] %v4472_v34  ;;  %v4474_v19 = vpop.permute.xlu0 %365 }
 0x187   :  { %7116 = vst [vmem:[#allocation74_spill] sm:$0xff] %v4474_v19 }
 0x188   :  { %1425 = vperm.xlu0 %3694, %v4198_v40   ;;  %1025 = vperm.xlu1 %3676, %v4451_v31  }
 0x18a   :  { %v4478_v8 = vpop.permute.xlu0 %728  ;;  %v4480_v36 = vpop.permute.xlu1 %849 }
 0x18b   :  { %7117 = vst [vmem:[#allocation75_spill] sm:$0xff] %v4478_v8  ;;  %7118 = vst [vmem:[#allocation76_spill] sm:$0xff] %v4480_v36  ;;  %v251_v36 = vld [vmem:[#allocation6] sm:$0x7] }
 0x18c   :  { %1749 = vperm.xlu0 %3694, %v4202_v41   ;;  %1133 = vperm.xlu1 %3676, %v4457_v32   ;;  %v4495_v41 = vshrl.u32 %v316_v33, 7  ;;  %v253_v33 = vld [vmem:[#allocation6 + $0x8] sm:$0x7] }
 0x18e   :  { %v4484_v38 = vpop.permute.xlu0 %360  ;;  %v4486_v1 = vpop.permute.xlu1 %1037  ;;  %7123 = vst [vmem:[#allocation81_spill] sm:$0xff] %v4495_v41  ;;  %v4507_v34 = vsub.s32 0, %v4495_v41  ;;  %v4517_v27 = vsub.s32 2, %v4495_v41 }
 0x18f   :  { %7119 = vst [vmem:[#allocation77_spill] sm:$0xff] %v4484_v38  ;;  %7120 = vst [vmem:[#allocation78_spill] sm:$0xff] %v4486_v1  ;;  %v252_v1 = vld [vmem:[#allocation6 + $0x4] sm:$0x7] }
 0x190   :  { %1529 = vperm.xlu0 %3694, %v210_v44   ;;  %3677 = vset.pattern.permute.xlu1 %v7082_v15  ;;  %v246_v44 = vld [vmem:[#allocation3] sm:$0x7]  ;;  %7127 = vst [vmem:[#allocation85_spill] sm:$0xff] %v4507_v34  ;;  %7131 = vst [vmem:[#allocation89_spill] sm:$0xff] %v4517_v27  ;;  %v4575_v45 = vrot.slane %v251_v36, %v4507_v34  ;;  %v4585_v6 = vrot.slane %v254_v56, %v4507_v34 }
 0x191   :  { %1361 = vperm.xlu1 %3677, %v4378_v26   ;;  %v4504_v26 = vsub.s32 1, %v4495_v41  ;;  %v4572_v35 = vrot.slane %v246_v44, %v4507_v34  ;;  %v4591_v12 = vrot.slane %v252_v1, %v4517_v27  ;;  %v4603_v42 = vrot.slane %v253_v33, %v4507_v34 }
 0x192   :  { %v4490_v40 = vpop.permute.xlu0 %723  ;;  %v4492_v19 = vpop.permute.xlu1 %1145  ;;  %7147 = vst [vmem:[#allocation105_spill] sm:$0xff] %v4575_v45 }
 0x193   :  { %7121 = vst [vmem:[#allocation79_spill] sm:$0xff] %v4490_v40  ;;  %7122 = vst [vmem:[#allocation80_spill] sm:$0xff] %v4492_v19  ;;  %v247_v40 = vld [vmem:[#allocation3 + $0x4] sm:$0x7]  ;;  %v4524_v29 = vrot.slane %v246_v44, %v4504_v26  ;;  %v4533_v24 = vrot.slane %v252_v1, %v4504_v26  ;;  %v4542_v32 = vrot.slane %v249_v25, %v4504_v26 }
 0x194   :  { %1741 = vperm.xlu0 %3694, %v4322_v30   ;;  %7126 = vst [vmem:[#allocation84_spill] sm:$0xff] %v4504_v26  ;;  %v4536_v41 = vrot.slane %v247_v40, %v4507_v34  ;;  %v4545_v61 = vrot.slane %v254_v56, %v4504_v26  ;;  %v4554_v20 = vrot.slane %v253_v33, %v4504_v26  ;;  %7146 = vst [vmem:[#allocation104_spill] sm:$0xff] %v4572_v35 }
 0x195   :  { %1549 = vperm.xlu1 %3677, %v4387_v10   ;;  %v248_v10 = vld [vmem:[#allocation3 + $0x8] sm:$0x7]  ;;  %7134 = vst [vmem:[#allocation92_spill] sm:$0xff] %v4524_v29  ;;  %7137 = vst [vmem:[#allocation95_spill] sm:$0xff] %v4533_v24  ;;  %v4588_v15 = vrot.slane %v247_v40, %v4517_v27 }
 0x196   :  { %v4498_v8 = vpop.permute.xlu0 %355  ;;  %7138 = vst [vmem:[#allocation96_spill] sm:$0xff] %v4536_v41  ;;  %7140 = vst [vmem:[#allocation98_spill] sm:$0xff] %v4545_v61  ;;  %v4551_v3 = vrot.slane %v248_v10, %v4504_v26 }
 0x197   :  { %7124 = vst [vmem:[#allocation82_spill] sm:$0xff] %v4498_v8  ;;  %v4500_v38 = vpop.permute.xlu1 %1373  ;;  %v4512_v8 = vld [vmem:[#allocation3 + $0x10] sm:$0x7]  ;;  %7143 = vst [vmem:[#allocation101_spill] sm:$0xff] %v4554_v20 }
 0x198   :  { %7125 = vst [vmem:[#allocation83_spill] sm:$0xff] %v4500_v38  ;;  %3698 = vset.pattern.permute.xlu0 %v7092_v14  ;;  %7129 = vst [vmem:[#allocation87_spill] sm:$0xff] %v4512_v8  ;;  %v4514_v38 = vld [vmem:[#allocation6 + $0x10] sm:$0x7]  ;;  %v4558_v31 = vrot.slane %v4512_v8, %v4504_v26 }
 0x199   :  { %1657 = vperm.xlu1 %3677, %v4393_v58   ;;  %7130 = vst [vmem:[#allocation88_spill] sm:$0xff] %v4514_v38  ;;  %v4527_v58 = vrot.slane %v251_v36, %v4504_v26  ;;  %7142 = vst [vmem:[#allocation100_spill] sm:$0xff] %v4551_v3  ;;  %v4562_v18 = vrot.slane %v4514_v38, %v4504_v26 }
 0x19a   :  { %v4510_v30 = vpop.permute.xlu0 %718  ;;  %7144 = vst [vmem:[#allocation102_spill] sm:$0xff] %v4558_v31  ;;  %7150 = vst [vmem:[#allocation108_spill] sm:$0xff] %v4588_v15 }
 0x19b   :  { %7128 = vst [vmem:[#allocation86_spill] sm:$0xff] %v4510_v30  ;;  %v4519_v19 = vpop.permute.xlu1 %1561  ;;  %7135 = vst [vmem:[#allocation93_spill] sm:$0xff] %v4527_v58  ;;  %v4530_v30 = vrot.slane %v247_v40, %v4504_v26  ;;  %v4582_v26 = vrot.slane %v249_v25, %v4507_v34  ;;  %v903_v37 = vadd.f32 %v4527_v58, %v4229_v46 }
 0x19c   :  { %7132 = vst [vmem:[#allocation90_spill] sm:$0xff] %v4519_v19  ;;  %v4539_v19 = vrot.slane %v252_v1, %v4507_v34  ;;  %7145 = vst [vmem:[#allocation103_spill] sm:$0xff] %v4562_v18  ;;  %v982_v1 = vadd.f32 %v4533_v24, %v4232_v47 }
 0x19d   :  { %7136 = vst [vmem:[#allocation94_spill] sm:$0xff] %v4530_v30  ;;  %3678 = vset.pattern.permute.xlu1 %v7086_v22  ;;  %v4566_v22 = vrot.slane %v246_v44, %v4517_v27  ;;  %7151 = vst [vmem:[#allocation109_spill] sm:$0xff] %v4591_v12  ;;  %v4594_v44 = vrot.slane %v248_v10, %v4517_v27  ;;  %v966_v40 = vadd.f32 %v4530_v30, %v4232_v47 }
 0x19e   :  { %7139 = vst [vmem:[#allocation97_spill] sm:$0xff] %v4539_v19  ;;  %v4548_v21 = vpop.permute.xlu0 %350  ;;  %268 = vperm.xlu1 %3678, %v4521_v28   ;;  %7155 = vst [vmem:[#allocation113_spill] sm:$0xff] %v4603_v42  ;;  %v4626_v47 = vrot.slane %v4514_v38, %v4507_v34  ;;  %v1070_v12 = vadd.f32 %v4551_v3, %v4302_v9  ;;  %v1087_v38 = vadd.f32 %v4554_v20, %v4260_v57 }
 0x19f   :  { %7141 = vst [vmem:[#allocation99_spill] sm:$0xff] %v4548_v21  ;;  %v4569_v21 = vrot.slane %v251_v36, %v4517_v27  ;;  %v4577_v55 = vpop.permute.xlu1 %1669  ;;  %7152 = vst [vmem:[#allocation110_spill] sm:$0xff] %v4594_v44  ;;  %v4597_v36 = vrot.slane %v253_v33, %v4517_v27  ;;  %v886_v44 = vadd.f32 %v4524_v29, %v4252_v54 }
 0x1a0   :  { %7148 = vst [vmem:[#allocation106_spill] sm:$0xff] %v4577_v55  ;;  %v4600_v55 = vrot.slane %v248_v10, %v4507_v34  ;;  %v967_v10 = vadd.f32 %v4530_v30, %v4236_v48  ;;  %v983_v33 = vadd.f32 %v4533_v24, %v4236_v48  ;;  %7158 = vst [vmem:[#allocation116_spill] sm:$0xff] %v4626_v47 }
 0x1a1   :  { %7153 = vst [vmem:[#allocation111_spill] sm:$0xff] %v4597_v36  ;;  %v902_v36 = vadd.f32 %v4527_v58, %v4252_v54  ;;  %v887_v54 = vadd.f32 %v4524_v29, %v4229_v46  ;;  %v1086_v48 = vadd.f32 %v4554_v20, %v4302_v9  ;;  %v4645_v47 = vrot.slane %v249_v25, %v4517_v27 }
 0x1a2   :  { %7154 = vst [vmem:[#allocation112_spill] sm:$0xff] %v4600_v55  ;;  %v4605_v0 = vpop.permute.xlu0 %713  ;;  %481 = vperm.xlu1 %3678, %v4579_v13   ;;  %v4654_v15 = vadd.f32 %v4530_v30, %v4238_v49  ;;  %v4658_v9 = vadd.f32 %v4533_v24, %v4238_v49  ;;  %v1007_v25 = vmax.f32 %v903_v37, %v983_v33 }
 0x1a3   :  { %7156 = vst [vmem:[#allocation114_spill] sm:$0xff] %v4605_v0  ;;  %v4622_v0 = vrot.slane %v4512_v8, %v4507_v34  ;;  %v1071_v34 = vadd.f32 %v4551_v3, %v4260_v57  ;;  %v1006_v3 = vmax.f32 %v902_v36, %v982_v1  ;;  %v995_v57 = vmin.f32 %v887_v54, %v967_v10 }
 0x1a4   :  { %v4638_v8 = vpop.permute.xlu1 %283  ;;  %v1190_v49 = vadd.f32 %v4545_v61, %v4249_v53  ;;  %v4677_v37 = vadd.f32 %v4536_v41, %v4243_v51  ;;  %v4681_v1 = vadd.f32 %v4539_v19, %v4243_v51  ;;  %v4685_v10 = vmax.f32 %v1007_v25, %v1087_v38 }
 0x1a5   :  { %7157 = vst [vmem:[#allocation115_spill] sm:$0xff] %v4622_v0  ;;  %7160 = vst [vmem:[#allocation118_spill] sm:$0xff] %v4638_v8  ;;  %v4648_v0 = vrot.slane %v254_v56, %v4517_v27  ;;  %v994_v8 = vmin.f32 %v886_v44, %v966_v40  ;;  %v4663_v56 = vadd.f32 %v4524_v29, %v4241_v50 }
 0x1a6   :  { %v4650_v46 = vpop.permute.xlu0 %587  ;;  %602 = vperm.xlu1 %3678, %v4628_v43   ;;  %v1110_v36 = vmax.f32 %v1006_v3, %v1086_v48  ;;  %v347_v3 = vadd.f32 %v4575_v45, %v4370_v23  ;;  %v1278_v51 = vadd.f32 %v4558_v31, %v4266_v59  ;;  %v4704_v38 = vadd.f32 %v4566_v22, %v4270_v60 }
 0x1a7   :  { %7161 = vst [vmem:[#allocation119_spill] sm:$0xff] %v4648_v0  ;;  %7162 = vst [vmem:[#allocation120_spill] sm:$0xff] %v4650_v46  ;;  %v4667_v46 = vadd.f32 %v4527_v58, %v4241_v50  ;;  %v1174_v0 = vadd.f32 %v4542_v32, %v4249_v53  ;;  %v1098_v44 = vmin.f32 %v994_v8, %v1070_v12 }
 0x1a8   :  { %v4673_v40 = vpop.permute.xlu1 %496  ;;  %v4683_v50 = vmin.f32 %v995_v57, %v1071_v34  ;;  %v331_v53 = vadd.f32 %v4572_v35, %v4370_v23  ;;  %v423_v8 = vadd.f32 %v4536_v41, %v4376_v52  ;;  %v439_v12 = vadd.f32 %v4539_v19, %v4376_v52 }
 0x1a9   :  { %7163 = vst [vmem:[#allocation121_spill] sm:$0xff] %v4673_v40  ;;  %v1294_v34 = vadd.f32 %v4562_v18, %v4266_v59  ;;  %v4708_v23 = vadd.f32 %v4569_v21, %v4270_v60  ;;  %v421_v52 = vadd.f32 %v4536_v41, %v4283_v2  ;;  %v437_v54 = vadd.f32 %v4539_v19, %v4283_v2 }
 0x1aa   :  { %v4687_v33 = vpop.permute.xlu0 %703  ;;  %3679 = vset.pattern.permute.xlu1 %v7092_v14  ;;  %v1202_v48 = vmin.f32 %v1098_v44, %v1174_v0  ;;  %v1214_v57 = vmax.f32 %v1110_v36, %v1190_v49  ;;  %v329_v59 = vadd.f32 %v4572_v35, %v4277_v62  ;;  %v4723_v60 = vadd.f32 %v4524_v29, %v4297_v7  ;;  %v7182_v29 = vld [vmem:[#allocation100_spill] sm:$0xff]  ;;  %v7187_v14 = vld [vmem:[#allocation63_spill] sm:$0xff] }
 0x1ab   :  { %7164 = vst [vmem:[#allocation122_spill] sm:$0xff] %v4687_v33  ;;  %833 = vperm.xlu1 %3679, %v4521_v28   ;;  %v345_v33 = vadd.f32 %v4575_v45, %v4277_v62  ;;  %v4727_v40 = vadd.f32 %v4527_v58, %v4297_v7  ;;  %v451_v0 = vmin.f32 %v331_v53, %v423_v8 }
 0x1ac   :  { %v4715_v25 = vpop.permute.xlu1 %617  ;;  %v463_v2 = vmax.f32 %v347_v3, %v439_v12  ;;  %v539_v49 = vadd.f32 %v4600_v55, %v4391_v39  ;;  %v555_v44 = vadd.f32 %v4603_v42, %v4391_v39  ;;  %v4737_v62 = vadd.f32 %v4558_v31, %v4279_v63 }
 0x1ad   :  { %7165 = vst [vmem:[#allocation123_spill] sm:$0xff] %v4715_v25  ;;  %v4741_v36 = vadd.f32 %v4562_v18, %v4279_v63  ;;  %v1175_v7 = vadd.f32 %v4542_v32, %v4308_v11  ;;  %v1191_v53 = vadd.f32 %v4545_v61, %v4308_v11  ;;  %v449_v3 = vmin.f32 %v329_v59, %v421_v52 }
 0x1ae   :  { %v4729_v28 = vpop.permute.xlu0 %698  ;;  %v461_v8 = vmax.f32 %v345_v33, %v437_v54  ;;  %v1306_v12 = vmin.f32 %v1202_v48, %v1278_v51  ;;  %v1318_v39 = vmax.f32 %v1214_v57, %v1294_v34  ;;  %v671_v25 = vadd.f32 %v4585_v6, %v4289_v4 }
 0x1af   :  { %7166 = vst [vmem:[#allocation124_spill] sm:$0xff] %v4729_v28  ;;  %7167 = vst [vmem:[#allocation125_spill] sm:$0xff] %v4741_v36  ;;  %1021 = vperm.xlu1 %3679, %v4579_v13   ;;  %v655_v28 = vadd.f32 %v4582_v26, %v4289_v4  ;;  %v4754_v63 = vadd.f32 %v4558_v31, %v4291_v5  ;;  %v4758_v58 = vadd.f32 %v4562_v18, %v4291_v5  ;;  %v7181_v13 = vld [vmem:[#allocation43_spill] sm:$0xff] }
 0x1b0   :  { %v993_v33 = vmin.f32 %v4723_v60, %v4654_v15  ;;  %v1005_v51 = vmax.f32 %v4727_v40, %v4658_v9  ;;  %v567_v34 = vmin.f32 %v451_v0, %v539_v49  ;;  %v579_v52 = vmax.f32 %v463_v2, %v555_v44  ;;  %v7171_v15 = vld [vmem:[#allocation108_spill] sm:$0xff]  ;;  %v7172_v9 = vld [vmem:[#allocation109_spill] sm:$0xff]  ;;  %v7176_v2 = vld [vmem:[#allocation110_spill] sm:$0xff] }
 0x1b1   :  { %7168 = vst [vmem:[#allocation126_spill] sm:$0xff] %v4754_v63  ;;  %7169 = vst [vmem:[#allocation127_spill] sm:$0xff] %v4758_v58  ;;  %v4760_v11 = vpop.permute.xlu1 %845  ;;  %v1203_v4 = vmin.f32 %v4683_v50, %v1175_v7  ;;  %v1215_v48 = vmax.f32 %v4685_v10, %v1191_v53  ;;  %v1279_v57 = vadd.f32 %v4558_v31, %v4368_v17  ;;  %v7173_v60 = vld [vmem:[#allocation37_spill] sm:$0xff]  ;;  %v7183_v58 = vmov 2  }
 0x1b2   :  { %7170 = vst [vmem:[#allocation128_spill] sm:$0xff] %v4760_v11  ;;  %v1295_v5 = vadd.f32 %v4562_v18, %v4368_v17  ;;  %v4775_v59 = vadd.f32 %v7171_v15, %v4317_v16  ;;  %v4779_v40 = vadd.f32 %v7172_v9, %v4317_v16  ;;  %v537_v50 = vadd.f32 %v4600_v55, %v7173_v60  ;;  %v7175_v0 = vld [vmem:[#allocation33_spill] sm:$0xff]  ;;  %v7180_v11 = vld [vmem:[#allocation35_spill] sm:$0xff] }
 0x1b3   :  { %v1470_v54 = vpop.permute.xlu0 %1469  ;;  %1129 = vperm.xlu1 %3679, %v4628_v43   ;;  %v4783_v10 = vadd.f32 %v1318_v39, %v1306_v12  ;;  %v4787_v49 = vadd.f32 %v7176_v2, %v7175_v0  ;;  %v553_v17 = vadd.f32 %v4603_v42, %v7173_v60  ;;  %v7177_v44 = vld [vmem:[#allocation41_spill] sm:$0xff]  ;;  %v7179_v12 = vld [vmem:[#allocation111_spill] sm:$0xff]  ;;  %v4807_v18 = vadd.f32 %v4536_v41, %v7180_v11 }
 0x1b4   :  { %v4793_v7 = vadd.f32 %v4530_v30, %v7177_v44  ;;  %v4797_v16 = vadd.f32 %v4533_v24, %v7177_v44  ;;  %v4803_v39 = vadd.f32 %v7179_v12, %v7175_v0  ;;  %v683_v31 = vmin.f32 %v567_v34, %v655_v28  ;;  %v7184_v28 = vld [vmem:[#allocation39_spill] sm:$0xff] }
 0x1b5   :  { %7174 = vst [vmem:[#allocation37_spill] sm:$0xff] %v4783_v10  ;;  %v4799_v53 = vpop.permute.xlu1 %1033  ;;  %v695_v60 = vmax.f32 %v579_v52, %v671_v25  ;;  %v1069_v30 = vadd.f32 %v7182_v29, %v7181_v13  ;;  %v1085_v44 = vadd.f32 %v4554_v20, %v7181_v13  ;;  %v1307_v24 = vmin.f32 %v1203_v4, %v1279_v57  ;;  %v7185_v25 = vld [vmem:[#allocation115_spill] sm:$0xff]  ;;  %v7186_v52 = vld [vmem:[#allocation116_spill] sm:$0xff] }
 0x1b6   :  { %7178 = vst [vmem:[#allocation33_spill] sm:$0xff] %v4799_v53  ;;  %v1319_v53 = vmax.f32 %v1215_v48, %v1295_v5  ;;  %v4818_v0 = vadd.f32 %v4539_v19, %v7180_v11  ;;  %v4820_v41 = vmin.f32 %v449_v3, %v537_v50  ;;  %v771_v34 = vadd.f32 %v7185_v25, %v7184_v28  ;;  %v7188_v11 = vld [vmem:[#allocation47_spill] sm:$0xff] }
 0x1b7   :  { %v4809_v43 = vpop.permute.xlu0 %1385  ;;  %3680 = vset.pattern.permute.xlu1 %v7183_v58  ;;  %v787_v63 = vadd.f32 %v7186_v52, %v7184_v28  ;;  %v4827_v10 = vmax.f32 %v461_v8, %v553_v17  ;;  %v330_v3 = vadd.f32 %v4572_v35, %v7188_v11  ;;  %v7190_v5 = vld [vmem:[#allocation87_spill] sm:$0xff]  ;;  %v4847_v13 = vmin.f32 %v993_v33, %v1069_v30  ;;  %v7192_v58 = vld [vmem:[#allocation45_spill] sm:$0xff]  ;;  %v7195_v33 = vld [vmem:[#allocation66_spill] sm:$0xff] }
 0x1b8   :  { %1357 = vperm.xlu1 %3680, %v7187_v14   ;;  %v4841_v50 = vrot.slane %v7190_v5, %v4517_v27  ;;  %v7191_v14 = vld [vmem:[#allocation88_spill] sm:$0xff]  ;;  %v799_v17 = vmin.f32 %v683_v31, %v771_v34  ;;  %v4849_v4 = vmax.f32 %v1005_v51, %v1085_v44  ;;  %v346_v19 = vadd.f32 %v4575_v45, %v7188_v11  ;;  %v7194_v30 = vld [vmem:[#allocation49_spill] sm:$0xff] }
 0x1b9   :  { %v4835_v48 = vpop.permute.xlu1 %1141  ;;  %v4845_v8 = vrot.slane %v7191_v14, %v4517_v27  ;;  %v811_v28 = vmax.f32 %v695_v60, %v787_v63  ;;  %v4855_v36 = vadd.f32 %v7171_v15, %v7192_v58  ;;  %v4859_v5 = vadd.f32 %v7172_v9, %v7192_v58  ;;  %v7193_v14 = vld [vmem:[#allocation46_spill] sm:$0xff]  ;;  %v7196_v58 = vld [vmem:[#allocation51_spill] sm:$0xff] }
 0x1ba   :  { %7189 = vst [vmem:[#allocation41_spill] sm:$0xff] %v4835_v48  ;;  %v1331_v48 = vadd.f32 %v1319_v53, %v1307_v24  ;;  %v4863_v31 = vadd.f32 %v7176_v2, %v7193_v14  ;;  %v538_v63 = vadd.f32 %v4600_v55, %v7194_v30  ;;  %v4870_v24 = vadd.f32 %v7179_v12, %v7193_v14  ;;  %v7199_v12 = vld [vmem:[#allocation53_spill] sm:$0xff] }
 0x1bb   :  { %v4837_v57 = vpop.permute.xlu0 %1381  ;;  %v450_v51 = vmin.f32 %v330_v3, %v4677_v37  ;;  %v554_v53 = vadd.f32 %v4603_v42, %v7194_v30  ;;  %v328_v60 = vadd.f32 %v4572_v35, %v7196_v58  ;;  %v4879_v44 = vadd.f32 %v4575_v45, %v7196_v58  ;;  %v7198_v3 = vld [vmem:[#allocation50_spill] sm:$0xff] }
 0x1bc   :  { %1545 = vperm.xlu1 %3680, %v7195_v33   ;;  %v1487_v34 = vadd.f32 %v7171_v15, %v1470_v54  ;;  %v1503_v11 = vadd.f32 %v7172_v9, %v1470_v54  ;;  %v823_v27 = vadd.f32 %v811_v28, %v799_v17  ;;  %v462_v37 = vmax.f32 %v346_v19, %v4681_v1  ;;  %v7200_v54 = vld [vmem:[#allocation52_spill] sm:$0xff] }
 0x1bd   :  { %v536_v30 = vadd.f32 %v4600_v55, %v7198_v3  ;;  %v654_v35 = vadd.f32 %v4582_v26, %v7199_v12  ;;  %v670_v58 = vadd.f32 %v4585_v6, %v7199_v12  ;;  %v566_v45 = vmin.f32 %v450_v51, %v538_v63  ;;  %v7201_v19 = vld [vmem:[#allocation68_spill] sm:$0xff]  ;;  %v7202_v55 = vld [vmem:[#allocation57_spill] sm:$0xff] }
 0x1be   :  { %v4883_v33 = vpop.permute.xlu1 %1369  ;;  %v552_v15 = vadd.f32 %v4603_v42, %v7198_v3  ;;  %v669_v17 = vadd.f32 %v4585_v6, %v7200_v54  ;;  %v578_v1 = vmax.f32 %v462_v37, %v554_v53  ;;  %v448_v28 = vmin.f32 %v328_v60, %v4807_v18  ;;  %v4912_v53 = vld [vmem:[#allocation2 + $0x8] sm:$0xff] }
 0x1bf   :  { %7197 = vst [vmem:[#allocation35_spill] sm:$0xff] %v4883_v33  ;;  %v1678_v14 = vpop.permute.xlu0 %1677  ;;  %v653_v33 = vadd.f32 %v4582_v26, %v7200_v54  ;;  %v770_v9 = vadd.f32 %v7185_v25, %v7202_v55  ;;  %v786_v12 = vadd.f32 %v7186_v52, %v7202_v55  ;;  %v460_v63 = vmax.f32 %v4879_v44, %v4818_v0  ;;  %v7204_v44 = vld [vmem:[#allocation119_spill] sm:$0xff] }
 0x1c0   :  { %1653 = vperm.xlu1 %3680, %v7201_v19   ;;  %v1515_v51 = vmin.f32 %v4704_v38, %v1487_v34  ;;  %v1527_v3 = vmax.f32 %v4708_v23, %v1503_v11  ;;  %v1343_v18 = vadd.f32 %v1331_v48, %v823_v27  ;;  %v682_v60 = vmin.f32 %v566_v45, %v654_v35  ;;  %v7206_v45 = vld [vmem:[#allocation58_spill] sm:$0xff] }
 0x1c1   :  { %v694_v37 = vmax.f32 %v578_v1, %v670_v58  ;;  %v1406_v19 = vadd.f32 %v4566_v22, %v4809_v43  ;;  %v1422_v55 = vadd.f32 %v4569_v21, %v4809_v43  ;;  %v681_v0 = vmin.f32 %v4820_v41, %v653_v33  ;;  %v7207_v43 = vld [vmem:[#allocation56_spill] sm:$0xff]  ;;  %v7208_v1 = vld [vmem:[#allocation61_spill] sm:$0xff] }
 0x1c2   :  { %v4908_v42 = vpop.permute.xlu1 %1557  ;;  %v693_v38 = vmax.f32 %v4827_v10, %v669_v17  ;;  %v1695_v23 = vadd.f32 %v4645_v47, %v1678_v14  ;;  %v1711_v34 = vadd.f32 %v7204_v44, %v1678_v14  ;;  %v7205_v11 = vmov 0   ;;  %v4936_v17 = vld [vmem:[#allocation2 + $0x12] sm:$0xff] }
 0x1c3   :  { %7203 = vst [vmem:[#allocation43_spill] sm:$0xff] %v4908_v42  ;;  %v4910_v54 = vpop.permute.xlu0 %1457  ;;  %v798_v42 = vmin.f32 %v682_v60, %v770_v9  ;;  %v810_v27 = vmax.f32 %v694_v37, %v786_v12  ;;  %v1173_v35 = vadd.f32 %v4542_v32, %v7206_v45  ;;  %v1189_v48 = vadd.f32 %v4545_v61, %v7206_v45 }
 0x1c4   :  { %3681 = vset.pattern.permute.xlu1 %v7205_v11  ;;  %v1068_v41 = vadd.f32 %v7182_v29, %v7207_v43  ;;  %v1084_v10 = vadd.f32 %v4554_v20, %v7207_v43  ;;  %v1619_v33 = vmin.f32 %v1515_v51, %v4787_v49  ;;  %v1631_v14 = vmax.f32 %v1527_v3, %v4803_v39 }
 0x1c5   :  { %263 = vperm.xlu1 %3681, %v4912_v53   ;;  %v769_v12 = vadd.f32 %v7185_v25, %v7208_v1  ;;  %v785_v60 = vadd.f32 %v7186_v52, %v7208_v1  ;;  %v1514_v37 = vmin.f32 %v1406_v19, %v4775_v59  ;;  %v1526_v45 = vmax.f32 %v1422_v55, %v4779_v40 }
 0x1c6   :  { %v4934_v9 = vpop.permute.xlu1 %1665  ;;  %v1723_v43 = vmin.f32 %v1619_v33, %v1695_v23  ;;  %v1735_v11 = vmax.f32 %v1631_v14, %v1711_v34  ;;  %v822_v51 = vadd.f32 %v810_v27, %v798_v42  ;;  %v1201_v3 = vmin.f32 %v4847_v13, %v1173_v35  ;;  %v4957_v34 = vld [vmem:[#allocation2 + $0x1b] sm:$0xff] }
 0x1c7   :  { %v1782_v58 = vpop.permute.xlu0 %1781  ;;  %v1213_v20 = vmax.f32 %v4849_v4, %v1189_v48  ;;  %v4948_v29 = vmin.f32 %v448_v28, %v536_v30  ;;  %v1405_v59 = vadd.f32 %v4566_v22, %v4837_v57  ;;  %v1421_v40 = vadd.f32 %v4569_v21, %v4837_v57  ;;  %7209 = vst [vmem:[#allocation39_spill] sm:$0xff] %v4957_v34 }
 0x1c8   :  { %v1799_v49 = vadd.f32 %v4841_v50, %v1782_v58  ;;  %v1815_v39 = vadd.f32 %v4845_v8, %v1782_v58  ;;  %v7210_v42 = vmin.f32 %v4663_v56, %v4793_v7  ;;  %v4964_v4 = vmax.f32 %v460_v63, %v552_v15  ;;  %v7213_v7 = vld [vmem:[#allocation125_spill] sm:$0xff] }
 0x1c9   :  { %476 = vperm.xlu1 %3681, %v4936_v17   ;;  %v1618_v30 = vmin.f32 %v1514_v37, %v4863_v31  ;;  %v1630_v28 = vmax.f32 %v1526_v45, %v4870_v24  ;;  %v7212_v57 = vmax.f32 %v4667_v46, %v4797_v16  ;;  %v797_v35 = vmin.f32 %v681_v0, %v769_v12  ;;  %v7214_v15 = vld [vmem:[#allocation65_spill] sm:$0xff] }
 0x1ca   :  { %v1827_v19 = vmin.f32 %v1723_v43, %v1799_v49  ;;  %v1839_v55 = vmax.f32 %v1735_v11, %v1815_v39  ;;  %v4962_v13 = vmin.f32 %v7210_v42, %v1068_v41  ;;  %v809_v48 = vmax.f32 %v693_v38, %v785_v60  ;;  %v7215_v38 = vld [vmem:[#allocation37_spill] sm:$0xff]  ;;  %v7216_v60 = vld [vmem:[#allocation62_spill] sm:$0xff]  ;;  %v7218_v43 = vld [vmem:[#allocation80_spill] sm:$0xff] }
 0x1cb   :  { %v4955_v23 = vpop.permute.xlu0 %1453  ;;  %v4968_v27 = vpop.permute.xlu1 %278  ;;  %v4973_v11 = vmax.f32 %v7212_v57, %v1084_v10  ;;  %v1305_v56 = vmin.f32 %v1201_v3, %v4737_v62  ;;  %v1317_v41 = vmax.f32 %v1213_v20, %v7213_v7  ;;  %v1694_v63 = vadd.f32 %v4645_v47, %v7214_v15  ;;  %v7223_v57 = vld [vmem:[#allocation109_spill] sm:$0xff] }
 0x1cc   :  { %7211 = vst [vmem:[#allocation115_spill] sm:$0xff] %v4968_v27  ;;  %v1851_v33 = vadd.f32 %v1839_v55, %v1827_v19  ;;  %v1710_v31 = vadd.f32 %v7204_v44, %v7214_v15  ;;  %v1513_v24 = vmin.f32 %v1405_v59, %v4855_v36  ;;  %v1525_v46 = vmax.f32 %v1421_v40, %v4859_v5  ;;  %v7217_v36 = vld [vmem:[#allocation111_spill] sm:$0xff]  ;;  %v7220_v19 = vld [vmem:[#allocation108_spill] sm:$0xff]  ;;  %v7249_v27 = vld [vmem:[#allocation78_spill] sm:$0xff] }
 0x1cd   :  { %597 = vperm.xlu1 %3681, %v4957_v34   ;;  %v1342_v10 = vadd.f32 %v7215_v38, %v822_v51  ;;  %v1722_v14 = vmin.f32 %v1618_v30, %v1694_v63  ;;  %v821_v12 = vadd.f32 %v809_v48, %v797_v35  ;;  %v1589_v37 = vadd.f32 %v7176_v2, %v7216_v60  ;;  %v7222_v30 = vld [vmem:[#allocation60_spill] sm:$0xff]  ;;  %v7224_v63 = vld [vmem:[#allocation73_spill] sm:$0xff] }
 0x1ce   :  { %v1863_v0 = vadd.f32 %v1851_v33, %v1343_v18  ;;  %v1734_v62 = vmax.f32 %v1630_v28, %v1710_v31  ;;  %v1605_v45 = vadd.f32 %v7217_v36, %v7216_v60  ;;  %v1172_v18 = vadd.f32 %v4542_v32, %v7218_v43 }
 0x1cf   :  { %v1778_v16 = vpop.permute.xlu0 %1777  ;;  %v4987_v1 = vpop.permute.xlu1 %491  ;;  %v1188_v49 = vadd.f32 %v4545_v61, %v7218_v43  ;;  %v7219_v3 = vmov 1   ;;  %v1617_v59 = vmin.f32 %v1513_v24, %v1589_v37  ;;  %v1484_v55 = vadd.f32 %v7220_v19, %v4910_v54  ;;  %v7225_v24 = vld [vmem:[#allocation106_spill] sm:$0xff]  ;;  %v7226_v43 = vld [vmem:[#allocation67_spill] sm:$0xff] }
 0x1d0   :  { %v1798_v20 = vadd.f32 %v4841_v50, %v1778_v16  ;;  %v1814_v58 = vadd.f32 %v4845_v8, %v1778_v16  ;;  %v1875_v5 = vmul.f32 0.5, %v1863_v0  ;;  %v1629_v40 = vmax.f32 %v1525_v46, %v1605_v45 }
 0x1d1   :  { %3682 = vset.pattern.permute.xlu1 %v7219_v3  ;;  %v1404_v28 = vadd.f32 %v4566_v22, %v7222_v30  ;;  %v1500_v35 = vadd.f32 %v7223_v57, %v4910_v54  ;;  %v1329_v7 = vadd.f32 %v1317_v41, %v1305_v56  ;;  %v1420_v15 = vadd.f32 %v4569_v21, %v7222_v30 }
 0x1d2   :  { %v1826_v39 = vmin.f32 %v1722_v14, %v1798_v20  ;;  %v1838_v51 = vmax.f32 %v1734_v62, %v1814_v58  ;;  %3498 = vmatprep.subr.mxu0 %v1875_v5  ;;  %829 = vperm.xlu1 %3682, %v4912_v53   ;;  %v652_v31 = vadd.f32 %v4582_v26, %v7224_v63 }
 0x1d3   :  { %v5001_v42 = vpop.permute.xlu0 %1449  ;;  %3499 = vmatpush3.msra.mxu0 %v1875_v5  ;;  %v5007_v33 = vpop.permute.xlu1 %612  ;;  %v1693_v46 = vadd.f32 %v4645_v47, %v7225_v24  ;;  %v1709_v16 = vadd.f32 %v7204_v44, %v7225_v24  ;;  %v668_v54 = vadd.f32 %v4585_v6, %v7224_v63  ;;  %v1200_v0 = vmin.f32 %v4962_v13, %v1172_v18  ;;  %v7233_v24 = vld [vmem:[#allocation94_spill] sm:$0xff] }
 0x1d4   :  { %7221 = vst [vmem:[#allocation116_spill] sm:$0xff] %v5001_v42  ;;  %v1850_v48 = vadd.f32 %v1838_v51, %v1826_v39  ;;  %v1341_v14 = vadd.f32 %v1329_v7, %v821_v12  ;;  %v1212_v56 = vmax.f32 %v4973_v11, %v1188_v49  ;;  %v1512_v41 = vmin.f32 %v1404_v28, %v1484_v55  ;;  %v7229_v55 = vld [vmem:[#allocation126_spill] sm:$0xff]  ;;  %v7230_v28 = vld [vmem:[#allocation127_spill] sm:$0xff] }
 0x1d5   :  { %v1721_v62 = vmin.f32 %v1617_v59, %v1693_v46  ;;  %v1733_v20 = vmax.f32 %v1629_v40, %v1709_v16  ;;  %v1524_v60 = vmax.f32 %v1420_v15, %v1500_v35  ;;  %v768_v39 = vadd.f32 %v7185_v25, %v7226_v43  ;;  %v7234_v16 = vld [vmem:[#allocation95_spill] sm:$0xff] }
 0x1d6   :  { %v1862_v38 = vadd.f32 %v1850_v48, %v1342_v10  ;;  %1017 = vperm.xlu1 %3682, %v4936_v17   ;;  %v784_v13 = vadd.f32 %v7186_v52, %v7226_v43  ;;  %v680_v11 = vmin.f32 %v4948_v29, %v652_v31  ;;  %v7227_v10 = vld [vmem:[#allocation90_spill] sm:$0xff]  ;;  %v692_v49 = vmax.f32 %v4964_v4, %v668_v54  ;;  %v7232_v31 = vld [vmem:[#allocation25_spill] sm:$0xff]  ;;  %v7241_v43 = vld [vmem:[#allocation55_spill] sm:$0xff] }
 0x1d7   :  { %v1774_v58 = vpop.permute.xlu0 %1773  ;;  %v1588_v12 = vadd.f32 %v7176_v2, %v7227_v10  ;;  %v1604_v51 = vadd.f32 %v7217_v36, %v7227_v10  ;;  %v1304_v30 = vmin.f32 %v1200_v0, %v7229_v55  ;;  %v1316_v35 = vmax.f32 %v1212_v56, %v7230_v28  ;;  %v7235_v0 = vld [vmem:[#allocation54_spill] sm:$0xff]  ;;  %v7242_v10 = vld [vmem:[#allocation96_spill] sm:$0xff] }
 0x1d8   :  { %v1797_v37 = vadd.f32 %v4841_v50, %v1774_v58  ;;  %v1813_v45 = vadd.f32 %v4845_v8, %v1774_v58  ;;  %v1874_v5 = vmul.f32 0.5, %v1862_v38  ;;  %v5031_v18 = vpop.permute.xlu1 %841  ;;  %v1692_v4 = vadd.f32 %v4645_v47, %v4934_v9  ;;  %v7236_v38 = vld [vmem:[#allocation92_spill] sm:$0xff] }
 0x1d9   :  { %7228 = vst [vmem:[#allocation63_spill] sm:$0xff] %v5031_v18  ;;  %v1616_v48 = vmin.f32 %v1512_v41, %v1588_v12  ;;  %v1628_v7 = vmax.f32 %v1524_v60, %v1604_v51  ;;  %v1708_v15 = vadd.f32 %v7204_v44, %v4934_v9  ;;  %v963_v46 = vadd.f32 %v7233_v24, %v7232_v31  ;;  %v7240_v9 = vld [vmem:[#allocation104_spill] sm:$0xff] }
 0x1da   :  { %v1825_v59 = vmin.f32 %v1721_v62, %v1797_v37  ;;  %v1837_v40 = vmax.f32 %v1733_v20, %v1813_v45  ;;  %3500 = vmatprep.subr.mxu0 %v1874_v5  ;;  %1125 = vperm.xlu1 %3682, %v4957_v34   ;;  %v979_v54 = vadd.f32 %v7234_v16, %v7232_v31  ;;  %v7238_v62 = vld [vmem:[#allocation93_spill] sm:$0xff]  ;;  %v7239_v45 = vld [vmem:[#allocation48_spill] sm:$0xff]  ;;  %v7243_v51 = vmov 2  }
 0x1db   :  { %3501 = vmatpush3.msra.mxu0 %v1874_v5  ;;  %v5039_v29 = vpop.permute.xlu0 %1445  ;;  %v883_v56 = vadd.f32 %v7236_v38, %v7235_v0  ;;  %v899_v20 = vadd.f32 %v7238_v62, %v7235_v0  ;;  %v796_v58 = vmin.f32 %v680_v11, %v768_v39  ;;  %v808_v60 = vmax.f32 %v692_v49, %v784_v13  ;;  %v7244_v0 = vld [vmem:[#allocation91_spill] sm:$0xff]  ;;  %v7246_v11 = vld [vmem:[#allocation97_spill] sm:$0xff] }
 0x1dc   :  { %7231 = vst [vmem:[#allocation47_spill] sm:$0xff] %v5039_v29  ;;  %v1849_v63 = vadd.f32 %v1837_v40, %v1825_v59  ;;  %v5051_v41 = vpop.permute.xlu1 %1029  ;;  %v327_v5 = vadd.f32 %v7240_v9, %v7239_v45  ;;  %v419_v12 = vadd.f32 %v7242_v10, %v7241_v43  ;;  %v1328_v40 = vadd.f32 %v1316_v35, %v1304_v30 }
 0x1dd   :  { %7237 = vst [vmem:[#allocation87_spill] sm:$0xff] %v5051_v41  ;;  %v1720_v55 = vmin.f32 %v1616_v48, %v1692_v4  ;;  %v1732_v28 = vmax.f32 %v1628_v7, %v1708_v15  ;;  %v991_v13 = vmin.f32 %v883_v56, %v963_v46  ;;  %v435_v49 = vadd.f32 %v7246_v11, %v7241_v43  ;;  %v7247_v4 = vld [vmem:[#allocation71_spill] sm:$0xff]  ;;  %v7248_v15 = vld [vmem:[#allocation112_spill] sm:$0xff]  ;;  %v7252_v56 = vld [vmem:[#allocation113_spill] sm:$0xff] }
 0x1de   :  { %v1861_v37 = vadd.f32 %v1849_v63, %v1341_v14  ;;  %3683 = vset.pattern.permute.xlu1 %v7243_v51  ;;  %v7245_v14 = vld [vmem:[#allocation105_spill] sm:$0xff]  ;;  %v1003_v41 = vmax.f32 %v899_v20, %v979_v54  ;;  %v820_v48 = vadd.f32 %v808_v60, %v796_v58  ;;  %v447_v7 = vmin.f32 %v327_v5, %v419_v12  ;;  %v7253_v54 = vld [vmem:[#allocation107_spill] sm:$0xff] }
 0x1df   :  { %v1770_v59 = vpop.permute.xlu0 %1769  ;;  %1353 = vperm.xlu1 %3683, %v7244_v0   ;;  %v343_v39 = vadd.f32 %v7245_v14, %v7239_v45  ;;  %v7250_v0 = vld [vmem:[#allocation100_spill] sm:$0xff]  ;;  %v7251_v45 = vld [vmem:[#allocation101_spill] sm:$0xff]  ;;  %v551_v43 = vadd.f32 %v7252_v56, %v7247_v4  ;;  %v7254_v58 = vld [vmem:[#allocation123_spill] sm:$0xff] }
 0x1e0   :  { %v1796_v31 = vadd.f32 %v4841_v50, %v1770_v59  ;;  %v1812_v18 = vadd.f32 %v4845_v8, %v1770_v59  ;;  %v5067_v63 = vpop.permute.xlu1 %1137  ;;  %v1873_v29 = vmul.f32 0.5, %v1861_v37  ;;  %v535_v59 = vadd.f32 %v7248_v15, %v7247_v4  ;;  %v7255_v37 = vld [vmem:[#allocation41_spill] sm:$0xff] }
 0x1e1   :  { %v1067_v34 = vadd.f32 %v7250_v0, %v7249_v27  ;;  %v1083_v46 = vadd.f32 %v7251_v45, %v7249_v27  ;;  %v459_v20 = vmax.f32 %v343_v39, %v435_v49  ;;  %v651_v60 = vadd.f32 %v4582_v26, %v7254_v58 }
 0x1e2   :  { %v1824_v30 = vmin.f32 %v1720_v55, %v1796_v31  ;;  %v1836_v35 = vmax.f32 %v1732_v28, %v1812_v18  ;;  %3502 = vmatprep.subr.mxu0 %v1873_v29  ;;  %v1340_v18 = vadd.f32 %v1328_v40, %v820_v48  ;;  %v1171_v5 = vadd.f32 %v4542_v32, %v7255_v37  ;;  %v7258_v48 = vld [vmem:[#allocation83_spill] sm:$0xff] }
 0x1e3   :  { %3503 = vmatpush3.msra.mxu0 %v1873_v29  ;;  %1541 = vperm.xlu1 %3683, %v7253_v54   ;;  %v1187_v12 = vadd.f32 %v4545_v61, %v7255_v37  ;;  %v667_v27 = vadd.f32 %v4585_v6, %v7254_v58  ;;  %v1483_v55 = vadd.f32 %v7220_v19, %v4955_v23  ;;  %v5092_v31 = vpop.permute.xlu0 %1441  ;;  %v7259_v58 = vld [vmem:[#allocation117_spill] sm:$0xff]  ;;  %v7260_v19 = vld [vmem:[#allocation72_spill] sm:$0xff] }
 0x1e4   :  { %v1848_v42 = vadd.f32 %v1836_v35, %v1824_v30  ;;  %v1499_v29 = vadd.f32 %v7223_v57, %v4955_v23  ;;  %7257 = vst [vmem:[#allocation45_spill] sm:$0xff] %v5092_v31  ;;  %v563_v39 = vmin.f32 %v447_v7, %v535_v59  ;;  %v1095_v49 = vmin.f32 %v991_v13, %v1067_v34 }
 0x1e5   :  { %v5090_v40 = vpop.permute.xlu1 %1365  ;;  %v1107_v30 = vmax.f32 %v1003_v41, %v1083_v46  ;;  %v575_v35 = vmax.f32 %v459_v20, %v551_v43  ;;  %v1403_v4 = vadd.f32 %v4566_v22, %v7258_v48  ;;  %v1419_v54 = vadd.f32 %v4569_v21, %v7258_v48  ;;  %v5105_v43 = vld [vmem:[#allocation2] sm:$0xff]  ;;  %v7261_v20 = vld [vmem:[#allocation29_spill] sm:$0xff]  ;;  %v7262_v48 = vld [vmem:[#allocation102_spill] sm:$0xff] }
 0x1e6   :  { %7256 = vst [vmem:[#allocation88_spill] sm:$0xff] %v5090_v40  ;;  %v1860_v28 = vadd.f32 %v1848_v42, %v1340_v18  ;;  %v767_v23 = vadd.f32 %v7185_v25, %v7260_v19  ;;  %v783_v42 = vadd.f32 %v7186_v52, %v7260_v19  ;;  %v1199_v18 = vmin.f32 %v1095_v49, %v1171_v5  ;;  %v7264_v40 = vld [vmem:[#allocation43_spill] sm:$0xff] }
 0x1e7   :  { %1649 = vperm.xlu1 %3683, %v7259_v58   ;;  %v1211_v7 = vmax.f32 %v1107_v30, %v1187_v12  ;;  %v679_v34 = vmin.f32 %v563_v39, %v651_v60  ;;  %v691_v41 = vmax.f32 %v575_v35, %v667_v27  ;;  %v1511_v13 = vmin.f32 %v1403_v4, %v1483_v55  ;;  %v7263_v58 = vld [vmem:[#allocation103_spill] sm:$0xff]  ;;  %v1766_v12 = vpop.permute.xlu0 %1765  ;;  %v5117_v4 = vld [vmem:[#allocation2 + $0xa] sm:$0xff] }
 0x1e8   :  { %v1872_v37 = vmul.f32 0.5, %v1860_v28  ;;  %v1523_v59 = vmax.f32 %v1419_v54, %v1499_v29  ;;  %v1275_v28 = vadd.f32 %v7262_v48, %v7261_v20  ;;  %v1291_v31 = vadd.f32 %v7263_v58, %v7261_v20 }
 0x1e9   :  { %v5103_v46 = vpop.permute.xlu1 %1553  ;;  %v1587_v19 = vadd.f32 %v7176_v2, %v7264_v40  ;;  %v1603_v60 = vadd.f32 %v7217_v36, %v7264_v40  ;;  %v7265_v5 = vmov 0   ;;  %v795_v29 = vmin.f32 %v679_v34, %v767_v23  ;;  %v5124_v23 = vld [vmem:[#allocation2 + $0x13] sm:$0xff] }
 0x1ea   :  { %3504 = vmatprep.subr.mxu0 %v1872_v37  ;;  %v1303_v27 = vmin.f32 %v1199_v18, %v1275_v28  ;;  %v1315_v55 = vmax.f32 %v1211_v7, %v1291_v31  ;;  %v807_v39 = vmax.f32 %v691_v41, %v783_v42  ;;  %v1795_v40 = vadd.f32 %v4841_v50, %v1766_v12  ;;  %v7267_v28 = vld [vmem:[#allocation64_spill] sm:$0xff] }
 0x1eb   :  { %3505 = vmatpush3.msra.mxu0 %v1872_v37  ;;  %3684 = vset.pattern.permute.xlu1 %v7265_v5  ;;  %v1615_v49 = vmin.f32 %v1511_v13, %v1587_v19  ;;  %v1627_v30 = vmax.f32 %v1523_v59, %v1603_v60  ;;  %v1811_v20 = vadd.f32 %v4845_v8, %v1766_v12  ;;  %v7268_v12 = vld [vmem:[#allocation118_spill] sm:$0xff] }
 0x1ec   :  { %258 = vperm.xlu1 %3684, %v5105_v43   ;;  %v1327_v31 = vadd.f32 %v1315_v55, %v1303_v27  ;;  %v819_v41 = vadd.f32 %v807_v39, %v795_v29  ;;  %v417_v19 = vadd.f32 %v7242_v10, %v7267_v28  ;;  %v433_v60 = vadd.f32 %v7246_v11, %v7267_v28 }
 0x1ed   :  { %v1662_v35 = vpop.permute.xlu1 %1661  ;;  %v325_v27 = vadd.f32 %v7240_v9, %v7268_v12  ;;  %v533_v29 = vadd.f32 %v7248_v15, %v4987_v1  ;;  %v549_v39 = vadd.f32 %v7252_v56, %v4987_v1 }
 0x1ee   :  { %v1691_v54 = vadd.f32 %v4645_v47, %v1662_v35  ;;  %v1707_v37 = vadd.f32 %v7204_v44, %v1662_v35  ;;  %v1339_v59 = vadd.f32 %v1327_v31, %v819_v41 }
 0x1ef   :  { %v445_v35 = vmin.f32 %v325_v27, %v417_v19  ;;  %v7273_v27 = vld [vmem:[#allocation26_spill] sm:$0xff] }
 0x1f0   :  { %v1719_v5 = vmin.f32 %v1615_v49, %v1691_v54  ;;  %v1731_v18 = vmax.f32 %v1627_v30, %v1707_v37  ;;  %471 = vperm.xlu1 %3684, %v5117_v4   ;;  %v7269_v37 = vld [vmem:[#allocation79_spill] sm:$0xff] }
 0x1f1   :  { %v561_v31 = vmin.f32 %v445_v35, %v533_v29  ;;  %v7274_v29 = vld [vmem:[#allocation76_spill] sm:$0xff] }
 0x1f2   :  { %v1823_v42 = vmin.f32 %v1719_v5, %v1795_v40  ;;  %v1835_v7 = vmax.f32 %v1731_v18, %v1811_v20  ;;  %v5126_v34 = vpop.permute.xlu1 %273  ;;  %v341_v5 = vadd.f32 %v7245_v14, %v7268_v12  ;;  %v765_v40 = vadd.f32 %v7185_v25, %v7269_v37 }
 0x1f3   :  { %7266 = vst [vmem:[#allocation46_spill] sm:$0xff] %v5126_v34  ;;  %v781_v20 = vadd.f32 %v7186_v52, %v7269_v37 }
 0x1f4   :  { %v1847_v13 = vadd.f32 %v1835_v7, %v1823_v42  ;;  %592 = vperm.xlu1 %3684, %v5124_v23   ;;  %v457_v54 = vmax.f32 %v341_v5, %v433_v60  ;;  %v962_v5 = vadd.f32 %v7233_v24, %v7273_v27 }
 0x1f6   :  { %v5137_v55 = vpop.permute.xlu1 %486  ;;  %v1859_v49 = vadd.f32 %v1847_v13, %v1339_v59  ;;  %v573_v42 = vmax.f32 %v457_v54, %v549_v39  ;;  %v882_v39 = vadd.f32 %v7236_v38, %v7274_v29  ;;  %v7275_v54 = vld [vmem:[#allocation59_spill] sm:$0xff] }
 0x1f7   :  { %v418_v37 = vadd.f32 %v7242_v10, %v7275_v54 }
 0x1f8   :  { %3685 = vset.pattern.permute.xlu1 %v7219_v3  ;;  %v1871_v30 = vmul.f32 0.5, %v1859_v49  ;;  %v978_v49 = vadd.f32 %v7234_v16, %v7273_v27  ;;  %v1170_v27 = vadd.f32 %v4542_v32, %v5067_v63 }
 0x1f9   :  { %825 = vperm.xlu1 %3685, %v5105_v43  }
 0x1fa   :  { %v608_v18 = vpop.permute.xlu1 %607  ;;  %3506 = vmatprep.subr.mxu0 %v1871_v30 }
 0x1fb   :  { %v649_v7 = vadd.f32 %v4582_v26, %v608_v18  ;;  %v665_v1 = vadd.f32 %v4585_v6, %v608_v18  ;;  %3507 = vmatpush3.msra.mxu0 %v1871_v30  ;;  %v898_v30 = vadd.f32 %v7238_v62, %v7274_v29  ;;  %v1186_v29 = vadd.f32 %v4545_v61, %v5067_v63 }
 0x1fd   :  { %v677_v41 = vmin.f32 %v561_v31, %v649_v7  ;;  %v689_v13 = vmax.f32 %v573_v42, %v665_v1  ;;  %1013 = vperm.xlu1 %3685, %v5117_v4   ;;  %v7277_v31 = vld [vmem:[#allocation33_spill] sm:$0xff] }
 0x1fe   :  { %v1066_v42 = vadd.f32 %v7250_v0, %v7277_v31  ;;  %v1082_v7 = vadd.f32 %v7251_v45, %v7277_v31  ;;  %v7278_v1 = vld [vmem:[#allocation121_spill] sm:$0xff]  ;;  %v650_v31 = vadd.f32 %v4582_v26, %v5007_v33 }
 0x1ff   :  { %v793_v59 = vmin.f32 %v677_v41, %v765_v40  ;;  %v805_v28 = vmax.f32 %v689_v13, %v781_v20  ;;  %v5152_v19 = vpop.permute.xlu1 %837  ;;  %v7276_v40 = vld [vmem:[#allocation69_spill] sm:$0xff]  ;;  %v534_v41 = vadd.f32 %v7248_v15, %v7278_v1  ;;  %v550_v13 = vadd.f32 %v7252_v56, %v7278_v1  ;;  %v5198_v1 = vpop.permute.xlu0 %1437 }
 0x200   :  { %7270 = vst [vmem:[#allocation49_spill] sm:$0xff] %v5152_v19  ;;  %v326_v20 = vadd.f32 %v7240_v9, %v7276_v40  ;;  %v342_v18 = vadd.f32 %v7245_v14, %v7276_v40  ;;  %v666_v19 = vadd.f32 %v4585_v6, %v5007_v33  ;;  %7280 = vst [vmem:[#allocation53_spill] sm:$0xff] %v5198_v1 }
 0x201   :  { %1121 = vperm.xlu1 %3685, %v5124_v23   ;;  %v5155_v60 = vadd.f32 %v805_v28, %v793_v59  ;;  %v990_v59 = vmin.f32 %v882_v39, %v962_v5  ;;  %v1002_v28 = vmax.f32 %v898_v30, %v978_v49 }
 0x203   :  { %7271 = vst [vmem:[#allocation66_spill] sm:$0xff] %v5155_v60  ;;  %v5157_v12 = vpop.permute.xlu1 %1025  ;;  %v1094_v39 = vmin.f32 %v990_v59, %v1066_v42  ;;  %v1106_v63 = vmax.f32 %v1002_v28, %v1082_v7  ;;  %v7284_v60 = vld [vmem:[#allocation39_spill] sm:$0xff] }
 0x204   :  { %7272 = vst [vmem:[#allocation51_spill] sm:$0xff] %v5157_v12  ;;  %v7286_v28 = vld [vmem:[#allocation31_spill] sm:$0xff] }
 0x205   :  { %3686 = vset.pattern.permute.xlu1 %v7243_v51  ;;  %v1198_v61 = vmin.f32 %v1094_v39, %v1170_v27  ;;  %v7287_v27 = vmov 0   ;;  %v3715_v39 = vld [vmem:[#allocation2 + $0x2] sm:$0xff] }
 0x206   :  { %1349 = vperm.xlu1 %3686, %v4912_v53   ;;  %v434_v53 = vadd.f32 %v7246_v11, %v7275_v54  ;;  %v446_v54 = vmin.f32 %v326_v20, %v418_v37  ;;  %v7283_v20 = vld [vmem:[#allocation108_spill] sm:$0xff] }
 0x207   :  { %v5169_v35 = vpop.permute.xlu1 %1133 }
 0x208   :  { %v458_v40 = vmax.f32 %v342_v18, %v434_v53  ;;  %v562_v30 = vmin.f32 %v446_v54, %v534_v41  ;;  %v7282_v53 = vld [vmem:[#allocation116_spill] sm:$0xff]  ;;  %v1586_v41 = vadd.f32 %v7176_v2, %v5103_v46  ;;  %v1290_v54 = vadd.f32 %v7263_v58, %v7286_v28 }
 0x209   :  { %v1482_v18 = vadd.f32 %v7283_v20, %v7282_v53  ;;  %v1498_v33 = vadd.f32 %v7223_v57, %v7282_v53 }
 0x20a   :  { %1537 = vperm.xlu1 %3686, %v4936_v17   ;;  %v7281_v17 = vld [vmem:[#allocation75_spill] sm:$0xff]  ;;  %v574_v37 = vmax.f32 %v458_v40, %v550_v13  ;;  %v678_v42 = vmin.f32 %v562_v30, %v650_v31  ;;  %v1602_v13 = vadd.f32 %v7217_v36, %v5103_v46 }
 0x20b   :  { %v766_v5 = vadd.f32 %v7185_v25, %v7281_v17  ;;  %v782_v49 = vadd.f32 %v7186_v52, %v7281_v17  ;;  %v1210_v17 = vmax.f32 %v1106_v63, %v1186_v29  ;;  %v1762_v29 = vpop.permute.xlu0 %1761  ;;  %v5224_v36 = vld [vmem:[#allocation2 + $0x14] sm:$0xff] }
 0x20c   :  { %v5196_v12 = vpop.permute.xlu1 %1361  ;;  %v690_v7 = vmax.f32 %v574_v37, %v666_v19 }
 0x20d   :  { %7279 = vst [vmem:[#allocation50_spill] sm:$0xff] %v5196_v12  ;;  %v7285_v12 = vld [vmem:[#allocation35_spill] sm:$0xff]  ;;  %v1314_v31 = vmax.f32 %v1210_v17, %v1290_v54  ;;  %v794_v63 = vmin.f32 %v678_v42, %v766_v5 }
 0x20e   :  { %1645 = vperm.xlu1 %3686, %v7284_v60   ;;  %v1402_v1 = vadd.f32 %v4566_v22, %v7285_v12  ;;  %v1418_v34 = vadd.f32 %v4569_v21, %v7285_v12  ;;  %v1274_v60 = vadd.f32 %v7262_v48, %v7286_v28  ;;  %v806_v30 = vmax.f32 %v690_v7, %v782_v49 }
 0x210   :  { %v5217_v59 = vpop.permute.xlu1 %1549  ;;  %v1510_v40 = vmin.f32 %v1402_v1, %v1482_v18  ;;  %v1522_v12 = vmax.f32 %v1418_v34, %v1498_v33  ;;  %v1302_v19 = vmin.f32 %v1198_v61, %v1274_v60  ;;  %v1794_v34 = vadd.f32 %v4841_v50, %v1762_v29 }
 0x211   :  { %v1810_v1 = vadd.f32 %v4845_v8, %v1762_v29  ;;  %v818_v42 = vadd.f32 %v806_v30, %v794_v63  ;;  %v548_v63 = vadd.f32 %v7252_v56, %v5137_v55 }
 0x212   :  { %3687 = vset.pattern.permute.xlu1 %v7287_v27  ;;  %v1614_v46 = vmin.f32 %v1510_v40, %v1586_v41  ;;  %v1626_v37 = vmax.f32 %v1522_v12, %v1602_v13  ;;  %v1326_v33 = vadd.f32 %v1314_v31, %v1302_v19  ;;  %v7288_v13 = vld [vmem:[#allocation70_spill] sm:$0xff]  ;;  %v532_v31 = vadd.f32 %v7248_v15, %v5137_v55 }
 0x213   :  { %466 = vperm.xlu1 %3687, %v3715_v39   ;;  %v416_v60 = vadd.f32 %v7242_v10, %v7288_v13  ;;  %v432_v54 = vadd.f32 %v7246_v11, %v7288_v13 }
 0x214   :  { %v1658_v53 = vpop.permute.xlu1 %1657  ;;  %v1338_v41 = vadd.f32 %v1326_v33, %v818_v42 }
 0x215   :  { %v1690_v2 = vadd.f32 %v4645_v47, %v1658_v53  ;;  %v1706_v28 = vadd.f32 %v7204_v44, %v1658_v53 }
 0x217   :  { %v1718_v18 = vmin.f32 %v1614_v46, %v1690_v2  ;;  %v1730_v61 = vmax.f32 %v1626_v37, %v1706_v28  ;;  %708 = vperm.xlu1 %3687, %v5224_v36   ;;  %v7289_v2 = vld [vmem:[#allocation115_spill] sm:$0xff] }
 0x218   :  { %v324_v40 = vadd.f32 %v7240_v9, %v7289_v2  ;;  %v340_v12 = vadd.f32 %v7245_v14, %v7289_v2 }
 0x219   :  { %v1822_v5 = vmin.f32 %v1718_v18, %v1794_v34  ;;  %v1834_v49 = vmax.f32 %v1730_v61, %v1810_v1  ;;  %v5231_v17 = vpop.permute.xlu1 %268  ;;  %v7290_v18 = vld [vmem:[#allocation86_spill] sm:$0xff] }
 0x21a   :  { %v444_v46 = vmin.f32 %v324_v40, %v416_v60  ;;  %v456_v37 = vmax.f32 %v340_v12, %v432_v54  ;;  %v764_v61 = vadd.f32 %v7185_v25, %v7290_v18  ;;  %v780_v55 = vadd.f32 %v7186_v52, %v7290_v18  ;;  %v7294_v60 = vld [vmem:[#allocation27_spill] sm:$0xff]  ;;  %v7295_v40 = vld [vmem:[#allocation128_spill] sm:$0xff] }
 0x21b   :  { %v1846_v7 = vadd.f32 %v1834_v49, %v1822_v5  ;;  %3688 = vset.pattern.permute.xlu1 %v7219_v3  ;;  %v961_v54 = vadd.f32 %v7233_v24, %v7294_v60  ;;  %v977_v2 = vadd.f32 %v7234_v16, %v7294_v60  ;;  %v897_v12 = vadd.f32 %v7238_v62, %v7295_v40 }
 0x21c   :  { %1009 = vperm.xlu1 %3688, %v3715_v39   ;;  %v560_v28 = vmin.f32 %v444_v46, %v532_v31  ;;  %v572_v34 = vmax.f32 %v456_v37, %v548_v63  ;;  %v5275_v31 = vld [vmem:[#allocation2 + $0x3] sm:$0xff]  ;;  %v1169_v37 = vadd.f32 %v4542_v32, %v5169_v35 }
 0x21d   :  { %v5242_v29 = vpop.permute.xlu1 %481  ;;  %v1858_v19 = vadd.f32 %v1846_v7, %v1338_v41  ;;  %v1001_v46 = vmax.f32 %v897_v12, %v977_v2  ;;  %v7301_v2 = vld [vmem:[#allocation34_spill] sm:$0xff] }
 0x21e   :  { %v7302_v12 = vld [vmem:[#allocation110_spill] sm:$0xff] }
 0x21f   :  { %v1870_v30 = vmul.f32 0.5, %v1858_v19 }
 0x220   :  { %1225 = vperm.xlu1 %3688, %v5224_v36  }
 0x221   :  { %v603_v53 = vpop.permute.xlu1 %602  ;;  %3508 = vmatprep.subr.mxu0 %v1870_v30 }
 0x222   :  { %v648_v39 = vadd.f32 %v4582_v26, %v603_v53  ;;  %v664_v1 = vadd.f32 %v4585_v6, %v603_v53  ;;  %3509 = vmatpush3.msra.mxu0 %v1870_v30  ;;  %v7297_v53 = vld [vmem:[#allocation98_spill] sm:$0xff] }
 0x224   :  { %v676_v33 = vmin.f32 %v560_v28, %v648_v39  ;;  %v688_v5 = vmax.f32 %v572_v34, %v664_v1  ;;  %3690 = vset.pattern.permute.xlu1 %v7243_v51  ;;  %v1185_v28 = vadd.f32 %v7297_v53, %v5169_v35  ;;  %v5287_v34 = vpop.permute.xlu0 %1433 }
 0x225   :  { %1345 = vperm.xlu1 %3690, %v5105_v43   ;;  %v881_v43 = vadd.f32 %v7236_v38, %v7295_v40  ;;  %v1273_v40 = vadd.f32 %v7262_v48, %v7301_v2 }
 0x226   :  { %v792_v49 = vmin.f32 %v676_v33, %v764_v61  ;;  %v804_v42 = vmax.f32 %v688_v5, %v780_v55  ;;  %v5257_v7 = vpop.permute.xlu1 %833  ;;  %v7299_v61 = vld [vmem:[#allocation47_spill] sm:$0xff]  ;;  %v7300_v5 = vld [vmem:[#allocation88_spill] sm:$0xff] }
 0x227   :  { %7291 = vst [vmem:[#allocation52_spill] sm:$0xff] %v5257_v7  ;;  %v989_v30 = vmin.f32 %v881_v43, %v961_v54  ;;  %v1481_v55 = vadd.f32 %v7283_v20, %v7299_v61  ;;  %v1497_v33 = vadd.f32 %v7223_v57, %v7299_v61  ;;  %v1417_v35 = vadd.f32 %v4569_v21, %v7300_v5  ;;  %v3716_v61 = vld [vmem:[#allocation2 + $0xc] sm:$0xff] }
 0x228   :  { %v5259_v41 = vadd.f32 %v804_v42, %v792_v49  ;;  %v1401_v49 = vadd.f32 %v4566_v22, %v7300_v5  ;;  %v1289_v43 = vadd.f32 %v7263_v58, %v7301_v2 }
 0x229   :  { %1533 = vperm.xlu1 %3690, %v5117_v4   ;;  %v7296_v4 = vld [vmem:[#allocation87_spill] sm:$0xff] }
 0x22a   :  { %7292 = vst [vmem:[#allocation68_spill] sm:$0xff] %v5259_v41  ;;  %v5262_v13 = vpop.permute.xlu1 %1021  ;;  %v1065_v63 = vadd.f32 %v7250_v0, %v7296_v4 }
 0x22b   :  { %7293 = vst [vmem:[#allocation57_spill] sm:$0xff] %v5262_v13 }
 0x22c   :  { %v1093_v1 = vmin.f32 %v989_v30, %v1065_v63  ;;  %v7303_v63 = vld [vmem:[#allocation111_spill] sm:$0xff]  ;;  %v1758_v30 = vpop.permute.xlu0 %1757 }
 0x22d   :  { %1641 = vperm.xlu1 %3690, %v5124_v23   ;;  %v1081_v23 = vadd.f32 %v7251_v45, %v7296_v4  ;;  %v1585_v4 = vadd.f32 %v7302_v12, %v5217_v59  ;;  %v1793_v5 = vadd.f32 %v4841_v50, %v1758_v30  ;;  %v1809_v7 = vadd.f32 %v4845_v8, %v1758_v30 }
 0x22e   :  { %v5273_v19 = vpop.permute.xlu1 %1129  ;;  %v1197_v42 = vmin.f32 %v1093_v1, %v1169_v37  ;;  %v1521_v37 = vmax.f32 %v1417_v35, %v1497_v33  ;;  %v7305_v35 = vld [vmem:[#allocation82_spill] sm:$0xff] }
 0x22f   :  { %v1105_v18 = vmax.f32 %v1001_v46, %v1081_v23  ;;  %v1601_v23 = vadd.f32 %v7303_v63, %v5217_v59  ;;  %v1509_v46 = vmin.f32 %v1401_v49, %v1481_v55  ;;  %v7304_v55 = vld [vmem:[#allocation74_spill] sm:$0xff] }
 0x230   :  { %v415_v33 = vadd.f32 %v7242_v10, %v7304_v55  ;;  %v431_v49 = vadd.f32 %v7246_v11, %v7304_v55  ;;  %v531_v55 = vadd.f32 %v7248_v15, %v5242_v29 }
 0x231   :  { %3691 = vset.pattern.permute.xlu1 %v7287_v27  ;;  %v1209_v60 = vmax.f32 %v1105_v18, %v1185_v28  ;;  %v1301_v28 = vmin.f32 %v1197_v42, %v1273_v40  ;;  %v1625_v2 = vmax.f32 %v1521_v37, %v1601_v23  ;;  %v5322_v42 = vadd.f32 %v7242_v10, %v7305_v35 }
 0x232   :  { %582 = vperm.xlu1 %3691, %v5275_v31  }
 0x233   :  { %v5289_v39 = vpop.permute.xlu1 %1357  ;;  %v1313_v1 = vmax.f32 %v1209_v60, %v1289_v43  ;;  %v322_v60 = vadd.f32 %v7240_v9, %v5231_v17 }
 0x234   :  { %7298 = vst [vmem:[#allocation119_spill] sm:$0xff] %v5289_v39  ;;  %v1613_v39 = vmin.f32 %v1509_v46, %v1585_v4  ;;  %v338_v4 = vadd.f32 %v7245_v14, %v5231_v17  ;;  %v7306_v46 = vld [vmem:[#allocation77_spill] sm:$0xff] }
 0x235   :  { %v1325_v63 = vadd.f32 %v1313_v1, %v1301_v28  ;;  %v7308_v1 = vld [vmem:[#allocation66_spill] sm:$0xff] }
 0x236   :  { %3692 = vset.pattern.permute.xlu1 %v7219_v3 }
 0x237   :  { %v5300_v54 = vpop.permute.xlu1 %1545  ;;  %1113 = vperm.xlu1 %3692, %v5275_v31  }
 0x23b   :  { %v1654_v18 = vpop.permute.xlu1 %1653  ;;  %1221 = vperm.xlu1 %3692, %v3716_v61   ;;  %v430_v61 = vadd.f32 %v7246_v11, %v7306_v46 }
 0x23c   :  { %v1689_v13 = vadd.f32 %v4645_v47, %v1654_v18  ;;  %v1705_v41 = vadd.f32 %v7204_v44, %v1654_v18  ;;  %v1337_v18 = vadd.f32 %v1325_v63, %v7308_v1 }
 0x23e   :  { %v1717_v12 = vmin.f32 %v1613_v39, %v1689_v13  ;;  %v1729_v59 = vmax.f32 %v1625_v2, %v1705_v41  ;;  %v3717_v41 = vld [vmem:[#allocation2 + $0xb] sm:$0xff]  ;;  %v5328_v39 = vadd.f32 %v7246_v11, %v7305_v35 }
 0x23f   :  { %3693 = vset.pattern.permute.xlu1 %v7243_v51 }
 0x240   :  { %v1821_v40 = vmin.f32 %v1717_v12, %v1793_v5  ;;  %v1833_v43 = vmax.f32 %v1729_v59, %v1809_v7  ;;  %v264_v13 = vpop.permute.xlu1 %263  ;;  %1637 = vperm.xlu1 %3693, %v3717_v41   ;;  %v414_v12 = vadd.f32 %v7242_v10, %v7306_v46  ;;  %v7307_v7 = vld [vmem:[#allocation46_spill] sm:$0xff] }
 0x241   :  { %v5333_v23 = vadd.f32 %v7240_v9, %v264_v13  ;;  %v5336_v30 = vadd.f32 %v7245_v14, %v264_v13  ;;  %v323_v37 = vadd.f32 %v7240_v9, %v7307_v7  ;;  %v339_v17 = vadd.f32 %v7245_v14, %v7307_v7 }
 0x242   :  { %v1845_v28 = vadd.f32 %v1833_v43, %v1821_v40  ;;  %v442_v59 = vmin.f32 %v322_v60, %v414_v12  ;;  %v454_v40 = vmax.f32 %v338_v4, %v430_v61  ;;  %v547_v43 = vadd.f32 %v7252_v56, %v5242_v29 }
 0x243   :  { %v443_v46 = vmin.f32 %v323_v37, %v415_v33  ;;  %v455_v1 = vmax.f32 %v339_v17, %v431_v49  ;;  %v7309_v33 = vld [vmem:[#allocation114_spill] sm:$0xff] }
 0x244   :  { %v477_v35 = vpop.permute.xlu1 %476  ;;  %1745 = vperm.xlu1 %3693, %v5224_v36   ;;  %v1857_v63 = vadd.f32 %v1845_v28, %v1337_v18  ;;  %v3718_v28 = vld [vmem:[#allocation2 + $0x4] sm:$0xff]  ;;  %v763_v49 = vadd.f32 %v7185_v25, %v7309_v33  ;;  %v779_v37 = vadd.f32 %v7186_v52, %v7309_v33  ;;  %v1184_v33 = vadd.f32 %v7297_v53, %v5273_v19 }
 0x245   :  { %v530_v13 = vadd.f32 %v7248_v15, %v477_v35  ;;  %v546_v41 = vadd.f32 %v7252_v56, %v477_v35  ;;  %v559_v12 = vmin.f32 %v443_v46, %v531_v55  ;;  %v571_v36 = vmax.f32 %v455_v1, %v547_v43 }
 0x246   :  { %v1869_v7 = vmul.f32 0.5, %v1857_v63  ;;  %v7312_v63 = vld [vmem:[#allocation63_spill] sm:$0xff] }
 0x247   :  { %v5358_v2 = vmin.f32 %v442_v59, %v530_v13  ;;  %v5360_v60 = vmax.f32 %v454_v40, %v546_v41  ;;  %v880_v40 = vadd.f32 %v7236_v38, %v7312_v63  ;;  %v896_v43 = vadd.f32 %v7238_v62, %v7312_v63  ;;  %v7313_v41 = vld [vmem:[#allocation28_spill] sm:$0xff] }
 0x248   :  { %v598_v5 = vpop.permute.xlu1 %597  ;;  %3510 = vmatprep.subr.mxu0 %v1869_v7  ;;  %3695 = vset.pattern.permute.xlu1 %v7219_v3  ;;  %v960_v46 = vadd.f32 %v7233_v24, %v7313_v41 }
 0x249   :  { %v647_v4 = vadd.f32 %v4582_v26, %v598_v5  ;;  %v663_v29 = vadd.f32 %v4585_v6, %v598_v5  ;;  %3511 = vmatpush3.msra.mxu0 %v1869_v7  ;;  %1217 = vperm.xlu1 %3695, %v3718_v28   ;;  %v976_v7 = vadd.f32 %v7234_v16, %v7313_v41  ;;  %v7321_v41 = vld [vmem:[#allocation50_spill] sm:$0xff] }
 0x24b   :  { %v675_v18 = vmin.f32 %v559_v12, %v647_v4  ;;  %v687_v61 = vmax.f32 %v571_v36, %v663_v29  ;;  %v988_v36 = vmin.f32 %v880_v40, %v960_v46  ;;  %v1000_v4 = vmax.f32 %v896_v43, %v976_v7 }
 0x24c   :  { %v5394_v29 = vadd.f32 %v7283_v20, %v5287_v34  ;;  %v1400_v46 = vadd.f32 %v4566_v22, %v7321_v41  ;;  %v1416_v7 = vadd.f32 %v4569_v21, %v7321_v41 }
 0x24d   :  { %v791_v17 = vmin.f32 %v675_v18, %v763_v49  ;;  %v803_v59 = vmax.f32 %v687_v61, %v779_v37  ;;  %v5369_v55 = vpop.permute.xlu1 %829  ;;  %3696 = vset.pattern.permute.xlu1 %v7243_v51  ;;  %v5402_v49 = vadd.f32 %v7223_v57, %v5287_v34  ;;  %v1876_v37 = vld [vmem:[%s6799_s5] sm:$0xff]  ;;  %v7320_v34 = vld [vmem:[#allocation45_spill] sm:$0xff] }
 0x24e   :  { %1633 = vperm.xlu1 %3696, %v5275_v31   ;;  %v7314_v31 = vld [vmem:[#allocation51_spill] sm:$0xff]  ;;  %7315 = vst [vmem:[#allocation61_spill] sm:$0xff] %v5394_v29  ;;  %3522 = vmatprep.mubr.msk.f32.mxu0 %vm1880_vm1, %v1876_v37  ;;  %v1480_v40 = vadd.f32 %v7283_v20, %v7320_v34  ;;  %v1496_v43 = vadd.f32 %v7223_v57, %v7320_v34  ;;  %v7322_v37 = vld [vmem:[#allocation38_spill] sm:$0xff] }
 0x24f   :  { %v5373_v5 = vadd.f32 %v803_v59, %v791_v17  ;;  %v1064_v1 = vadd.f32 %v7250_v0, %v7314_v31  ;;  %v1080_v12 = vadd.f32 %v7251_v45, %v7314_v31  ;;  %7316 = vst [vmem:[#allocation125_spill] sm:$0xff] %v5402_v49  ;;  %v1288_v34 = vadd.f32 %v7263_v58, %v7322_v37 }
 0x251   :  { %7310 = vst [vmem:[#allocation58_spill] sm:$0xff] %v5373_v5  ;;  %v5375_v35 = vpop.permute.xlu1 %1017  ;;  %v1092_v61 = vmin.f32 %v988_v36, %v1064_v1  ;;  %v1104_v17 = vmax.f32 %v1000_v4, %v1080_v12 }
 0x252   :  { %7311 = vst [vmem:[#allocation56_spill] sm:$0xff] %v5375_v35  ;;  %1737 = vperm.xlu1 %3696, %v3718_v28   ;;  %v1168_v28 = vadd.f32 %v4542_v32, %v5273_v19  ;;  %v5414_v19 = vpop.permute.xlu0 %1429 }
 0x253   :  { %7319 = vst [vmem:[#allocation62_spill] sm:$0xff] %v5414_v19  ;;  %v1208_v1 = vmax.f32 %v1104_v17, %v1184_v33  ;;  %v1520_v17 = vmax.f32 %v1416_v7, %v1496_v43 }
 0x254   :  { %v1196_v31 = vmin.f32 %v1092_v61, %v1168_v28  ;;  %v7324_v28 = vld [vmem:[#allocation111_spill] sm:$0xff]  ;;  %v1508_v61 = vmin.f32 %v1400_v46, %v1480_v40 }
 0x255   :  { %v5381_v13 = vpop.permute.xlu1 %1125  ;;  %v1600_v33 = vadd.f32 %v7324_v28, %v5300_v54  ;;  %v1312_v12 = vmax.f32 %v1208_v1, %v1288_v34  ;;  %v7325_v46 = vld [vmem:[#allocation99_spill] sm:$0xff]  ;;  %v7327_v1 = vld [vmem:[#allocation120_spill] sm:$0xff] }
 0x256   :  { %3697 = vset.pattern.permute.xlu1 %v7287_v27  ;;  %v7323_v27 = vld [vmem:[#allocation110_spill] sm:$0xff]  ;;  %v1754_v51 = vpop.permute.xlu0 %1753  ;;  %v5444_v7 = vadd.f32 %v7242_v10, %v7325_v46 }
 0x257   :  { %v1584_v3 = vadd.f32 %v7323_v27, %v5300_v54  ;;  %v1792_v36 = vadd.f32 %v4841_v50, %v1754_v51  ;;  %v1808_v49 = vadd.f32 %v4845_v8, %v1754_v51  ;;  %v5448_v51 = vadd.f32 %v7246_v11, %v7325_v46 }
 0x259   :  { %v1612_v29 = vmin.f32 %v1508_v61, %v1584_v3 }
 0x25a   :  { %v1354_v18 = vpop.permute.xlu1 %1353 }
 0x25b   :  { %v5409_v59 = vadd.f32 %v4566_v22, %v1354_v18  ;;  %v5412_v63 = vadd.f32 %v4569_v21, %v1354_v18  ;;  %v1272_v18 = vadd.f32 %v7262_v48, %v7322_v37 }
 0x25d   :  { %7317 = vst [vmem:[#allocation65_spill] sm:$0xff] %v5409_v59  ;;  %7318 = vst [vmem:[#allocation37_spill] sm:$0xff] %v5412_v63  ;;  %v1300_v41 = vmin.f32 %v1196_v31, %v1272_v18  ;;  %v1624_v59 = vmax.f32 %v1520_v17, %v1600_v33  ;;  %v7329_v18 = vmax.f32 %v5336_v30, %v5328_v39  ;;  %v7330_v33 = vld [vmem:[#allocation122_spill] sm:$0xff] }
 0x25e   :  { %v5428_v4 = vpop.permute.xlu1 %1541  ;;  %v761_v61 = vadd.f32 %v7185_v25, %v7330_v33  ;;  %v777_v17 = vadd.f32 %v7186_v52, %v7330_v33 }
 0x25f   :  { %v1324_v27 = vadd.f32 %v1312_v12, %v1300_v41  ;;  %v7328_v12 = vmin.f32 %v5333_v23, %v5322_v42 }
 0x262   :  { %v1650_v63 = vpop.permute.xlu1 %1649 }
 0x263   :  { %v1688_v37 = vadd.f32 %v4645_v47, %v1650_v63  ;;  %v1704_v19 = vadd.f32 %v7204_v44, %v1650_v63 }
 0x265   :  { %v1716_v35 = vmin.f32 %v1612_v29, %v1688_v37  ;;  %v1728_v5 = vmax.f32 %v1624_v59, %v1704_v19  ;;  %v7326_v29 = vld [vmem:[#allocation68_spill] sm:$0xff] }
 0x266   :  { %v1336_v59 = vadd.f32 %v1324_v27, %v7326_v29  ;;  %v661_v27 = vadd.f32 %v4585_v6, %v7327_v1 }
 0x267   :  { %v1820_v54 = vmin.f32 %v1716_v35, %v1792_v36  ;;  %v1832_v40 = vmax.f32 %v1728_v5, %v1808_v49  ;;  %v259_v43 = vpop.permute.xlu1 %258 }
 0x268   :  { %v5451_v3 = vadd.f32 %v7240_v9, %v259_v43  ;;  %v5454_v31 = vadd.f32 %v7245_v14, %v259_v43  ;;  %v645_v14 = vadd.f32 %v4582_v26, %v7327_v1 }
 0x269   :  { %v1844_v63 = vadd.f32 %v1832_v40, %v1820_v54 }
 0x26b   :  { %v472_v35 = vpop.permute.xlu1 %471  ;;  %v1856_v49 = vadd.f32 %v1844_v63, %v1336_v59  ;;  %v877_v59 = vadd.f32 %v7236_v38, %v5369_v55  ;;  %v893_v63 = vadd.f32 %v7238_v62, %v5369_v55 }
 0x26c   :  { %v529_v11 = vadd.f32 %v7248_v15, %v472_v35  ;;  %v545_v19 = vadd.f32 %v7252_v56, %v472_v35  ;;  %v7333_v35 = vld [vmem:[#allocation36_spill] sm:$0xff] }
 0x26d   :  { %v1868_v9 = vmul.f32 0.5, %v1856_v49  ;;  %v957_v49 = vadd.f32 %v7233_v24, %v7333_v35 }
 0x26e   :  { %v557_v36 = vmin.f32 %v7328_v12, %v529_v11  ;;  %v569_v34 = vmax.f32 %v7329_v18, %v545_v19  ;;  %v973_v11 = vadd.f32 %v7234_v16, %v7333_v35  ;;  %v7334_v18 = vld [vmem:[#allocation49_spill] sm:$0xff]  ;;  %v1183_v35 = vadd.f32 %v7297_v53, %v5381_v13 }
 0x26f   :  { %3512 = vmatprep.subr.mxu0 %v1868_v9  ;;  %v593_v41 = vpop.permute.xlu1 %592  ;;  %v879_v55 = vadd.f32 %v7236_v38, %v7334_v18 }
 0x270   :  { %v673_v37 = vmin.f32 %v557_v36, %v645_v14  ;;  %v685_v54 = vmax.f32 %v569_v34, %v661_v27  ;;  %v5478_v40 = vadd.f32 %v4582_v26, %v593_v41  ;;  %v5481_v42 = vadd.f32 %v4585_v6, %v593_v41  ;;  %3513 = vmatpush3.msra.mxu0 %v1868_v9 }
 0x271   :  { %v985_v9 = vmin.f32 %v877_v59, %v957_v49  ;;  %v997_v1 = vmax.f32 %v893_v63, %v973_v11  ;;  %v895_v34 = vadd.f32 %v7238_v62, %v7334_v18  ;;  %v1167_v63 = vadd.f32 %v4542_v32, %v5381_v13 }
 0x272   :  { %v789_v23 = vmin.f32 %v673_v37, %v761_v61  ;;  %v801_v39 = vmax.f32 %v685_v54, %v777_v17  ;;  %v7335_v61 = vld [vmem:[#allocation30_spill] sm:$0xff]  ;;  %v7336_v37 = vld [vmem:[#allocation57_spill] sm:$0xff] }
 0x273   :  { %v959_v17 = vadd.f32 %v7233_v24, %v7335_v61  ;;  %v975_v41 = vadd.f32 %v7234_v16, %v7335_v61  ;;  %v1063_v54 = vadd.f32 %v7250_v0, %v7336_v37 }
 0x274   :  { %v5487_v46 = vpop.permute.xlu1 %825  ;;  %v5489_v29 = vadd.f32 %v801_v39, %v789_v23  ;;  %v1079_v23 = vadd.f32 %v7251_v45, %v7336_v37 }
 0x275   :  { %7331 = vst [vmem:[#allocation80_spill] sm:$0xff] %v5487_v46  ;;  %v987_v39 = vmin.f32 %v879_v55, %v959_v17  ;;  %v999_v59 = vmax.f32 %v895_v34, %v975_v41  ;;  %v5533_v17 = vpop.permute.xlu0 %1425  ;;  %v7341_v41 = vld [vmem:[#allocation42_spill] sm:$0xff] }
 0x276   :  { %7332 = vst [vmem:[#allocation60_spill] sm:$0xff] %v5489_v29  ;;  %7339 = vst [vmem:[#allocation109_spill] sm:$0xff] %v5533_v17  ;;  %v1271_v37 = vadd.f32 %v7262_v48, %v7341_v41 }
 0x277   :  { %v1091_v11 = vmin.f32 %v987_v39, %v1063_v54  ;;  %v1287_v54 = vadd.f32 %v7263_v58, %v7341_v41 }
 0x278   :  { %v1014_v19 = vpop.permute.xlu1 %1013 }
 0x279   :  { %v1061_v14 = vadd.f32 %v7250_v0, %v1014_v19  ;;  %v1077_v27 = vadd.f32 %v7251_v45, %v1014_v19  ;;  %v1103_v19 = vmax.f32 %v999_v59, %v1079_v23  ;;  %v1195_v34 = vmin.f32 %v1091_v11, %v1167_v63  ;;  %v7342_v23 = vld [vmem:[#allocation110_spill] sm:$0xff]  ;;  %v1750_v5 = vpop.permute.xlu0 %1749 }
 0x27a   :  { %v1583_v39 = vadd.f32 %v7342_v23, %v5428_v4  ;;  %v1599_v59 = vadd.f32 %v7324_v28, %v5428_v4  ;;  %v1791_v41 = vadd.f32 %v4841_v50, %v1750_v5  ;;  %v1807_v29 = vadd.f32 %v4845_v8, %v1750_v5 }
 0x27b   :  { %v5501_v12 = vmin.f32 %v985_v9, %v1061_v14  ;;  %v5503_v36 = vmax.f32 %v997_v1, %v1077_v27  ;;  %v7337_v9 = vld [vmem:[#allocation53_spill] sm:$0xff]  ;;  %v7338_v27 = vld [vmem:[#allocation119_spill] sm:$0xff]  ;;  %v1207_v61 = vmax.f32 %v1103_v19, %v1183_v35  ;;  %v1299_v63 = vmin.f32 %v1195_v34, %v1271_v37 }
 0x27c   :  { %v5509_v33 = vpop.permute.xlu1 %1121  ;;  %v1479_v1 = vadd.f32 %v7283_v20, %v7337_v9  ;;  %v1495_v14 = vadd.f32 %v7223_v57, %v7337_v9  ;;  %v1399_v18 = vadd.f32 %v4566_v22, %v7338_v27  ;;  %v1415_v55 = vadd.f32 %v4569_v21, %v7338_v27 }
 0x27d   :  { %v1311_v35 = vmax.f32 %v1207_v61, %v1287_v54 }
 0x27e   :  { %v1507_v9 = vmin.f32 %v1399_v18, %v1479_v1  ;;  %v1519_v27 = vmax.f32 %v1415_v55, %v1495_v14  ;;  %v7343_v18 = vld [vmem:[#allocation58_spill] sm:$0xff] }
 0x27f   :  { %v1323_v17 = vadd.f32 %v1311_v35, %v1299_v63  ;;  %v7348_v63 = vld [vmem:[#allocation56_spill] sm:$0xff] }
 0x280   :  { %v1611_v19 = vmin.f32 %v1507_v9, %v1583_v39  ;;  %v1623_v10 = vmax.f32 %v1519_v27, %v1599_v59  ;;  %v7344_v59 = vld [vmem:[#allocation52_spill] sm:$0xff]  ;;  %v1062_v35 = vadd.f32 %v7250_v0, %v7348_v63 }
 0x281   :  { %v5523_v49 = vpop.permute.xlu1 %1349  ;;  %v1335_v55 = vadd.f32 %v1323_v17, %v7343_v18  ;;  %v878_v9 = vadd.f32 %v7236_v38, %v7344_v59  ;;  %v894_v5 = vadd.f32 %v7238_v62, %v7344_v59  ;;  %v7347_v17 = vld [vmem:[#allocation32_spill] sm:$0xff] }
 0x282   :  { %v974_v27 = vadd.f32 %v7234_v16, %v7347_v17 }
 0x285   :  { %v5535_v13 = vpop.permute.xlu1 %1537 }
 0x286   :  { %7340 = vst [vmem:[#allocation73_spill] sm:$0xff] %v5535_v13 }
 0x289   :  { %v1646_v11 = vpop.permute.xlu1 %1645 }
 0x28a   :  { %v1687_v43 = vadd.f32 %v4645_v47, %v1646_v11  ;;  %v1703_v30 = vadd.f32 %v7204_v44, %v1646_v11  ;;  %v1078_v11 = vadd.f32 %v7251_v45, %v7348_v63 }
 0x28c   :  { %v1715_v46 = vmin.f32 %v1611_v19, %v1687_v43  ;;  %v1727_v13 = vmax.f32 %v1623_v10, %v1703_v30  ;;  %v7345_v10 = vmin.f32 %v5358_v2, %v5478_v40 }
 0x28e   :  { %v1819_v4 = vmin.f32 %v1715_v46, %v1791_v41  ;;  %v1831_v1 = vmax.f32 %v1727_v13, %v1807_v29  ;;  %v467_v14 = vpop.permute.xlu1 %466  ;;  %v7346_v46 = vmax.f32 %v5360_v60, %v5481_v42  ;;  %v958_v13 = vadd.f32 %v7233_v24, %v7347_v17 }
 0x28f   :  { %v998_v60 = vmax.f32 %v894_v5, %v974_v27  ;;  %v1166_v42 = vadd.f32 %v4542_v32, %v5509_v33  ;;  %v1182_v41 = vadd.f32 %v7297_v53, %v5509_v33  ;;  %v528_v33 = vadd.f32 %v7248_v15, %v467_v14 }
 0x290   :  { %v1843_v34 = vadd.f32 %v1831_v1, %v1819_v4  ;;  %v986_v40 = vmin.f32 %v878_v9, %v958_v13  ;;  %v7350_v13 = vmax.f32 %v5454_v31, %v5448_v51 }
 0x291   :  { %v1102_v1 = vmax.f32 %v998_v60, %v1078_v11  ;;  %v7351_v11 = vld [vmem:[#allocation124_spill] sm:$0xff] }
 0x292   :  { %v709_v61 = vpop.permute.xlu1 %708  ;;  %v1855_v37 = vadd.f32 %v1843_v34, %v1335_v55  ;;  %v1090_v4 = vmin.f32 %v986_v40, %v1062_v35  ;;  %v776_v15 = vadd.f32 %v7186_v52, %v7351_v11 }
 0x293   :  { %v762_v54 = vadd.f32 %v7185_v25, %v709_v61  ;;  %v778_v39 = vadd.f32 %v7186_v52, %v709_v61  ;;  %v1206_v34 = vmax.f32 %v1102_v1, %v1182_v41  ;;  %v1413_v52 = vadd.f32 %v4569_v21, %v5523_v49 }
 0x294   :  { %v1867_v43 = vmul.f32 0.5, %v1855_v37  ;;  %v1194_v55 = vmin.f32 %v1090_v4, %v1166_v42  ;;  %v7352_v42 = vld [vmem:[#allocation44_spill] sm:$0xff] }
 0x295   :  { %v790_v30 = vmin.f32 %v7345_v10, %v762_v54  ;;  %v802_v29 = vmax.f32 %v7346_v46, %v778_v39  ;;  %v1165_v51 = vadd.f32 %v4542_v32, %v7352_v42 }
 0x296   :  { %3514 = vmatprep.subr.mxu0 %v1867_v43 }
 0x297   :  { %v814_v19 = vadd.f32 %v802_v29, %v790_v30  ;;  %3515 = vmatpush3.msra.mxu0 %v1867_v43  ;;  %v5570_v2 = vpop.permute.xlu1 %1009  ;;  %v544_v30 = vadd.f32 %v7252_v56, %v467_v14  ;;  %v7349_v29 = vmin.f32 %v5451_v3, %v5444_v7  ;;  %v1193_v41 = vmin.f32 %v5501_v12, %v1165_v51 }
 0x299   :  { %v556_v17 = vmin.f32 %v7349_v29, %v528_v33  ;;  %v568_v27 = vmax.f32 %v7350_v13, %v544_v30  ;;  %v7355_v33 = vld [vmem:[#allocation40_spill] sm:$0xff] }
 0x29a   :  { %v956_v30 = vadd.f32 %v7233_v24, %v7355_v33 }
 0x29b   :  { %v1226_v18 = vpop.permute.xlu1 %1225 }
 0x29c   :  { %v1270_v61 = vadd.f32 %v7262_v48, %v1226_v18  ;;  %v1286_v37 = vadd.f32 %v7263_v58, %v1226_v18 }
 0x29e   :  { %v1298_v54 = vmin.f32 %v1194_v55, %v1270_v61  ;;  %v1310_v39 = vmax.f32 %v1206_v34, %v1286_v37  ;;  %v7353_v55 = vld [vmem:[#allocation62_spill] sm:$0xff] }
 0x29f   :  { %v1477_v34 = vadd.f32 %v7283_v20, %v7353_v55  ;;  %v1493_v61 = vadd.f32 %v7223_v57, %v7353_v55  ;;  %v1060_v55 = vadd.f32 %v7250_v0, %v5570_v2 }
 0x2a0   :  { %v1322_v59 = vadd.f32 %v1310_v39, %v1298_v54  ;;  %v5578_v9 = vpop.permute.xlu1 %1345 }
 0x2a2   :  { %v5580_v5 = vadd.f32 %v1322_v59, %v814_v19  ;;  %v760_v19 = vadd.f32 %v7185_v25, %v7351_v11  ;;  %v1397_v25 = vadd.f32 %v4566_v22, %v5523_v49  ;;  %v7354_v49 = vld [vmem:[#allocation73_spill] sm:$0xff] }
 0x2a3   :  { %v1582_v39 = vadd.f32 %v7342_v23, %v7354_v49  ;;  %v1598_v12 = vadd.f32 %v7324_v28, %v7354_v49 }
 0x2a4   :  { %v1534_v43 = vpop.permute.xlu1 %1533  ;;  %v1505_v29 = vmin.f32 %v1397_v25, %v1477_v34 }
 0x2a5   :  { %v1581_v37 = vadd.f32 %v7342_v23, %v1534_v43  ;;  %v1597_v54 = vadd.f32 %v7324_v28, %v1534_v43 }
 0x2a8   :  { %v1642_v10 = vpop.permute.xlu1 %1641 }
 0x2ad   :  { %v583_v46 = vpop.permute.xlu1 %582 }
 0x2ae   :  { %v644_v63 = vadd.f32 %v4582_v26, %v583_v46  ;;  %v660_v35 = vadd.f32 %v4585_v6, %v583_v46  ;;  %v1181_v26 = vadd.f32 %v7297_v53, %v7352_v42  ;;  %v5602_v6 = vpop.permute.xlu0 %1529  ;;  %v972_v46 = vadd.f32 %v7234_v16, %v7355_v33 }
 0x2b0   :  { %v672_v56 = vmin.f32 %v556_v17, %v644_v63  ;;  %v684_v14 = vmax.f32 %v568_v27, %v660_v35  ;;  %v1205_v4 = vmax.f32 %v5503_v36, %v1181_v26  ;;  %v1517_v17 = vmax.f32 %v1413_v52, %v1493_v61  ;;  %v7356_v27 = vld [vmem:[#allocation80_spill] sm:$0xff]  ;;  %v7361_v26 = vld [vmem:[#allocation125_spill] sm:$0xff] }
 0x2b1   :  { %v876_v43 = vadd.f32 %v7236_v38, %v7356_v27  ;;  %v1686_v63 = vadd.f32 %v4645_v47, %v1642_v10  ;;  %v1702_v35 = vadd.f32 %v7204_v44, %v1642_v10  ;;  %v892_v16 = vadd.f32 %v7238_v62, %v7356_v27  ;;  %v7360_v38 = vld [vmem:[#allocation37_spill] sm:$0xff]  ;;  %v7363_v10 = vld [vmem:[#allocation60_spill] sm:$0xff] }
 0x2b2   :  { %v788_v40 = vmin.f32 %v672_v56, %v760_v19  ;;  %v800_v60 = vmax.f32 %v684_v14, %v776_v15  ;;  %v1114_v7 = vpop.permute.xlu1 %1113  ;;  %v1742_v13 = vpop.permute.xlu0 %1741  ;;  %v1609_v15 = vmin.f32 %v1505_v29, %v1581_v37  ;;  %v1621_v56 = vmax.f32 %v1517_v17, %v1597_v54 }
 0x2b3   :  { %v7362_v25 = vmax.f32 %v7360_v38, %v7361_v26  ;;  %v1076_v62 = vadd.f32 %v7251_v45, %v5570_v2  ;;  %v1164_v33 = vadd.f32 %v4542_v32, %v1114_v7  ;;  %v1180_v29 = vadd.f32 %v7297_v53, %v1114_v7  ;;  %v7364_v7 = vld [vmem:[#allocation109_spill] sm:$0xff] }
 0x2b4   :  { %v5596_v3 = vadd.f32 %v800_v60, %v788_v40  ;;  %v7357_v40 = vld [vmem:[#allocation65_spill] sm:$0xff]  ;;  %v1396_v2 = vadd.f32 %v4566_v22, %v5578_v9 }
 0x2b5   :  { %v7358_v60 = vld [vmem:[#allocation61_spill] sm:$0xff]  ;;  %v1622_v52 = vmax.f32 %v7362_v25, %v1598_v12 }
 0x2b6   :  { %v1222_v31 = vpop.permute.xlu1 %1221  ;;  %v7359_v42 = vmin.f32 %v7357_v40, %v7358_v60 }
 0x2b7   :  { %v1269_v1 = vadd.f32 %v7262_v48, %v1222_v31  ;;  %v1285_v18 = vadd.f32 %v7263_v58, %v1222_v31  ;;  %v1726_v61 = vmax.f32 %v1622_v52, %v1702_v35 }
 0x2b8   :  { %v1610_v51 = vmin.f32 %v7359_v42, %v1582_v39 }
 0x2b9   :  { %v1297_v36 = vmin.f32 %v1193_v41, %v1269_v1  ;;  %v1309_v59 = vmax.f32 %v1205_v4, %v1285_v18  ;;  %v1789_v41 = vadd.f32 %v4841_v50, %v1742_v13  ;;  %v1805_v4 = vadd.f32 %v4845_v8, %v1742_v13 }
 0x2ba   :  { %v1714_v34 = vmin.f32 %v1610_v51, %v1686_v63  ;;  %v1412_v63 = vadd.f32 %v4569_v21, %v5578_v9 }
 0x2bb   :  { %v1321_v11 = vadd.f32 %v1309_v59, %v1297_v36  ;;  %v1638_v19 = vpop.permute.xlu1 %1637  ;;  %v984_v36 = vmin.f32 %v876_v43, %v956_v30  ;;  %v996_v59 = vmax.f32 %v892_v16, %v972_v46  ;;  %v1476_v43 = vadd.f32 %v7283_v20, %v7364_v7 }
 0x2bc   :  { %v1685_v14 = vadd.f32 %v4645_v47, %v1638_v19  ;;  %v1701_v24 = vadd.f32 %v7204_v44, %v1638_v19  ;;  %v1580_v16 = vadd.f32 %v7342_v23, %v5602_v6 }
 0x2bd   :  { %v1333_v31 = vadd.f32 %v1321_v11, %v7363_v10  ;;  %v1088_v27 = vmin.f32 %v984_v36, %v1060_v55  ;;  %v1100_v45 = vmax.f32 %v996_v59, %v1076_v62  ;;  %v1504_v21 = vmin.f32 %v1396_v2, %v1476_v43  ;;  %v1981_v36 = vld [vmem:[#allocation9] sm:$0x3f]  ;;  %v1982_v59 = vld [vmem:[#allocation9 + $0x8] sm:$0x3f] }
 0x2be   :  { %v1713_v1 = vmin.f32 %v1609_v15, %v1685_v14  ;;  %v1725_v18 = vmax.f32 %v1621_v56, %v1701_v24  ;;  %v1492_v15 = vadd.f32 %v7223_v57, %v7364_v7  ;;  %v7366_v55 = vmov 2  }
 0x2bf   :  { %v1746_v37 = vpop.permute.xlu1 %1745  ;;  %v1192_v30 = vmin.f32 %v1088_v27, %v1164_v33  ;;  %v1204_v46 = vmax.f32 %v1100_v45, %v1180_v29  ;;  %v1608_v42 = vmin.f32 %v1504_v21, %v1580_v16  ;;  %v7367_v62 = vmov 1   ;;  %v1983_v33 = vld [vmem:[#allocation9 + $0x10] sm:$0x3f]  ;;  %v7369_v29 = vld [vmem:[#allocation84_spill] sm:$0xff] }
 0x2c0   :  { %v1817_v54 = vmin.f32 %v1713_v1, %v1789_v41  ;;  %v1829_v49 = vmax.f32 %v1725_v18, %v1805_v4  ;;  %v1790_v39 = vadd.f32 %v4841_v50, %v1746_v37  ;;  %v1806_v12 = vadd.f32 %v4845_v8, %v1746_v37  ;;  %v2878_v21 = vld [vmem:[%s6800_s6] sm:$0xff] }
 0x2c1   :  { %v1516_v9 = vmax.f32 %v1412_v63, %v1492_v15  ;;  %v3949_v37 = vmov 5   ;;  %v5702_v27 = vrot.slane %v1982_v59, %v7369_v29  ;;  %v5708_v2 = vrot.slane %v1983_v33, %v7369_v29  ;;  %v7370_v63 = vld [vmem:[#allocation85_spill] sm:$0xff]  ;;  %3536 = vmatprep.mubr.msk.f32.mxu1 %vm2880_vm2, %v2878_v21 }
 0x2c2   :  { %v1818_v17 = vmin.f32 %v1714_v34, %v1790_v39  ;;  %v1830_v0 = vmax.f32 %v1726_v61, %v1806_v12  ;;  %v1841_v13 = vadd.f32 %v1829_v49, %v1817_v54  ;;  %v7368_v34 = vmov 0   ;;  %v1978_v49 = vld [vmem:[#allocation8] sm:$0x3f]  ;;  %v1979_v39 = vld [vmem:[#allocation8 + $0x8] sm:$0x3f] }
 0x2c3   :  { %v3948_v61 = vmov 3   ;;  %v3950_v54 = vmov 4   ;;  %v1980_v12 = vld [vmem:[#allocation8 + $0x10] sm:$0x3f]  ;;  %v5727_v7 = vrot.slane %v1983_v33, %v7370_v63  ;;  %v7372_v15 = vld [vmem:[#allocation89_spill] sm:$0xff] }
 0x2c4   :  { %v1842_v35 = vadd.f32 %v1830_v0, %v1818_v17  ;;  %v1218_v11 = vpop.permute.xlu1 %1217  ;;  %v1853_v19 = vadd.f32 %v1841_v13, %v1333_v31  ;;  %v1878_v31 = vld [vmem:[%s6799_s5 + $0x10] sm:$0xff]  ;;  %v5693_v17 = vrot.slane %v1978_v49, %v7369_v29  ;;  %v5696_v0 = vrot.slane %v1979_v39, %v7369_v29 }
 0x2c5   :  { %v1268_v32 = vadd.f32 %v7262_v48, %v1218_v11  ;;  %v1284_v53 = vadd.f32 %v7263_v58, %v1218_v11  ;;  %v1596_v58 = vadd.f32 %v7324_v28, %v5602_v6  ;;  %v5699_v13 = vrot.slane %v1981_v36, %v7369_v29 }
 0x2c6   :  { %v1854_v22 = vadd.f32 %v1842_v35, %v5580_v5  ;;  %v1865_v57 = vmul.f32 0.5, %v1853_v19  ;;  %v5705_v45 = vrot.slane %v1980_v12, %v7369_v29  ;;  %v5711_v35 = vrot.slane %v1978_v49, %v7370_v63 }
 0x2c7   :  { %v1296_v56 = vmin.f32 %v1192_v30, %v1268_v32  ;;  %v1308_v14 = vmax.f32 %v1204_v46, %v1284_v53  ;;  %v1620_v51 = vmax.f32 %v1516_v9, %v1596_v58  ;;  %v5714_v11 = vrot.slane %v1981_v36, %v7370_v63  ;;  %v7371_v30 = vld [vmem:[#allocation81_spill] sm:$0xff] }
 0x2c8   :  { %v1866_v24 = vmul.f32 0.5, %v1854_v22  ;;  %v5717_v19 = vrot.slane %v1979_v39, %v7370_v63  ;;  %v2448_v46 = vsub.s32 3, %v7371_v30  ;;  %v5721_v32 = vrot.slane %v1982_v59, %v7370_v63 }
 0x2c9   :  { %v1320_v40 = vadd.f32 %v1308_v14, %v1296_v56  ;;  %v1634_v48 = vpop.permute.xlu1 %1633  ;;  %v5724_v53 = vrot.slane %v1980_v12, %v7370_v63  ;;  %v2744_v43 = vsub.s32 5, %v7371_v30  ;;  %v5731_v22 = vrot.slane %v1978_v49, %v7372_v15 }
 0x2ca   :  { %v1684_v20 = vadd.f32 %v4645_v47, %v1634_v48  ;;  %v1700_v60 = vadd.f32 %v7204_v44, %v1634_v48  ;;  %3516 = vmatprep.subr.mxu0 %v1866_v24  ;;  %v5734_v56 = vrot.slane %v1981_v36, %v7372_v15  ;;  %v5737_v14 = vrot.slane %v1979_v39, %v7372_v15 }
 0x2cb   :  { %3517 = vmatpush3.msra.mxu0 %v1866_v24  ;;  %v1332_v5 = vadd.f32 %v1320_v40, %v5596_v3  ;;  %v1877_v3 = vld [vmem:[%s6799_s5 + $0x8] sm:$0xff]  ;;  %v5743_v9 = vrot.slane %v1982_v59, %v7372_v15  ;;  %v5746_v24 = vrot.slane %v1980_v12, %v7372_v15  ;;  %v5749_v16 = vrot.slane %v1983_v33, %v7372_v15 }
 0x2cc   :  { %3518 = vmatprep.subr.mxu0 %v1865_v57  ;;  %v1712_v23 = vmin.f32 %v1608_v42, %v1684_v20  ;;  %v1724_v26 = vmax.f32 %v1620_v51, %v1700_v60  ;;  %v2596_v40 = vsub.s32 4, %v7371_v30  ;;  %v5753_v48 = vrot.slane %v1978_v49, %v2448_v46 }
 0x2cd   :  { %3519 = vmatpush3.msra.mxu0 %v1865_v57  ;;  %v1738_v38 = vpop.permute.xlu1 %1737  ;;  %v5755_v58 = vrot.slane %v1981_v36, %v2448_v46  ;;  %v5757_v20 = vrot.slane %v1979_v39, %v2448_v46  ;;  %v5759_v60 = vrot.slane %v1982_v59, %v2448_v46  ;;  %v5761_v57 = vrot.slane %v1980_v12, %v2448_v46 }
 0x2ce   :  { %v1788_v25 = vadd.f32 %v4841_v50, %v1738_v38  ;;  %v1804_v28 = vadd.f32 %v4845_v8, %v1738_v38  ;;  %v7365_v50 = vmov 0.0   ;;  %v1879_v8 = vld [vmem:[%s6799_s5 + $0x18] sm:$0xff]  ;;  %v5765_v42 = vrot.slane %v1978_v49, %v2744_v43 }
 0x2cf   :  { %v5767_v51 = vrot.slane %v1981_v36, %v2744_v43  ;;  %v5769_v38 = vrot.slane %v1979_v39, %v2744_v43 }
 0x2d0   :  { %v1816_v6 = vmin.f32 %v1712_v23, %v1788_v25  ;;  %v1828_v47 = vmax.f32 %v1724_v26, %v1804_v28  ;;  %7373 = vst [vmem:[#allocation106_spill] sm:$0xff] %v5765_v42  ;;  %v5771_v23 = vrot.slane %v1982_v59, %v2744_v43  ;;  %v5773_v26 = vrot.slane %v1980_v12, %v2744_v43 }
 0x2d1   :  { %7374 = vst [vmem:[#allocation67_spill] sm:$0xff] %v5767_v51  ;;  %v5775_v25 = vrot.slane %v1983_v33, %v2744_v43 }
 0x2d2   :  { %v1840_v52 = vadd.f32 %v1828_v47, %v1816_v6  ;;  %7375 = vst [vmem:[#allocation90_spill] sm:$0xff] %v5773_v26  ;;  %v5777_v47 = vrot.slane %v1978_v49, %v2596_v40 }
 0x2d3   :  { %7376 = vst [vmem:[#allocation126_spill] sm:$0xff] %v5775_v25 }
 0x2d4   :  { %v1852_v44 = vadd.f32 %v1840_v52, %v1332_v5  ;;  %v5763_v5 = vrot.slane %v1983_v33, %v2448_v46  ;;  %7377 = vst [vmem:[#allocation127_spill] sm:$0xff] %v5777_v47  ;;  %v5779_v52 = vrot.slane %v1981_v36, %v2596_v40 }
 0x2d6   :  { %v1864_v10 = vmul.f32 0.5, %v1852_v44  ;;  %7378 = vst [vmem:[#allocation25_spill] sm:$0xff] %v5779_v52  ;;  %v5781_v44 = vrot.slane %v1979_v39, %v2596_v40 }
 0x2d8   :  { %3520 = vmatprep.subr.mxu0 %v1864_v10  ;;  %7379 = vst [vmem:[#allocation94_spill] sm:$0xff] %v5781_v44 }
 0x2d9   :  { %3521 = vmatpush3.msra.mxu0 %v1864_v10  ;;  %v5783_v10 = vrot.slane %v1982_v59, %v2596_v40 }
 0x2da   :  { %3523 = vmatmul.mubr.msk.f32.vlgmr.msra.gmra.mxu0 %vm1880_vm1, %v1877_v3  ;;  %3595 = vmatprep.subr.mxu0 %v7365_v50 }
 0x2db   :  { %3525 = vmatprep.mubr.msk.f32.mxu0 %vm1880_vm1, %v1878_v31  ;;  %7380 = vst [vmem:[#allocation95_spill] sm:$0xff] %v5783_v10 }
 0x2de   :  { %3526 = vmatmul.mubr.msk.f32.gmra.mxu0 %vm1880_vm1, %v1879_v8  ;;  %v5791_v8 = vrot.slane %v1980_v12, %v2596_v40 }
 0x2e0   :  { %7381 = vst [vmem:[#allocation54_spill] sm:$0xff] %v5791_v8 }
 0x39a   :  { %v3524_v41 = vpop.f32.mrf.mxu0 }
 0x39c   :  { %v1959_v4 = vpop.f32.mrf.mxu0 }
 0x39e   :  { %v3527_v1 = vpop.f32.mrf.mxu0 }
 0x39f   :  { %2147 = vperm.xlu0 %3698, %v3527_v1   ;;  %2001 = vperm.xlu1 %3697, %v3527_v1  }
 0x3a0   :  { %v1969_v18 = vpop.f32.mrf.mxu0 }
 0x3a3   :  { %3700 = vset.pattern.permute.xlu0 %v7366_v55  ;;  %1996 = vperm.xlu1 %3697, %v1969_v18  }
 0x3a4   :  { %2295 = vperm.xlu0 %3700, %v3527_v1  }
 0x3a7   :  { %3699 = vset.pattern.permute.xlu1 %v7367_v62 }
 0x3a8   :  { %2291 = vperm.xlu0 %3700, %v1969_v18   ;;  %2143 = vperm.xlu1 %3699, %v1969_v18  }
 0x3ac   :  { %3704 = vset.pattern.permute.xlu0 %v7368_v34  ;;  %3701 = vset.pattern.permute.xlu1 %v7368_v34 }
 0x3ad   :  { %1986 = vperm.xlu0 %3704, %v1959_v4   ;;  %1991 = vperm.xlu1 %3701, %v3524_v41  }
 0x3b1   :  { %3707 = vset.pattern.permute.xlu0 %v3948_v61  ;;  %3702 = vset.pattern.permute.xlu1 %v7367_v62 }
 0x3b2   :  { %2439 = vperm.xlu0 %3707, %v1969_v18   ;;  %2139 = vperm.xlu1 %3702, %v3524_v41  }
 0x3b6   :  { %2435 = vperm.xlu0 %3707, %v3524_v41   ;;  %3703 = vset.pattern.permute.xlu1 %v3948_v61 }
 0x3b7   :  { %2443 = vperm.xlu1 %3703, %v3527_v1  }
 0x3ba   :  { %3711 = vset.pattern.permute.xlu0 %v3949_v37 }
 0x3bb   :  { %2739 = vperm.xlu0 %3711, %v3527_v1   ;;  %3705 = vset.pattern.permute.xlu1 %v7367_v62 }
 0x3bc   :  { %2135 = vperm.xlu1 %3705, %v1959_v4  }
 0x3bf   :  { %2735 = vperm.xlu0 %3711, %v1969_v18  }
 0x3c0   :  { %3706 = vset.pattern.permute.xlu1 %v7366_v55 }
 0x3c1   :  { %2287 = vperm.xlu1 %3706, %v3524_v41  }
 0x3c3   :  { %2731 = vperm.xlu0 %3711, %v3524_v41  }
 0x3c5   :  { %3708 = vset.pattern.permute.xlu1 %v3950_v54 }
 0x3c6   :  { %2591 = vperm.xlu1 %3708, %v3527_v1  }
 0x3ca   :  { %3709 = vset.pattern.permute.xlu1 %v7366_v55 }
 0x3cb   :  { %2283 = vperm.xlu1 %3709, %v1959_v4  }
 0x3cf   :  { %3710 = vset.pattern.permute.xlu1 %v3950_v54 }
 0x3d0   :  { %2587 = vperm.xlu1 %3710, %v1969_v18  }
 0x3d4   :  { %3712 = vset.pattern.permute.xlu1 %v3948_v61 }
 0x3d5   :  { %2431 = vperm.xlu1 %3712, %v1959_v4  }
 0x3d9   :  { %3713 = vset.pattern.permute.xlu1 %v3950_v54 }
 0x3da   :  { %2583 = vperm.xlu1 %3713, %v3524_v41   ;;  %v5793_v41 = vrot.slane %v1983_v33, %v2596_v40 }
 0x3dc   :  { %7382 = vst [vmem:[#allocation92_spill] sm:$0xff] %v5793_v41 }
 0x3de   :  { %2579 = vperm.xlu1 %3713, %v1959_v4  }
 0x3e2   :  { %3714 = vset.pattern.permute.xlu1 %v3949_v37 }
 0x3e3   :  { %2727 = vperm.xlu1 %3714, %v1959_v4  }
 0x41a   :  { %v2148_v28 = vpop.permute.xlu0 %2147  ;;  %v2002_v6 = vpop.permute.xlu1 %2001 }
 0x41b   :  { %v5786_v3 = vadd.f32 %v5696_v0, %v2148_v28  ;;  %v5789_v31 = vadd.f32 %v5702_v27, %v2148_v28  ;;  %v2157_v4 = vadd.f32 %v5693_v17, %v2148_v28  ;;  %v2165_v1 = vadd.f32 %v5699_v13, %v2148_v28 }
 0x41c   :  { %v5798_v18 = vadd.f32 %v5705_v45, %v2148_v28  ;;  %v5801_v55 = vadd.f32 %v5708_v2, %v2148_v28  ;;  %v2027_v61 = vadd.f32 %v5717_v19, %v2002_v6  ;;  %v2035_v37 = vadd.f32 %v5721_v32, %v2002_v6 }
 0x41d   :  { %v6979_v62 = vrot.slane %v5786_v3, 1  ;;  %v6978_v34 = vrot.slane %v5789_v31, 1  ;;  %v2011_v54 = vadd.f32 %v5711_v35, %v2002_v6  ;;  %v2019_v49 = vadd.f32 %v5714_v11, %v2002_v6 }
 0x41e   :  { %7383 = vst [vmem:[#allocation93_spill] sm:$0xff] %v5798_v18  ;;  %7384 = vst [vmem:[#allocation48_spill] sm:$0xff] %v5801_v55  ;;  %v5810_v39 = vadd.f32 %v5724_v53, %v2002_v6  ;;  %v5813_v12 = vadd.f32 %v5727_v7, %v2002_v6  ;;  %v1997_v36 = vpop.permute.xlu1 %1996  ;;  %v2046_v46 = vrot.slane %v2027_v61, 1  ;;  %v2065_v43 = vrot.slane %v2035_v37, 1 }
 0x41f   :  { %v5817_v59 = vmin.f32 %v2157_v4, %v6979_v62  ;;  %v5821_v33 = vmax.f32 %v2165_v1, %v6978_v34  ;;  %v2296_v30 = vpop.permute.xlu0 %2295  ;;  %v2010_v40 = vadd.f32 %v5711_v35, %v1997_v36  ;;  %v2018_v28 = vadd.f32 %v5714_v11, %v1997_v36 }
 0x420   :  { %7385 = vst [vmem:[#allocation104_spill] sm:$0xff] %v5813_v12  ;;  %v5830_v6 = vadd.f32 %v5717_v19, %v1997_v36  ;;  %v5833_v4 = vadd.f32 %v5721_v32, %v1997_v36  ;;  %v5836_v1 = vadd.f32 %v5724_v53, %v1997_v36  ;;  %v5839_v61 = vadd.f32 %v5727_v7, %v1997_v36 }
 0x421   :  { %7386 = vst [vmem:[#allocation55_spill] sm:$0xff] %v5817_v59  ;;  %7387 = vst [vmem:[#allocation96_spill] sm:$0xff] %v5821_v33  ;;  %v2305_v37 = vadd.f32 %v5731_v22, %v2296_v30  ;;  %v2313_v63 = vadd.f32 %v5734_v56, %v2296_v30  ;;  %v2321_v62 = vadd.f32 %v5737_v14, %v2296_v30 }
 0x422   :  { %v6989_v29 = vrot.slane %v5830_v6, 1  ;;  %v6991_v34 = vrot.slane %v5833_v4, 1  ;;  %v2329_v21 = vadd.f32 %v5743_v9, %v2296_v30  ;;  %v5850_v36 = vadd.f32 %v5746_v24, %v2296_v30 }
 0x423   :  { %v2144_v15 = vpop.permute.xlu1 %2143  ;;  %v5853_v59 = vadd.f32 %v5749_v16, %v2296_v30  ;;  %v2339_v10 = vrot.slane %v2321_v62, 1  ;;  %v2292_v52 = vpop.permute.xlu0 %2291  ;;  %v5861_v50 = vmin.f32 %v2011_v54, %v2046_v46  ;;  %v5863_v33 = vmax.f32 %v2019_v49, %v2065_v43 }
 0x424   :  { %7388 = vst [vmem:[#allocation91_spill] sm:$0xff] %v5850_v36  ;;  %v2047_v41 = vsel %vm2040_vm3, %v6989_v29, %v2046_v46  ;;  %v2066_v8 = vsel %vm2040_vm3, %v6991_v34, %v2065_v43  ;;  %v2358_v44 = vrot.slane %v2329_v21, 1  ;;  %v7391_v30 = vrot.slane %v5810_v39, 2 }
 0x425   :  { %7389 = vst [vmem:[#allocation105_spill] sm:$0xff] %v5853_v59  ;;  %7390 = vst [vmem:[#allocation97_spill] sm:$0xff] %v5863_v33  ;;  %v2054_v47 = vmin.f32 %v2010_v40, %v2047_v41  ;;  %v2073_v51 = vmax.f32 %v2018_v28, %v2066_v8  ;;  %v7392_v42 = vrot.slane %v5836_v1, 2  ;;  %v7393_v29 = vrot.slane %v5813_v12, 2 }
 0x426   :  { %v7394_v26 = vrot.slane %v5839_v61, 2  ;;  %v5875_v21 = vmin.f32 %v2305_v37, %v2339_v10  ;;  %v5877_v54 = vmax.f32 %v2313_v63, %v2358_v44  ;;  %v5889_v40 = vadd.f32 %v5743_v9, %v2292_v52 }
 0x427   :  { %v2102_v25 = vsel %vm2095_vm4, %v7392_v42, %v7391_v30  ;;  %v5886_v42 = vadd.f32 %v5737_v14, %v2292_v52  ;;  %v5907_v63 = vadd.f32 %v5702_v27, %v2144_v15  ;;  %v2156_v30 = vadd.f32 %v5693_v17, %v2144_v15 }
 0x428   :  { %v2121_v62 = vsel %vm2095_vm4, %v7394_v26, %v7393_v29  ;;  %7395 = vst [vmem:[#allocation71_spill] sm:$0xff] %v5875_v21  ;;  %7396 = vst [vmem:[#allocation112_spill] sm:$0xff] %v5877_v54  ;;  %v5879_v49 = vmin.f32 %v2054_v47, %v2102_v25  ;;  %v1992_v43 = vpop.permute.xlu1 %1991  ;;  %v5892_v26 = vadd.f32 %v5746_v24, %v2292_v52  ;;  %v6997_v37 = vrot.slane %v5889_v40, 1  ;;  %v1987_v46 = vpop.permute.xlu0 %1986 }
 0x429   :  { %v5881_v41 = vmax.f32 %v2073_v51, %v2121_v62  ;;  %v5895_v29 = vadd.f32 %v5749_v16, %v2292_v52  ;;  %v5898_v51 = vadd.f32 %v5731_v22, %v2292_v52  ;;  %v5901_v25 = vadd.f32 %v5734_v56, %v2292_v52 }
 0x42a   :  { %7397 = vst [vmem:[#allocation78_spill] sm:$0xff] %v5879_v49  ;;  %7399 = vst [vmem:[#allocation101_spill] sm:$0xff] %v5892_v26  ;;  %v5904_v47 = vadd.f32 %v5696_v0, %v2144_v15  ;;  %v6996_v28 = vrot.slane %v5886_v42, 1  ;;  %v2164_v62 = vadd.f32 %v5699_v13, %v2144_v15  ;;  %v5916_v34 = vadd.f32 %v5705_v45, %v2144_v15 }
 0x42b   :  { %7398 = vst [vmem:[#allocation100_spill] sm:$0xff] %v5881_v41  ;;  %7400 = vst [vmem:[#allocation113_spill] sm:$0xff] %v5895_v29  ;;  %v5919_v41 = vadd.f32 %v5708_v2, %v2144_v15  ;;  %v5929_v54 = vsel %vm2040_vm3, %v6997_v37, %v2358_v44  ;;  %v7405_v21 = vrot.slane %v5786_v3, 1  ;;  %v5946_v44 = vadd.f32 %v5711_v35, %v1987_v46 }
 0x42c   :  { %7401 = vst [vmem:[#allocation107_spill] sm:$0xff] %v5898_v51  ;;  %7402 = vst [vmem:[#allocation123_spill] sm:$0xff] %v5901_v25  ;;  %v5924_v49 = vsel %vm2040_vm3, %v6996_v28, %v2339_v10  ;;  %v7406_v15 = vrot.slane %v5904_v47, 1  ;;  %v7407_v10 = vrot.slane %v5789_v31, 1  ;;  %v7408_v28 = vrot.slane %v5907_v63, 1 }
 0x42d   :  { %7403 = vst [vmem:[#allocation41_spill] sm:$0xff] %v5924_v49  ;;  %7404 = vst [vmem:[#allocation83_spill] sm:$0xff] %v5929_v54  ;;  %v5933_v59 = vpop.permute.xlu1 %2139  ;;  %v5949_v8 = vadd.f32 %v5714_v11, %v1987_v46  ;;  %v7007_v3 = vrot.slane %v5916_v34, 2  ;;  %v7010_v29 = vrot.slane %v5919_v41, 2  ;;  %v2032_v31 = vadd.f32 %v5721_v32, %v1987_v46  ;;  %v2440_v54 = vpop.permute.xlu0 %2439 }
 0x42e   :  { %v2192_v36 = vsel %vm2040_vm3, %v7406_v15, %v7405_v21  ;;  %v2211_v33 = vsel %vm2040_vm3, %v7408_v28, %v7407_v10  ;;  %7409 = vst [vmem:[#allocation117_spill] sm:$0xff] %v5946_v44  ;;  %v2024_v21 = vadd.f32 %v5717_v19, %v1987_v46  ;;  %v2079_v15 = vadd.f32 %v5724_v53, %v1987_v46 }
 0x42f   :  { %7410 = vst [vmem:[#allocation72_spill] sm:$0xff] %v5949_v8  ;;  %v2199_v52 = vmin.f32 %v2156_v30, %v2192_v36  ;;  %v2218_v37 = vmax.f32 %v2164_v62, %v2211_v33  ;;  %v2087_v28 = vadd.f32 %v5727_v7, %v1987_v46  ;;  %v7411_v33 = vrot.slane %v5798_v18, 2 }
 0x430   :  { %v7412_v30 = vrot.slane %v5801_v55, 2  ;;  %v2009_v10 = vadd.f32 %v5711_v35, %v1992_v43  ;;  %v2017_v26 = vadd.f32 %v5714_v11, %v1992_v43  ;;  %v2041_v49 = vrot.slane %v2024_v21, 1 }
 0x431   :  { %v2246_v36 = vsel %vm2095_vm4, %v7007_v3, %v7411_v33  ;;  %v2060_v51 = vrot.slane %v2032_v31, 1  ;;  %v2025_v33 = vadd.f32 %v5717_v19, %v1992_v43  ;;  %v2033_v3 = vadd.f32 %v5721_v32, %v1992_v43 }
 0x432   :  { %v2265_v62 = vsel %vm2095_vm4, %v7010_v29, %v7412_v30  ;;  %v5971_v12 = vmin.f32 %v2199_v52, %v2246_v36  ;;  %v5977_v25 = vpop.permute.xlu1 %2443  ;;  %v2096_v55 = vrot.slane %v2079_v15, 2  ;;  %v2115_v18 = vrot.slane %v2087_v28, 2 }
 0x433   :  { %v5973_v46 = vmax.f32 %v2218_v37, %v2265_v62  ;;  %v2080_v52 = vadd.f32 %v5724_v53, %v1992_v43  ;;  %v2088_v37 = vadd.f32 %v5727_v7, %v1992_v43  ;;  %v2042_v36 = vrot.slane %v2025_v33, 1 }
 0x434   :  { %v2061_v30 = vrot.slane %v2033_v3, 1  ;;  %v5984_v35 = vadd.f32 %v5757_v20, %v2440_v54  ;;  %v5987_v11 = vadd.f32 %v5759_v60, %v2440_v54  ;;  %v5990_v19 = vadd.f32 %v5761_v57, %v2440_v54 }
 0x435   :  { %v2097_v21 = vrot.slane %v2080_v52, 2  ;;  %v2116_v31 = vrot.slane %v2088_v37, 2  ;;  %v5993_v32 = vadd.f32 %v5763_v5, %v2440_v54  ;;  %v5996_v53 = vsel %vm2040_vm3, %v2041_v49, %v2042_v36 }
 0x436   :  { %7414 = vst [vmem:[#allocation102_spill] sm:$0xff] %v5996_v53  ;;  %v7415_v7 = vrot.slane %v5830_v6, 1  ;;  %v6002_v3 = vsel %vm2040_vm3, %v2060_v51, %v2061_v30  ;;  %v7417_v15 = vrot.slane %v5833_v4, 1  ;;  %v6008_v52 = vadd.f32 %v5753_v48, %v2440_v54 }
 0x437   :  { %7413 = vst [vmem:[#allocation29_spill] sm:$0xff] %v5993_v32  ;;  %7416 = vst [vmem:[#allocation103_spill] sm:$0xff] %v6002_v3  ;;  %v6011_v37 = vadd.f32 %v5755_v58, %v2440_v54  ;;  %v2136_v49 = vpop.permute.xlu1 %2135  ;;  %v7430_v53 = vrot.slane %v5984_v35, 1 }
 0x438   :  { %v2045_v43 = vsel %vm2040_vm3, %v2042_v36, %v7415_v7  ;;  %v2064_v28 = vsel %vm2040_vm3, %v2061_v30, %v7417_v15  ;;  %v7418_v36 = vrot.slane %v5836_v1, 2  ;;  %v2436_v30 = vpop.permute.xlu0 %2435  ;;  %v6024_v7 = vsel %vm2095_vm4, %v2096_v55, %v2097_v21 }
 0x439   :  { %v2053_v62 = vmin.f32 %v2009_v10, %v2045_v43  ;;  %v2072_v33 = vmax.f32 %v2017_v26, %v2064_v28  ;;  %v7419_v10 = vrot.slane %v5839_v61, 2  ;;  %7420 = vst [vmem:[#allocation43_spill] sm:$0xff] %v6024_v7  ;;  %v6029_v43 = vsel %vm2095_vm4, %v2115_v18, %v2116_v31 }
 0x43a   :  { %v2100_v4 = vsel %vm2095_vm4, %v2097_v21, %v7418_v36  ;;  %7422 = vst [vmem:[#allocation118_spill] sm:$0xff] %v6029_v43  ;;  %v2179_v55 = vadd.f32 %v5702_v27, %v5933_v59  ;;  %v6043_v18 = vadd.f32 %v5705_v45, %v5933_v59  ;;  %v6047_v21 = vadd.f32 %v5708_v2, %v5933_v59 }
 0x43b   :  { %v2119_v26 = vsel %vm2095_vm4, %v2116_v31, %v7419_v10  ;;  %v6026_v54 = vmin.f32 %v2053_v62, %v2100_v4  ;;  %v2171_v10 = vadd.f32 %v5696_v0, %v5933_v59  ;;  %v2155_v31 = vadd.f32 %v5693_v17, %v5933_v59 }
 0x43c   :  { %v6031_v15 = vmax.f32 %v2072_v33, %v2119_v26  ;;  %v2163_v62 = vadd.f32 %v5699_v13, %v5933_v59  ;;  %v6054_v33 = vadd.f32 %v5757_v20, %v2436_v30  ;;  %v6057_v4 = vadd.f32 %v5759_v60, %v2436_v30  ;;  %v6061_v36 = vpop.permute.xlu1 %2287  ;;  %v6071_v3 = vpop.permute.xlu0 %2739 }
 0x43d   :  { %7421 = vst [vmem:[#allocation64_spill] sm:$0xff] %v6026_v54  ;;  %v2187_v26 = vrot.slane %v2171_v10, 1  ;;  %v2206_v51 = vrot.slane %v2179_v55, 1  ;;  %v2241_v6 = vrot.slane %v6043_v18, 2  ;;  %v2260_v61 = vrot.slane %v6047_v21, 2 }
 0x43e   :  { %7423 = vst [vmem:[#allocation79_spill] sm:$0xff] %v6031_v15  ;;  %v6066_v59 = vadd.f32 %v5761_v57, %v2436_v30  ;;  %v6069_v28 = vadd.f32 %v5763_v5, %v2436_v30  ;;  %v7426_v10 = vrot.slane %v5904_v47, 1  ;;  %v7427_v18 = vrot.slane %v5907_v63, 1 }
 0x43f   :  { %v6080_v29 = vadd.f32 %v5753_v48, %v2436_v30  ;;  %v6083_v1 = vadd.f32 %v5755_v58, %v2436_v30  ;;  %v7431_v44 = vrot.slane %v6054_v33, 1  ;;  %v7434_v63 = vrot.slane %v6057_v4, 1 }
 0x440   :  { %7424 = vst [vmem:[#allocation26_spill] sm:$0xff] %v6066_v59  ;;  %7425 = vst [vmem:[#allocation76_spill] sm:$0xff] %v6069_v28  ;;  %v2190_v55 = vsel %vm2040_vm3, %v2187_v26, %v7426_v10  ;;  %v2209_v21 = vsel %vm2040_vm3, %v2206_v51, %v7427_v18  ;;  %v7433_v10 = vrot.slane %v5987_v11, 1  ;;  %v7436_v7 = vrot.slane %v5916_v34, 2  ;;  %v2736_v34 = vpop.permute.xlu0 %2735 }
 0x441   :  { %7428 = vst [vmem:[#allocation59_spill] sm:$0xff] %v6080_v29  ;;  %7429 = vst [vmem:[#allocation69_spill] sm:$0xff] %v6083_v1  ;;  %v2198_v8 = vmin.f32 %v2155_v31, %v2190_v55  ;;  %v2217_v43 = vmax.f32 %v2163_v62, %v2209_v21  ;;  %v6090_v47 = vsel %vm2040_vm3, %v7431_v44, %v7430_v53  ;;  %v7437_v31 = vrot.slane %v5919_v41, 2 }
 0x442   :  { %7432 = vst [vmem:[#allocation33_spill] sm:$0xff] %v6090_v47  ;;  %v6097_v18 = vsel %vm2040_vm3, %v7434_v63, %v7433_v10  ;;  %v2244_v30 = vsel %vm2095_vm4, %v2241_v6, %v7436_v7  ;;  %v6117_v7 = vadd.f32 %v5753_v48, %v5977_v25  ;;  %v6121_v41 = vadd.f32 %v5755_v58, %v5977_v25  ;;  %v7448_v47 = vld [vmem:[#allocation67_spill] sm:$0xff] }
 0x443   :  { %7435 = vst [vmem:[#allocation121_spill] sm:$0xff] %v6097_v18  ;;  %v2263_v62 = vsel %vm2095_vm4, %v2260_v61, %v7437_v31  ;;  %v6109_v53 = vmin.f32 %v2198_v8, %v2244_v30  ;;  %v6125_v63 = vadd.f32 %v5757_v20, %v5977_v25  ;;  %v6129_v8 = vadd.f32 %v5759_v60, %v5977_v25 }
 0x444   :  { %v6111_v21 = vmax.f32 %v2217_v43, %v2263_v62  ;;  %v6131_v43 = vpop.permute.xlu1 %2591  ;;  %v6135_v30 = vadd.f32 %v5761_v57, %v5977_v25  ;;  %v6139_v31 = vadd.f32 %v5763_v5, %v5977_v25  ;;  %v2170_v62 = vadd.f32 %v5696_v0, %v2136_v49 }
 0x445   :  { %7438 = vst [vmem:[#allocation75_spill] sm:$0xff] %v6109_v53  ;;  %v2178_v44 = vadd.f32 %v5702_v27, %v2136_v49  ;;  %v2154_v55 = vadd.f32 %v5693_v17, %v2136_v49  ;;  %v2162_v10 = vadd.f32 %v5699_v13, %v2136_v49  ;;  %v2224_v18 = vadd.f32 %v5705_v45, %v2136_v49  ;;  %v7442_v45 = vld [vmem:[#allocation90_spill] sm:$0xff] }
 0x446   :  { %7439 = vst [vmem:[#allocation116_spill] sm:$0xff] %v6111_v21  ;;  %v2232_v1 = vadd.f32 %v5708_v2, %v2136_v49  ;;  %v2186_v29 = vrot.slane %v2170_v62, 1  ;;  %v6150_v0 = vadd.f32 %v5769_v38, %v2736_v34  ;;  %v6153_v27 = vadd.f32 %v5771_v23, %v2736_v34  ;;  %v7444_v49 = vld [vmem:[#allocation126_spill] sm:$0xff] }
 0x447   :  { %v2205_v25 = vrot.slane %v2178_v44, 1  ;;  %v2240_v59 = vrot.slane %v2224_v18, 2  ;;  %v6158_v2 = vadd.f32 %v7442_v45, %v2736_v34  ;;  %v6161_v28 = vadd.f32 %v7444_v49, %v2736_v34  ;;  %v7446_v18 = vld [vmem:[#allocation106_spill] sm:$0xff] }
 0x448   :  { %v2259_v21 = vrot.slane %v2232_v1, 2  ;;  %7440 = vst [vmem:[#allocation108_spill] sm:$0xff] %v6150_v0  ;;  %7441 = vst [vmem:[#allocation39_spill] sm:$0xff] %v6153_v27  ;;  %v2188_v17 = vsel %vm2040_vm3, %v2186_v29, %v2187_v26  ;;  %v6164_v1 = vadd.f32 %v7446_v18, %v2736_v34  ;;  %v6167_v53 = vadd.f32 %v7448_v47, %v2736_v34  ;;  %v2284_v15 = vpop.permute.xlu1 %2283 }
 0x449   :  { %v2207_v13 = vsel %vm2040_vm3, %v2205_v25, %v2206_v51  ;;  %7443 = vst [vmem:[#allocation35_spill] sm:$0xff] %v6158_v2  ;;  %7445 = vst [vmem:[#allocation31_spill] sm:$0xff] %v6161_v28  ;;  %v2197_v62 = vmin.f32 %v2154_v55, %v2188_v17  ;;  %v2242_v54 = vsel %vm2095_vm4, %v2240_v59, %v2241_v6  ;;  %v2732_v25 = vpop.permute.xlu0 %2731  ;;  %v7468_v51 = vld [vmem:[#allocation94_spill] sm:$0xff] }
 0x44a   :  { %v2216_v44 = vmax.f32 %v2162_v10, %v2207_v13  ;;  %7447 = vst [vmem:[#allocation70_spill] sm:$0xff] %v6164_v1  ;;  %7449 = vst [vmem:[#allocation115_spill] sm:$0xff] %v6167_v53  ;;  %v2261_v29 = vsel %vm2095_vm4, %v2259_v21, %v2260_v61  ;;  %v2319_v34 = vadd.f32 %v5737_v14, %v6061_v36  ;;  %v7480_v1 = vld [vmem:[#allocation92_spill] sm:$0xff] }
 0x44b   :  { %v6173_v32 = vmin.f32 %v2197_v62, %v2242_v54  ;;  %v2327_v6 = vadd.f32 %v5743_v9, %v6061_v36  ;;  %v6185_v61 = vadd.f32 %v5746_v24, %v6061_v36  ;;  %v6189_v54 = vadd.f32 %v5749_v16, %v6061_v36 }
 0x44c   :  { %v6175_v55 = vmax.f32 %v2216_v44, %v2261_v29  ;;  %v6193_v59 = vadd.f32 %v5731_v22, %v6061_v36  ;;  %v6197_v21 = vadd.f32 %v5734_v56, %v6061_v36  ;;  %v6200_v13 = vadd.f32 %v5769_v38, %v2732_v25 }
 0x44d   :  { %7450 = vst [vmem:[#allocation86_spill] sm:$0xff] %v6173_v32  ;;  %7452 = vst [vmem:[#allocation128_spill] sm:$0xff] %v6185_v61  ;;  %v6203_v62 = vadd.f32 %v5771_v23, %v2732_v25  ;;  %v2335_v44 = vrot.slane %v2319_v34, 1  ;;  %v2354_v29 = vrot.slane %v2327_v6, 1  ;;  %v6206_v17 = vadd.f32 %v7446_v18, %v2732_v25  ;;  %v2588_v32 = vpop.permute.xlu1 %2587 }
 0x44e   :  { %7451 = vst [vmem:[#allocation27_spill] sm:$0xff] %v6175_v55  ;;  %7453 = vst [vmem:[#allocation87_spill] sm:$0xff] %v6189_v54  ;;  %v6209_v10 = vadd.f32 %v7448_v47, %v2732_v25  ;;  %v6214_v36 = vadd.f32 %v7442_v45, %v2732_v25  ;;  %v6217_v55 = vadd.f32 %v7444_v49, %v2732_v25  ;;  %v7462_v34 = vrot.slane %v5886_v42, 1  ;;  %v7466_v42 = vld [vmem:[#allocation127_spill] sm:$0xff] }
 0x44f   :  { %7454 = vst [vmem:[#allocation98_spill] sm:$0xff] %v6193_v59  ;;  %7455 = vst [vmem:[#allocation47_spill] sm:$0xff] %v6197_v21  ;;  %v6237_v61 = vadd.f32 %v7466_v42, %v6131_v43  ;;  %v7469_v54 = vld [vmem:[#allocation95_spill] sm:$0xff]  ;;  %v2318_v25 = vadd.f32 %v5737_v14, %v2284_v15  ;;  %v6256_v21 = vadd.f32 %v5746_v24, %v2284_v15 }
 0x450   :  { %7456 = vst [vmem:[#allocation88_spill] sm:$0xff] %v6200_v13  ;;  %7457 = vst [vmem:[#allocation34_spill] sm:$0xff] %v6203_v62  ;;  %v6222_v6 = vsel %vm2040_vm3, %v2335_v44, %v7462_v34  ;;  %v7467_v34 = vld [vmem:[#allocation25_spill] sm:$0xff]  ;;  %v6247_v62 = vadd.f32 %v7468_v51, %v6131_v43  ;;  %v6251_v13 = vadd.f32 %v7469_v54, %v6131_v43 }
 0x451   :  { %7458 = vst [vmem:[#allocation74_spill] sm:$0xff] %v6206_v17  ;;  %7459 = vst [vmem:[#allocation82_spill] sm:$0xff] %v6209_v10  ;;  %v7464_v17 = vrot.slane %v5889_v40, 1  ;;  %v6241_v40 = vadd.f32 %v7467_v34, %v6131_v43  ;;  %v6262_v26 = vadd.f32 %v5731_v22, %v2284_v15  ;;  %v2334_v14 = vrot.slane %v2318_v25, 1  ;;  %v2432_v59 = vpop.permute.xlu1 %2431  ;;  %v7479_v25 = vld [vmem:[#allocation54_spill] sm:$0xff] }
 0x452   :  { %7460 = vst [vmem:[#allocation77_spill] sm:$0xff] %v6214_v36  ;;  %7461 = vst [vmem:[#allocation46_spill] sm:$0xff] %v6217_v55  ;;  %v6268_v55 = vadd.f32 %v7468_v51, %v2588_v32  ;;  %v6271_v36 = vadd.f32 %v7469_v54, %v2588_v32  ;;  %v6274_v24 = vadd.f32 %v7466_v42, %v2588_v32  ;;  %v7481_v22 = vrot.slane %v5810_v39, 2 }
 0x453   :  { %7463 = vst [vmem:[#allocation66_spill] sm:$0xff] %v6222_v6  ;;  %v6227_v10 = vsel %vm2040_vm3, %v2354_v29, %v7464_v17  ;;  %7470 = vst [vmem:[#allocation63_spill] sm:$0xff] %v6256_v21  ;;  %v6259_v6 = vadd.f32 %v5749_v16, %v2284_v15  ;;  %v6265_v17 = vadd.f32 %v5734_v56, %v2284_v15  ;;  %v7490_v21 = vld [vmem:[#allocation96_spill] sm:$0xff] }
 0x454   :  { %7465 = vst [vmem:[#allocation114_spill] sm:$0xff] %v6227_v10  ;;  %v2326_v10 = vadd.f32 %v5743_v9, %v2284_v15  ;;  %7472 = vst [vmem:[#allocation51_spill] sm:$0xff] %v6262_v26  ;;  %v6277_v16 = vadd.f32 %v7467_v34, %v2588_v32  ;;  %v6284_v2 = vsel %vm2040_vm3, %v2334_v14, %v2335_v44  ;;  %v7482_v15 = vld [vmem:[#allocation104_spill] sm:$0xff]  ;;  %v7487_v26 = vld [vmem:[#allocation55_spill] sm:$0xff] }
 0x455   :  { %7471 = vst [vmem:[#allocation28_spill] sm:$0xff] %v6259_v6  ;;  %7473 = vst [vmem:[#allocation45_spill] sm:$0xff] %v6265_v17  ;;  %v6290_v53 = vadd.f32 %v7479_v25, %v2588_v32  ;;  %v6293_v27 = vadd.f32 %v7480_v1, %v2588_v32  ;;  %v6300_v28 = vadd.f32 %v5753_v48, %v2432_v59  ;;  %v7483_v48 = vrot.slane %v7482_v15, 2  ;;  %v7488_v6 = vld [vmem:[#allocation48_spill] sm:$0xff] }
 0x456   :  { %7474 = vst [vmem:[#allocation50_spill] sm:$0xff] %v6271_v36  ;;  %v2353_v9 = vrot.slane %v2326_v10, 1  ;;  %7475 = vst [vmem:[#allocation38_spill] sm:$0xff] %v6274_v24  ;;  %v6303_v44 = vadd.f32 %v5755_v58, %v2432_v59  ;;  %v2474_v14 = vadd.f32 %v5759_v60, %v2432_v59  ;;  %v6311_v32 = vadd.f32 %v5763_v5, %v2432_v59  ;;  %v7485_v58 = vld [vmem:[#allocation93_spill] sm:$0xff]  ;;  %v7493_v24 = vld [vmem:[#allocation71_spill] sm:$0xff] }
 0x457   :  { %7476 = vst [vmem:[#allocation111_spill] sm:$0xff] %v6277_v16  ;;  %7477 = vst [vmem:[#allocation99_spill] sm:$0xff] %v6284_v2  ;;  %v2110_v56 = vmin.f32 %v5861_v50, %v7481_v22  ;;  %v7486_v2 = vrot.slane %v7485_v58, 2  ;;  %v7489_v60 = vrot.slane %v7488_v6, 2  ;;  %v7491_v22 = vld [vmem:[#allocation91_spill] sm:$0xff]  ;;  %v7496_v36 = vld [vmem:[#allocation112_spill] sm:$0xff] }
 0x458   :  { %v6287_v10 = vsel %vm2040_vm3, %v2353_v9, %v2354_v29  ;;  %v2466_v29 = vadd.f32 %v5757_v20, %v2432_v59  ;;  %v6308_v9 = vadd.f32 %v5761_v57, %v2432_v59  ;;  %v2501_v39 = vrot.slane %v2474_v14, 1 }
 0x459   :  { %7478 = vst [vmem:[#allocation68_spill] sm:$0xff] %v6287_v10  ;;  %v7484_v10 = vld [vmem:[#allocation97_spill] sm:$0xff]  ;;  %v2254_v20 = vmin.f32 %v7487_v26, %v7486_v2  ;;  %v2273_v57 = vmax.f32 %v7490_v21, %v7489_v60  ;;  %v7492_v15 = vrot.slane %v7491_v22, 2  ;;  %v7497_v26 = vrot.slane %v6054_v33, 1 }
 0x45a   :  { %v2129_v17 = vmax.f32 %v7484_v10, %v7483_v48  ;;  %v2482_v59 = vrot.slane %v2466_v29, 1  ;;  %v7494_v48 = vld [vmem:[#allocation105_spill] sm:$0xff]  ;;  %v7498_v6 = vrot.slane %v6057_v4, 1  ;;  %v7063_v4 = vrot.slane %v6135_v30, 2 }
 0x45b   :  { %v2277_v50 = vadd.f32 %v2273_v57, %v2254_v20  ;;  %v2402_v10 = vmin.f32 %v7493_v24, %v7492_v15  ;;  %v7495_v58 = vrot.slane %v7494_v48, 2  ;;  %v7500_v24 = vrot.slane %v6129_v8, 1 }
 0x45c   :  { %v2133_v16 = vadd.f32 %v2129_v17, %v2110_v56  ;;  %v6336_v21 = vsel %vm2040_vm3, %v2482_v59, %v7497_v26  ;;  %v6341_v29 = vsel %vm2040_vm3, %v2501_v39, %v7498_v6  ;;  %v7499_v17 = vrot.slane %v6125_v63, 1 }
 0x45d   :  { %v2421_v2 = vmax.f32 %v7496_v36, %v7495_v58  ;;  %v2515_v14 = vmax.f32 %v6121_v41, %v7500_v24  ;;  %v7062_v57 = vrot.slane %v6139_v31, 2  ;;  %v7059_v59 = vrot.slane %v6247_v62, 1 }
 0x45e   :  { %v2496_v56 = vmin.f32 %v6117_v7, %v7499_v17  ;;  %v7058_v7 = vrot.slane %v6251_v13, 1  ;;  %v2281_v41 = vadd.f32 %v2277_v50, %v2133_v16  ;;  %v6361_v15 = vadd.f32 %v7479_v25, %v6131_v43 }
 0x45f   :  { %v2425_v60 = vadd.f32 %v2421_v2, %v2402_v10  ;;  %v6365_v58 = vadd.f32 %v7480_v1, %v6131_v43  ;;  %v2584_v10 = vpop.permute.xlu1 %2583  ;;  %v2569_v26 = vmax.f32 %v2515_v14, %v7062_v57  ;;  %v2644_v6 = vmin.f32 %v6237_v61, %v7059_v59 }
 0x460   :  { %v2550_v2 = vmin.f32 %v2496_v56, %v7063_v4  ;;  %v2663_v16 = vmax.f32 %v6241_v40, %v7058_v7  ;;  %v2689_v17 = vrot.slane %v6361_v15, 2  ;;  %v6381_v24 = vadd.f32 %v5769_v38, %v6071_v3  ;;  %v7508_v4 = vld [vmem:[#allocation107_spill] sm:$0xff] }
 0x461   :  { %v2429_v50 = vadd.f32 %v2425_v60, %v2281_v41  ;;  %v7057_v43 = vrot.slane %v6365_v58, 2  ;;  %v6385_v14 = vadd.f32 %v5771_v23, %v6071_v3  ;;  %v6389_v61 = vadd.f32 %v7442_v45, %v6071_v3 }
 0x462   :  { %v2573_v56 = vadd.f32 %v2569_v26, %v2550_v2  ;;  %v6393_v40 = vadd.f32 %v7444_v49, %v6071_v3  ;;  %v2698_v60 = vmin.f32 %v2644_v6, %v2689_v17  ;;  %v2749_v15 = vadd.f32 %v7446_v18, %v6071_v3 }
 0x463   :  { %v2717_v41 = vmax.f32 %v2663_v16, %v7057_v43  ;;  %v2783_v2 = vrot.slane %v6381_v24, 1  ;;  %v2757_v39 = vadd.f32 %v7448_v47, %v6071_v3  ;;  %v2802_v36 = vrot.slane %v6385_v14, 1  ;;  %v2580_v16 = vpop.permute.xlu1 %2579 }
 0x464   :  { %v2577_v26 = vadd.f32 %v2573_v56, %v2429_v50  ;;  %v7060_v20 = vrot.slane %v6389_v61, 2  ;;  %v7061_v6 = vrot.slane %v6393_v40, 2  ;;  %v6406_v0 = vadd.f32 %v7468_v51, %v2584_v10 }
 0x465   :  { %v2721_v33 = vadd.f32 %v2717_v41, %v2698_v60  ;;  %v2792_v5 = vmin.f32 %v2749_v15, %v2783_v2  ;;  %v2811_v43 = vmax.f32 %v2757_v39, %v2802_v36  ;;  %v6409_v7 = vadd.f32 %v7469_v54, %v2584_v10  ;;  %v7503_v41 = vld [vmem:[#allocation78_spill] sm:$0xff] }
 0x466   :  { %v6412_v50 = vadd.f32 %v7479_v25, %v2584_v10  ;;  %v6415_v3 = vadd.f32 %v7480_v1, %v2584_v10  ;;  %v6420_v14 = vadd.f32 %v7466_v42, %v2584_v10  ;;  %v6423_v60 = vadd.f32 %v7467_v34, %v2584_v10 }
 0x467   :  { %v2725_v24 = vadd.f32 %v2721_v33, %v2577_v26  ;;  %v2846_v56 = vmin.f32 %v2792_v5, %v7060_v20  ;;  %v2865_v39 = vmax.f32 %v2811_v43, %v7061_v6  ;;  %v6430_v59 = vadd.f32 %v7466_v42, %v2580_v16  ;;  %v7504_v6 = vld [vmem:[#allocation100_spill] sm:$0xff] }
 0x468   :  { %v6435_v26 = vadd.f32 %v7468_v51, %v2580_v16  ;;  %v6438_v10 = vadd.f32 %v7469_v54, %v2580_v16  ;;  %v6441_v43 = vadd.f32 %v7467_v34, %v2580_v16  ;;  %v2132_v15 = vadd.f32 %v7504_v6, %v7503_v41 }
 0x469   :  { %7501 = vst [vmem:[#allocation120_spill] sm:$0xff] %v6430_v59  ;;  %v2869_v20 = vadd.f32 %v2865_v39, %v2846_v56  ;;  %v2276_v42 = vadd.f32 %v5973_v46, %v5971_v12  ;;  %v6449_v5 = vadd.f32 %v7479_v25, %v2580_v16  ;;  %v6452_v51 = vadd.f32 %v7480_v1, %v2580_v16  ;;  %v7506_v56 = vld [vmem:[#allocation101_spill] sm:$0xff] }
 0x46a   :  { %7502 = vst [vmem:[#allocation122_spill] sm:$0xff] %v6441_v43  ;;  %v7505_v54 = vrot.slane %v7491_v22, 2  ;;  %v7507_v39 = vrot.slane %v7506_v56, 2  ;;  %v2649_v6 = vrot.slane %v6438_v10, 1  ;;  %v7509_v12 = vld [vmem:[#allocation41_spill] sm:$0xff]  ;;  %v7511_v25 = vrot.slane %v7494_v48, 2 }
 0x46b   :  { %v2873_v57 = vadd.f32 %v2869_v20, %v2725_v24  ;;  %v2280_v41 = vadd.f32 %v2276_v42, %v2132_v15  ;;  %v7510_v46 = vmin.f32 %v7508_v4, %v7509_v12  ;;  %v7512_v43 = vld [vmem:[#allocation113_spill] sm:$0xff]  ;;  %v7514_v22 = vrot.slane %v6125_v63, 1 }
 0x46c   :  { %v2394_v34 = vsel %vm2095_vm4, %v7507_v39, %v7505_v54  ;;  %v7513_v59 = vrot.slane %v7512_v43, 2  ;;  %v7515_v16 = vrot.slane %v5984_v35, 1  ;;  %v7516_v20 = vrot.slane %v6129_v8, 1 }
 0x46d   :  { %v2401_v33 = vmin.f32 %v7510_v46, %v2394_v34  ;;  %v7517_v24 = vrot.slane %v5987_v11, 1  ;;  %v7518_v4 = vrot.slane %v6135_v30, 2  ;;  %v7519_v48 = vrot.slane %v5990_v19, 2  ;;  %v7521_v34 = vld [vmem:[#allocation83_spill] sm:$0xff]  ;;  %v7524_v11 = vld [vmem:[#allocation29_spill] sm:$0xff] }
 0x46e   :  { %v2413_v1 = vsel %vm2095_vm4, %v7513_v59, %v7511_v25  ;;  %v2488_v54 = vsel %vm2040_vm3, %v7515_v16, %v7514_v22  ;;  %v2877_v39 = vmul.f32 0.5, %v2873_v57  ;;  %v7520_v59 = vld [vmem:[#allocation123_spill] sm:$0xff]  ;;  %v7523_v8 = vrot.slane %v6139_v31, 2 }
 0x46f   :  { %v2507_v15 = vsel %vm2040_vm3, %v7517_v24, %v7516_v20  ;;  %v2542_v42 = vsel %vm2095_vm4, %v7519_v48, %v7518_v4  ;;  %v7522_v63 = vmax.f32 %v7520_v59, %v7521_v34  ;;  %v2495_v35 = vmin.f32 %v6008_v52, %v2488_v54  ;;  %v7529_v24 = vld [vmem:[#allocation50_spill] sm:$0xff]  ;;  %v7533_v59 = vld [vmem:[#allocation111_spill] sm:$0xff] }
 0x470   :  { %v2514_v46 = vmax.f32 %v6011_v37, %v2507_v15  ;;  %v7525_v25 = vrot.slane %v7524_v11, 2  ;;  %v7526_v30 = vrot.slane %v6247_v62, 1  ;;  %v7527_v16 = vrot.slane %v6268_v55, 1  ;;  %3528 = vmatprep.subr.msk.mxu1 %vm2095_vm4, %v2877_v39  ;;  %v7532_v62 = vld [vmem:[#allocation38_spill] sm:$0xff] }
 0x471   :  { %v2420_v12 = vmax.f32 %v7522_v63, %v2413_v1  ;;  %v7528_v20 = vrot.slane %v6251_v13, 1  ;;  %v7530_v1 = vrot.slane %v7529_v24, 1  ;;  %v7531_v37 = vrot.slane %v6290_v53, 2  ;;  %3529 = vmatpush3.msk.msra.mxu1 %vm2095_vm4, %v2877_v39  ;;  %v7540_v39 = vld [vmem:[#allocation70_spill] sm:$0xff] }
 0x472   :  { %v2561_v22 = vsel %vm2095_vm4, %v7525_v25, %v7523_v8  ;;  %v2636_v57 = vsel %vm2040_vm3, %v7527_v16, %v7526_v30  ;;  %v2549_v15 = vmin.f32 %v2495_v35, %v2542_v42  ;;  %v7534_v13 = vrot.slane %v6365_v58, 2  ;;  %v7536_v25 = vld [vmem:[#allocation108_spill] sm:$0xff]  ;;  %v7538_v16 = vld [vmem:[#allocation39_spill] sm:$0xff] }
 0x473   :  { %v2655_v52 = vsel %vm2040_vm3, %v7530_v1, %v7528_v20  ;;  %v2690_v31 = vsel %vm2095_vm4, %v7531_v37, %v2689_v17  ;;  %v2424_v54 = vadd.f32 %v2420_v12, %v2401_v33  ;;  %v2568_v4 = vmax.f32 %v2514_v46, %v2561_v22  ;;  %v7541_v1 = vld [vmem:[#allocation115_spill] sm:$0xff] }
 0x474   :  { %v2643_v48 = vmin.f32 %v7532_v62, %v2636_v57  ;;  %v2662_v34 = vmax.f32 %v7533_v59, %v2655_v52  ;;  %v7535_v63 = vrot.slane %v6293_v27, 2  ;;  %v7537_v30 = vrot.slane %v7536_v25, 1  ;;  %v2728_v57 = vpop.permute.xlu1 %2727  ;;  %v7543_v62 = vld [vmem:[#allocation35_spill] sm:$0xff] }
 0x475   :  { %v7539_v33 = vrot.slane %v7538_v16, 1  ;;  %v2428_v12 = vadd.f32 %v2424_v54, %v2280_v41  ;;  %v2572_v35 = vadd.f32 %v2568_v4, %v2549_v15  ;;  %v2684_v58 = vrot.slane %v6449_v5, 2  ;;  %v7546_v54 = vld [vmem:[#allocation31_spill] sm:$0xff] }
 0x476   :  { %v2709_v8 = vsel %vm2095_vm4, %v7535_v63, %v7534_v13  ;;  %v2784_v17 = vsel %vm2040_vm3, %v7537_v30, %v2783_v2  ;;  %v2697_v46 = vmin.f32 %v2643_v48, %v2690_v31  ;;  %v7542_v37 = vrot.slane %v6389_v61, 2 }
 0x477   :  { %v2803_v42 = vsel %vm2040_vm3, %v7539_v33, %v2802_v36  ;;  %v2791_v22 = vmin.f32 %v7540_v39, %v2784_v17  ;;  %v2716_v20 = vmax.f32 %v2662_v34, %v2709_v8  ;;  %v7544_v59 = vrot.slane %v7543_v62, 2  ;;  %v7548_v17 = vld [vmem:[#allocation64_spill] sm:$0xff] }
 0x478   :  { %v2810_v52 = vmax.f32 %v7541_v1, %v2803_v42  ;;  %v2703_v13 = vrot.slane %v6452_v51, 2  ;;  %v2576_v36 = vadd.f32 %v2572_v35, %v2428_v12  ;;  %v7545_v31 = vrot.slane %v6393_v40, 2  ;;  %v7549_v40 = vld [vmem:[#allocation79_spill] sm:$0xff]  ;;  %v7551_v12 = vld [vmem:[#allocation116_spill] sm:$0xff] }
 0x479   :  { %v2838_v2 = vsel %vm2095_vm4, %v7544_v59, %v7542_v37  ;;  %v7547_v15 = vrot.slane %v7546_v54, 2  ;;  %v2720_v48 = vadd.f32 %v2716_v20, %v2697_v46  ;;  %v6536_v63 = vadd.f32 %v5769_v38, %v2728_v57  ;;  %v7550_v42 = vld [vmem:[#allocation75_spill] sm:$0xff]  ;;  %v7553_v1 = vld [vmem:[#allocation128_spill] sm:$0xff] }
 0x47a   :  { %v2845_v41 = vmin.f32 %v2791_v22, %v2838_v2  ;;  %v6539_v61 = vadd.f32 %v5771_v23, %v2728_v57  ;;  %v6542_v8 = vadd.f32 %v7446_v18, %v2728_v57  ;;  %v6545_v30 = vadd.f32 %v7448_v47, %v2728_v57  ;;  %v7555_v2 = vld [vmem:[#allocation98_spill] sm:$0xff] }
 0x47b   :  { %v2857_v4 = vsel %vm2095_vm4, %v7547_v15, %v7545_v31  ;;  %v2131_v33 = vadd.f32 %v7549_v40, %v7548_v17  ;;  %v2275_v35 = vadd.f32 %v7551_v12, %v7550_v42  ;;  %v2724_v46 = vadd.f32 %v2720_v48, %v2576_v36  ;;  %v7556_v36 = vld [vmem:[#allocation66_spill] sm:$0xff]  ;;  %v7564_v17 = vld [vmem:[#allocation47_spill] sm:$0xff] }
 0x47c   :  { %v2864_v34 = vmax.f32 %v2810_v52, %v2857_v4  ;;  %v6552_v38 = vadd.f32 %v7442_v45, %v2728_v57  ;;  %v6555_v23 = vadd.f32 %v7444_v49, %v2728_v57  ;;  %v2778_v18 = vrot.slane %v6536_v63, 1  ;;  %v7559_v49 = vld [vmem:[#allocation87_spill] sm:$0xff]  ;;  %v7562_v48 = vld [vmem:[#allocation26_spill] sm:$0xff] }
 0x47d   :  { %v2797_v22 = vrot.slane %v6539_v61, 1  ;;  %v2279_v47 = vadd.f32 %v2275_v35, %v2131_v33  ;;  %v7552_v20 = vrot.slane %v7506_v56, 2  ;;  %v7554_v52 = vrot.slane %v7553_v1, 2  ;;  %v7565_v40 = vld [vmem:[#allocation114_spill] sm:$0xff]  ;;  %v7567_v12 = vld [vmem:[#allocation59_spill] sm:$0xff]  ;;  %v7568_v35 = vld [vmem:[#allocation33_spill] sm:$0xff] }
 0x47e   :  { %v2868_v39 = vadd.f32 %v2864_v34, %v2845_v41  ;;  %v7557_v41 = vmin.f32 %v7555_v2, %v7556_v36  ;;  %v7558_v31 = vrot.slane %v7512_v43, 2  ;;  %v7560_v57 = vrot.slane %v7559_v49, 2 }
 0x47f   :  { %v2392_v37 = vsel %vm2095_vm4, %v7554_v52, %v7552_v20  ;;  %v7561_v4 = vrot.slane %v5990_v19, 2  ;;  %v7563_v34 = vrot.slane %v7562_v48, 2  ;;  %v7566_v33 = vmax.f32 %v7564_v17, %v7565_v40  ;;  %v7571_v20 = vld [vmem:[#allocation76_spill] sm:$0xff] }
 0x480   :  { %v2872_v59 = vadd.f32 %v2868_v39, %v2724_v46  ;;  %v2400_v45 = vmin.f32 %v7557_v41, %v2392_v37  ;;  %v2411_v15 = vsel %vm2095_vm4, %v7560_v57, %v7558_v31  ;;  %v7569_v46 = vmin.f32 %v7567_v12, %v7568_v35  ;;  %v7575_v31 = vld [vmem:[#allocation69_spill] sm:$0xff] }
 0x481   :  { %v2540_v56 = vsel %vm2095_vm4, %v7563_v34, %v7561_v4  ;;  %v2419_v42 = vmax.f32 %v7566_v33, %v2411_v15  ;;  %v7570_v43 = vrot.slane %v7524_v11, 2  ;;  %v7572_v52 = vrot.slane %v7571_v20, 2  ;;  %v7576_v57 = vld [vmem:[#allocation121_spill] sm:$0xff] }
 0x482   :  { %v2548_v39 = vmin.f32 %v7569_v46, %v2540_v56  ;;  %v7573_v19 = vrot.slane %v6268_v55, 1  ;;  %v7574_v2 = vrot.slane %v6406_v0, 1  ;;  %v2876_v41 = vmul.f32 0.5, %v2872_v59 }
 0x483   :  { %v2559_v37 = vsel %vm2095_vm4, %v7572_v52, %v7570_v43  ;;  %v7577_v15 = vmax.f32 %v7575_v31, %v7576_v57  ;;  %v7578_v56 = vrot.slane %v7529_v24, 1  ;;  %v7579_v11 = vrot.slane %v6409_v7, 1  ;;  %v7590_v31 = vld [vmem:[#allocation74_spill] sm:$0xff] }
 0x484   :  { %v2634_v36 = vsel %vm2040_vm3, %v7574_v2, %v7573_v19  ;;  %v2423_v40 = vadd.f32 %v2419_v42, %v2400_v45  ;;  %v7580_v33 = vrot.slane %v6290_v53, 2  ;;  %v7581_v12 = vrot.slane %v6412_v50, 2  ;;  %3530 = vmatprep.subr.mxu1 %v2876_v41  ;;  %v7585_v45 = vld [vmem:[#allocation88_spill] sm:$0xff] }
 0x485   :  { %v2567_v4 = vmax.f32 %v7577_v15, %v2559_v37  ;;  %v2642_v34 = vmin.f32 %v6420_v14, %v2634_v36  ;;  %v2653_v17 = vsel %vm2040_vm3, %v7579_v11, %v7578_v56  ;;  %v7582_v35 = vrot.slane %v6293_v27, 2  ;;  %v7588_v37 = vld [vmem:[#allocation34_spill] sm:$0xff]  ;;  %3531 = vmatpush3.msra.mxu1 %v2876_v41  ;;  %v7599_v41 = vld [vmem:[#allocation117_spill] sm:$0xff] }
 0x486   :  { %v2661_v55 = vmax.f32 %v6423_v60, %v2653_v17  ;;  %v2688_v59 = vsel %vm2095_vm4, %v7581_v12, %v7580_v33  ;;  %v7583_v46 = vrot.slane %v6415_v3, 2  ;;  %v7584_v52 = vrot.slane %v7536_v25, 1  ;;  %v7591_v15 = vld [vmem:[#allocation82_spill] sm:$0xff]  ;;  %v7593_v25 = vld [vmem:[#allocation77_spill] sm:$0xff]  ;;  %v7598_v12 = vld [vmem:[#allocation43_spill] sm:$0xff] }
 0x487   :  { %v2571_v24 = vadd.f32 %v2567_v4, %v2548_v39  ;;  %v2696_v43 = vmin.f32 %v2642_v34, %v2688_v59  ;;  %v7586_v42 = vrot.slane %v7585_v45, 1  ;;  %v7587_v53 = vrot.slane %v7538_v16, 1  ;;  %v7596_v16 = vld [vmem:[#allocation46_spill] sm:$0xff] }
 0x488   :  { %v2707_v14 = vsel %vm2095_vm4, %v7583_v46, %v7582_v35  ;;  %v7589_v19 = vrot.slane %v7588_v37, 1  ;;  %v2427_v27 = vadd.f32 %v2423_v40, %v2279_v47  ;;  %v7592_v4 = vrot.slane %v7543_v62, 2  ;;  %v7600_v47 = vld [vmem:[#allocation102_spill] sm:$0xff]  ;;  %v7603_v35 = vld [vmem:[#allocation72_spill] sm:$0xff]  ;;  %v7604_v46 = vld [vmem:[#allocation103_spill] sm:$0xff] }
 0x489   :  { %v2782_v60 = vsel %vm2040_vm3, %v7586_v42, %v7584_v52  ;;  %v2715_v36 = vmax.f32 %v2661_v55, %v2707_v14  ;;  %v7594_v34 = vrot.slane %v7593_v25, 2  ;;  %v7595_v11 = vrot.slane %v7546_v54, 2  ;;  %v7602_v59 = vld [vmem:[#allocation118_spill] sm:$0xff] }
 0x48a   :  { %v2801_v2 = vsel %vm2040_vm3, %v7589_v19, %v7587_v53  ;;  %v2790_v57 = vmin.f32 %v7590_v31, %v2782_v60  ;;  %v7597_v17 = vrot.slane %v7596_v16, 2  ;;  %v7601_v40 = vmin.f32 %v7599_v41, %v7600_v47  ;;  %v7606_v19 = vld [vmem:[#allocation86_spill] sm:$0xff] }
 0x48b   :  { %v2809_v39 = vmax.f32 %v7591_v15, %v2801_v2  ;;  %v2836_v56 = vsel %vm2095_vm4, %v7594_v34, %v7592_v4  ;;  %v7605_v14 = vmax.f32 %v7603_v35, %v7604_v46  ;;  %v2575_v52 = vadd.f32 %v2571_v24, %v2427_v27  ;;  %v7607_v2 = vld [vmem:[#allocation27_spill] sm:$0xff] }
 0x48c   :  { %v2855_v33 = vsel %vm2095_vm4, %v7597_v17, %v7595_v11  ;;  %v2107_v55 = vmin.f32 %v7601_v40, %v7598_v12  ;;  %v2719_v42 = vadd.f32 %v2715_v36, %v2696_v43  ;;  %v2844_v60 = vmin.f32 %v2790_v57, %v2836_v56  ;;  %v7609_v4 = vld [vmem:[#allocation63_spill] sm:$0xff]  ;;  %v7612_v12 = vld [vmem:[#allocation28_spill] sm:$0xff]  ;;  %v7617_v56 = vld [vmem:[#allocation45_spill] sm:$0xff] }
 0x48d   :  { %v2126_v62 = vmax.f32 %v7605_v14, %v7602_v59  ;;  %v2863_v53 = vmax.f32 %v2809_v39, %v2855_v33  ;;  %v2832_v54 = vrot.slane %v6552_v38, 2  ;;  %v2274_v31 = vadd.f32 %v7607_v2, %v7606_v19  ;;  %v7614_v36 = vld [vmem:[#allocation51_spill] sm:$0xff]  ;;  %v7618_v33 = vld [vmem:[#allocation68_spill] sm:$0xff] }
 0x48e   :  { %v7608_v15 = vrot.slane %v7553_v1, 2  ;;  %v7610_v34 = vrot.slane %v7609_v4, 2  ;;  %v7611_v17 = vrot.slane %v7559_v49, 2  ;;  %v7613_v41 = vrot.slane %v7612_v12, 2  ;;  %v7615_v57 = vld [vmem:[#allocation99_spill] sm:$0xff] }
 0x48f   :  { %v2723_v43 = vadd.f32 %v2719_v42, %v2575_v52  ;;  %v2867_v27 = vadd.f32 %v2863_v53, %v2844_v60  ;;  %v7616_v38 = vmin.f32 %v7614_v36, %v7615_v57  ;;  %v7619_v47 = vmax.f32 %v7617_v56, %v7618_v33  ;;  %v3428_v56 = vld [vmem:[%s6801_s7 + $0x28] sm:$0xff]  ;;  %v3427_v33 = vld [vmem:[%s6801_s7 + $0x20] sm:$0xff] }
 0x490   :  { %v2390_v11 = vsel %vm2095_vm4, %v7610_v34, %v7608_v15  ;;  %v2409_v24 = vsel %vm2095_vm4, %v7613_v41, %v7611_v17  ;;  %v2130_v40 = vadd.f32 %v2126_v62, %v2107_v55  ;;  %v7620_v59 = vrot.slane %v7562_v48, 2  ;;  %v7628_v15 = vld [vmem:[#allocation120_spill] sm:$0xff]  ;;  %v7630_v17 = vld [vmem:[#allocation122_spill] sm:$0xff] }
 0x491   :  { %v2399_v39 = vmin.f32 %v7616_v38, %v2390_v11  ;;  %v2418_v1 = vmax.f32 %v7619_v47, %v2409_v24  ;;  %v7621_v35 = vrot.slane %v6308_v9, 2  ;;  %v7622_v46 = vrot.slane %v7571_v20, 2  ;;  %v2966_v38 = vld [vmem:[%s6801_s7 + $0x8] sm:$0xff]  ;;  %v3218_v47 = vld [vmem:[#allocation12 + $0x78] sm:$0xff] }
 0x492   :  { %v7623_v14 = vrot.slane %v6311_v32, 2  ;;  %v7624_v42 = vrot.slane %v6406_v0, 1  ;;  %v7625_v60 = vrot.slane %v6435_v26, 1  ;;  %v2871_v19 = vadd.f32 %v2867_v27, %v2723_v43 }
 0x493   :  { %v2538_v49 = vsel %vm2095_vm4, %v7621_v35, %v7620_v59  ;;  %v2422_v55 = vadd.f32 %v2418_v1, %v2399_v39  ;;  %v7626_v48 = vmin.f32 %v6300_v28, %v6336_v21  ;;  %v7627_v62 = vmax.f32 %v6303_v44, %v6341_v29  ;;  %v2965_v39 = vld [vmem:[%s6801_s7] sm:$0xff]  ;;  %v3217_v1 = vld [vmem:[#allocation12 + $0x70] sm:$0xff] }
 0x494   :  { %v2557_v52 = vsel %vm2095_vm4, %v7623_v14, %v7622_v46  ;;  %v2632_v53 = vsel %vm2040_vm3, %v7625_v60, %v7624_v42  ;;  %v2851_v32 = vrot.slane %v6555_v23, 2  ;;  %v2278_v2 = vadd.f32 %v2274_v31, %v2130_v40  ;;  %v3216_v40 = vld [vmem:[#allocation12 + $0x68] sm:$0xff]  ;;  %v3215_v59 = vld [vmem:[#allocation12 + $0x60] sm:$0xff]  ;;  %v3214_v35 = vld [vmem:[#allocation12 + $0x58] sm:$0xff] }
 0x495   :  { %v2547_v9 = vmin.f32 %v7626_v48, %v2538_v49  ;;  %v2566_v20 = vmax.f32 %v7627_v62, %v2557_v52  ;;  %v2641_v4 = vmin.f32 %v7628_v15, %v2632_v53  ;;  %v7629_v0 = vrot.slane %v6409_v7, 1  ;;  %v3213_v49 = vld [vmem:[#allocation12 + $0x50] sm:$0xff]  ;;  %v3212_v46 = vld [vmem:[#allocation12 + $0x48] sm:$0xff]  ;;  %v3211_v14 = vld [vmem:[#allocation12 + $0x40] sm:$0xff] }
 0x496   :  { %v2875_v34 = vmul.f32 0.5, %v2871_v19  ;;  %v7631_v21 = vrot.slane %v6412_v50, 2  ;;  %v7632_v23 = vrot.slane %v6415_v3, 2  ;;  %v7633_v10 = vrot.slane %v7585_v45, 1  ;;  %v3210_v52 = vld [vmem:[#allocation12 + $0x38] sm:$0xff]  ;;  %v3209_v42 = vld [vmem:[#allocation12 + $0x30] sm:$0xff] }
 0x497   :  { %v2651_v26 = vsel %vm2040_vm3, %v2649_v6, %v7629_v0  ;;  %v2570_v11 = vadd.f32 %v2566_v20, %v2547_v9  ;;  %v7634_v31 = vrot.slane %v7588_v37, 1  ;;  %v2426_v5 = vadd.f32 %v2422_v55, %v2278_v2  ;;  %v3208_v60 = vld [vmem:[#allocation12 + $0x28] sm:$0xff]  ;;  %v3207_v53 = vld [vmem:[#allocation12 + $0x20] sm:$0xff]  ;;  %v3206_v19 = vld [vmem:[#allocation12 + $0x18] sm:$0xff] }
 0x498   :  { %v2660_v28 = vmax.f32 %v7630_v17, %v2651_v26  ;;  %v2686_v44 = vsel %vm2095_vm4, %v2684_v58, %v7631_v21  ;;  %v2705_v7 = vsel %vm2095_vm4, %v2703_v13, %v7632_v23  ;;  %v2780_v6 = vsel %vm2040_vm3, %v2778_v18, %v7633_v10  ;;  %3532 = vmatprep.subr.mxu1 %v2875_v34  ;;  %v3205_v55 = vld [vmem:[#allocation12 + $0x10] sm:$0xff]  ;;  %v3204_v48 = vld [vmem:[#allocation12 + $0x8] sm:$0xff]  ;;  %v3312_v9 = vld [vmem:[#allocation15 + $0x78] sm:$0xff] }
 0x499   :  { %v2695_v29 = vmin.f32 %v2641_v4, %v2686_v44  ;;  %v2799_v50 = vsel %vm2040_vm3, %v2797_v22, %v7634_v31  ;;  %v2789_v3 = vmin.f32 %v6542_v8, %v2780_v6  ;;  %3533 = vmatpush3.msra.mxu1 %v2875_v34  ;;  %v7635_v13 = vrot.slane %v7593_v25, 2  ;;  %v2879_v8 = vld [vmem:[%s6800_s6 + $0x8] sm:$0xf]  ;;  %v3424_v25 = vld [vmem:[%s6801_s7 + $0x18] sm:$0xff]  ;;  %3596 = vmatpush3.msra.mxu0 %v3312_v9  ;;  %v3306_v0 = vld [vmem:[#allocation15 + $0x48] sm:$0xff] }
 0x49a   :  { %v2714_v58 = vmax.f32 %v2660_v28, %v2705_v7  ;;  %v2808_v51 = vmax.f32 %v6545_v30, %v2799_v50  ;;  %v7636_v18 = vrot.slane %v7596_v16, 2  ;;  %v2574_v37 = vadd.f32 %v2570_v11, %v2426_v5  ;;  %v3423_v16 = vld [vmem:[%s6801_s7 + $0x10] sm:$0xff]  ;;  %v3203_v20 = vld [vmem:[#allocation12] sm:$0xff]  ;;  %v3430_v31 = vld [vmem:[#allocation11] ss:$0 sm:$0xff]  ;;  %s3952_s7 = smov [#allocation18]  }
 0x49b   :  { %v2834_v63 = vsel %vm2095_vm4, %v2832_v54, %v7635_v13  ;;  %v7637_v30 = vmov 0.0   ;;  %v3311_v62 = vld [vmem:[#allocation15 + $0x70] sm:$0xff]  ;;  %v3309_v2 = vld [vmem:[#allocation15 + $0x60] sm:$0xff]  ;;  %v3308_v15 = vld [vmem:[#allocation15 + $0x58] sm:$0xff]  ;;  %s3397_s28 = sshll.u32 %s3952_s7, 4  ;;  %s3398_s28 = int_to_ptr.vmem [resolvable:$true] %s3397_s28 }
 0x49c   :  { %v2853_v45 = vsel %vm2095_vm4, %v2851_v32, %v7636_v18  ;;  %v2718_v61 = vadd.f32 %v2714_v58, %v2695_v29  ;;  %v2843_v12 = vmin.f32 %v2789_v3, %v2834_v63  ;;  %3627 = vmatprep.mubr.msk.f32.mxu0 %vm3951_vm5, %v7637_v30  ;;  %3597 = vmatprep.subr.mxu0 %v7637_v30  ;;  %v3310_v32 = vld [vmem:[#allocation15 + $0x68] sm:$0xff]  ;;  %v3307_v4 = vld [vmem:[#allocation15 + $0x50] sm:$0xff]  ;;  %v3305_v26 = vld [vmem:[#allocation15 + $0x40] sm:$0xff]  ;;  %s3899_s29 = scalar_lea.vmem %s3398_s28, 64  ;;  %p3904_p4 = scmp.lt.s32.totalorder %s3398_s28, %s3398_s28 }
 0x49d   :  { %v2862_v22 = vmax.f32 %v2808_v51, %v2853_v45  ;;  %3598 = vmatpush3.msra.mxu0 %v3311_v62  ;;  %v3304_v34 = vld [vmem:[#allocation15 + $0x38] sm:$0xff]  ;;  %v3303_v11 = vld [vmem:[#allocation15 + $0x30] sm:$0xff]  ;;  %v3302_v17 = vld [vmem:[#allocation15 + $0x28] sm:$0xff]  ;;  %p3900_p3 = scmp.ne.s32.totalorder %s3398_s28, %s3899_s29  ;;  %p3905_p5 = scmp.lt.s32.totalorder %s3899_s29, %s3899_s29 }
 0x49e   :  { %v2722_v41 = vadd.f32 %v2718_v61, %v2574_v37  ;;  %3599 = vmatprep.subr.mxu0 %v7637_v30  ;;  %v3301_v28 = vld [vmem:[#allocation15 + $0x20] sm:$0xff]  ;;  %v3300_v21 = vld [vmem:[#allocation15 + $0x18] sm:$0xff]  ;;  %v3299_v51 = vld [vmem:[#allocation15 + $0x10] sm:$0xff] }
 0x49f   :  { %v2866_v24 = vadd.f32 %v2862_v22, %v2843_v12  ;;  %3600 = vmatpush3.msra.mxu0 %v3310_v32  ;;  %v3298_v13 = vld [vmem:[#allocation15 + $0x8] sm:$0xff]  ;;  %v3297_v63 = vld [vmem:[#allocation15] sm:$0xff]  ;;  %v3431_v18 = vld [vmem:[#allocation14] ss:$0 sm:$0xff]  ;;  %p3906_p6 = por %p3905_p5, %p3904_p4 }
 0x4a0   :  { %3601 = vmatprep.subr.mxu0 %v7637_v30  ;;  %v3432_v22 = vld [vmem:[#allocation17] ss:$0 sm:$0xff] }
 0x4a1   :  { %v2870_v43 = vadd.f32 %v2866_v24, %v2722_v41  ;;  %3602 = vmatpush3.msra.mxu0 %v3309_v2  ;;  %p3907_p7 = pnand %p3906_p6, %p3900_p3 }
 0x4a2   :  { %3603 = vmatprep.subr.mxu0 %v7637_v30 }
 0x4a3   :  { %v2874_v27 = vmul.f32 0.5, %v2870_v43  ;;  %3604 = vmatpush3.msra.mxu0 %v3308_v15 }
 0x4a4   :  { %3605 = vmatprep.subr.mxu0 %v7637_v30 }
 0x4a5   :  { %3534 = vmatprep.subr.mxu1 %v2874_v27  ;;  %3606 = vmatpush3.msra.mxu0 %v3307_v4 }
 0x4a6   :  { %3535 = vmatpush3.msra.mxu1 %v2874_v27  ;;  %3607 = vmatprep.subr.mxu0 %v7637_v30 }
 0x4a7   :  { %3537 = vmatmul.mubr.msk.f32.vlgmr.msra.gmra.mxu1 %vm2880_vm2, %v2879_v8  ;;  %3539 = vmatprep.subr.mxu1 %v7637_v30 }
 0x4a8   :  { %3540 = vmatpush3.msra.mxu1 %v3424_v25  ;;  %3543 = vmatprep.mubr.msk.f32.mxu1 %vm3951_vm5, %v7637_v30 }
 0x4a9   :  { %3541 = vmatprep.subr.mxu1 %v7637_v30  ;;  %3608 = vmatpush3.msra.mxu0 %v3306_v0 }
 0x4aa   :  { %3542 = vmatpush3.msra.mxu1 %v3423_v16  ;;  %3609 = vmatprep.subr.mxu0 %v7637_v30 }
 0x4ab   :  { %3546 = vmatprep.subr.mxu1 %v7637_v30  ;;  %3610 = vmatpush3.msra.mxu0 %v3305_v26 }
 0x4ac   :  { %3611 = vmatprep.subr.mxu0 %v7637_v30 }
 0x4ad   :  { %3612 = vmatpush3.msra.mxu0 %v3304_v34 }
 0x4ae   :  { %3613 = vmatprep.subr.mxu0 %v7637_v30 }
 0x4af   :  { %3614 = vmatpush3.msra.mxu0 %v3303_v11 }
 0x4b0   :  { %3615 = vmatprep.subr.mxu0 %v7637_v30 }
 0x4b1   :  { %3616 = vmatpush3.msra.mxu0 %v3302_v17 }
 0x4b2   :  { %3617 = vmatprep.subr.mxu0 %v7637_v30 }
 0x4b3   :  { %3618 = vmatpush3.msra.mxu0 %v3301_v28 }
 0x4b4   :  { %3619 = vmatprep.subr.mxu0 %v7637_v30 }
 0x4b5   :  { %3620 = vmatpush3.msra.mxu0 %v3300_v21 }
 0x4b6   :  { %3621 = vmatprep.subr.mxu0 %v7637_v30 }
 0x4b7   :  { %3622 = vmatpush3.msra.mxu0 %v3299_v51 }
 0x4b8   :  { %3623 = vmatprep.subr.mxu0 %v7637_v30 }
 0x4b9   :  { %3624 = vmatpush3.msra.mxu0 %v3298_v13 }
 0x4ba   :  { %3625 = vmatprep.subr.mxu0 %v7637_v30 }
 0x4bb   :  { %3626 = vmatpush3.msra.mxu0 %v3297_v63 }
 0x567   :  { %v3538_v54 = vpop.f32.mrf.mxu1 }
 0x569   :  { %v2956_v36 = vpop.f32.mrf.mxu1 }
 0x56a   :  { %v2971_v57 = vrot.slane %v2956_v36, 4 }
 0x56c   :  { %3544 = vmatmul.mubr.msk.f32.vlgmr.msra.gmra.mxu1 %vm2972_vm6, %v2971_v57 }
 0x56d   :  { %3547 = vmatpush3.msra.mxu1 %v2966_v38  ;;  %3550 = vmatprep.mubr.msk.f32.mxu1 %vm3951_vm5, %v7637_v30 }
 0x56e   :  { %3548 = vmatprep.subr.mxu1 %v7637_v30 }
 0x56f   :  { %3549 = vmatpush3.msra.mxu1 %v2965_v39 }
 0x570   :  { %3553 = vmatprep.subr.mxu1 %v7637_v30  ;;  %3551 = vmatmul.mubr.msk.f32.vlgmr.msra.gmra.mxu1 %vm2972_vm6, %v2956_v36 }
 0x571   :  { %3554 = vmatpush3.msra.mxu1 %v3428_v56  ;;  %3557 = vmatprep.mubr.msk.f32.mxu1 %vm3951_vm5, %v7637_v30 }
 0x572   :  { %3555 = vmatprep.subr.mxu1 %v7637_v30 }
 0x573   :  { %3556 = vmatpush3.msra.mxu1 %v3427_v33 }
 0x574   :  { %3558 = vmatmul.mubr.msk.f32.vlgmr.msra.gmra.mxu1 %vm2972_vm6, %v3538_v54  ;;  %3560 = vmatprep.subr.mxu1 %v7637_v30 }
 0x575   :  { %3561 = vmatpush3.msra.mxu1 %v3218_v47  ;;  %3592 = vmatprep.mubr.msk.f32.mxu1 %vm3951_vm5, %v7637_v30 }
 0x576   :  { %3562 = vmatprep.subr.mxu1 %v7637_v30 }
 0x577   :  { %3563 = vmatpush3.msra.mxu1 %v3217_v1 }
 0x578   :  { %3564 = vmatprep.subr.mxu1 %v7637_v30 }
 0x579   :  { %3565 = vmatpush3.msra.mxu1 %v3216_v40 }
 0x57a   :  { %3566 = vmatprep.subr.mxu1 %v7637_v30 }
 0x57b   :  { %3567 = vmatpush3.msra.mxu1 %v3215_v59 }
 0x57c   :  { %3568 = vmatprep.subr.mxu1 %v7637_v30 }
 0x57d   :  { %3569 = vmatpush3.msra.mxu1 %v3214_v35 }
 0x57e   :  { %3570 = vmatprep.subr.mxu1 %v7637_v30 }
 0x57f   :  { %3571 = vmatpush3.msra.mxu1 %v3213_v49 }
 0x580   :  { %3572 = vmatprep.subr.mxu1 %v7637_v30 }
 0x581   :  { %3573 = vmatpush3.msra.mxu1 %v3212_v46 }
 0x582   :  { %3574 = vmatprep.subr.mxu1 %v7637_v30 }
 0x583   :  { %3575 = vmatpush3.msra.mxu1 %v3211_v14 }
 0x584   :  { %3576 = vmatprep.subr.mxu1 %v7637_v30 }
 0x585   :  { %3577 = vmatpush3.msra.mxu1 %v3210_v52 }
 0x586   :  { %3578 = vmatprep.subr.mxu1 %v7637_v30 }
 0x587   :  { %3579 = vmatpush3.msra.mxu1 %v3209_v42 }
 0x588   :  { %3580 = vmatprep.subr.mxu1 %v7637_v30 }
 0x589   :  { %3581 = vmatpush3.msra.mxu1 %v3208_v60 }
 0x58a   :  { %3582 = vmatprep.subr.mxu1 %v7637_v30 }
 0x58b   :  { %3583 = vmatpush3.msra.mxu1 %v3207_v53 }
 0x58c   :  { %3584 = vmatprep.subr.mxu1 %v7637_v30 }
 0x58d   :  { %3585 = vmatpush3.msra.mxu1 %v3206_v19 }
 0x58e   :  { %3586 = vmatprep.subr.mxu1 %v7637_v30 }
 0x58f   :  { %3587 = vmatpush3.msra.mxu1 %v3205_v55 }
 0x590   :  { %3588 = vmatprep.subr.mxu1 %v7637_v30 }
 0x591   :  { %3589 = vmatpush3.msra.mxu1 %v3204_v48 }
 0x592   :  { %3590 = vmatprep.subr.mxu1 %v7637_v30 }
 0x593   :  { %3591 = vmatpush3.msra.mxu1 %v3203_v20 }
 0x62c   :  { %v3041_v44 = vpop.f32.mrf.mxu1 }
 0x62e   :  { %v3545_v29 = vpop.f32.mrf.mxu1 }
 0x630   :  { %v3113_v23 = vpop.f32.mrf.mxu1 }
 0x631   :  { %v3114_v10 = vadd.f32 %v3113_v23, %v3041_v44 }
 0x632   :  { %v3552_v7 = vpop.f32.mrf.mxu1 }
 0x634   :  { %v3189_v6 = vpop.f32.mrf.mxu1 }
 0x635   :  { %v3193_v50 = vadd.f32 %v3189_v6, %v3114_v10 }
 0x636   :  { %v3559_v5 = vpop.f32.mrf.mxu1 }
 0x637   :  { %v3201_v58 = vadd.f32 %v3430_v31, %v3193_v50 }
 0x639   :  { %v3202_v3 = vmax.f32 %v3201_v58, 0.0 }
 0x63b   :  { %3593 = vmatmul.mubr.f32.vlgmr.msra.gmra.mxu1 %v3202_v3 }
 0x6fb   :  { %v3292_v45 = vpop.f32.mrf.mxu1 }
 0x6fc   :  { %v3293_v37 = vadd.f32 %v3431_v18, %v3292_v45 }
 0x6fd   :  { %v3594_v61 = vpop.f32.mrf.mxu1 }
 0x6fe   :  { %v3296_v12 = vmax.f32 %v3293_v37, 0.0 }
 0x700   :  { %3628 = vmatmul.mubr.f32.vlgmr.msra.gmra.mxu0 %v3296_v12 }
 0x7c0   :  { %v3386_v41 = vpop.f32.mrf.mxu0 }
 0x7c1   :  { %v3387_v24 = vadd.f32 %v3432_v22, %v3386_v41 }
 0x7c2   :  { %v3629_v43 = vpop.f32.mrf.mxu0 }
 0x7c3   :  { %3390 = vst [vmem:[#allocation18] sm:$0xf] %v3387_v24 }
 0x7c4   :  { %3910 = shalt.err (!%p3907_p7)
}
 0x7c5   :  { %3400 = dma.vmem_to_hbm [thread:$0]  %s3398_s28, 64, %s6807_s13, [#allocation5]  }
 0x7c6   :  { %3929 = dma.done.wait [#allocation5], 64  }
 0x7c7   :  { %3930 = vsyncadd [#allocation5], 4294967232 }
 0x7c8   :  { %3404 = vsyncpa [#allocation4], 1 }
 0x7c9   :  { %3405 = vsyncpa [#allocation7], 1 }
 0x7ca   :  { %3406 = vsyncpa [#allocation10], 1 }
 0x7cb   :  { %3407 = vsyncpa [#allocation13], 1 }
 0x7cc   :  { %3408 = vsyncpa [#allocation16], 1 }
 0x7cd   :  { %3409 = vsyncpa [#allocation5], 1 }

</bundles_post_ra>
